<compile_context>
chip_gen: v6e
topology: v6e:2x2x1
jax: 0.10.0
libtpu: 0.0.40
codegen_flags: <defaults>
</compile_context>

<pallas_src>
import functools

import jax
import jax.numpy as jnp
from jax.experimental import pallas as pl
from jax.experimental.pallas import tpu as pltpu


def _gelu_tanh(x):
    # TODO(synk): PyTorch nn.GELU() defaults to the exact erf formulation; the tanh
    # approximation (max abs deviation ~1e-3) is used for guaranteed Mosaic lowering.
    # The tanh is evaluated in f32 regardless of x.dtype (safe on v5e, which has no
    # bf16 EUP); the surrounding polynomial/products stay in x.dtype.
    c = 0.7978845608028654  # sqrt(2/pi)
    t = jnp.tanh((c * (x + 0.044715 * x * x * x)).astype(jnp.float32))
    return 0.5 * x * (1.0 + t.astype(x.dtype))


# ----------------------------- Pallas kernel ------------------------------ #
def _poolformer_block_kernel(x_ref, icnt_ref, g1_ref, b1_ref, g2_ref, b2_ref,
                             w1_ref, fb1_ref, w2_ref, fb2_ref,
                             o_ref, padh_ref, padw_ref, *, eps):
    # x_ref   : (K, H, W, C)   K NHWC images per grid step
    # icnt_ref: (H, W, 1)      inverse valid-neighbor count (resident, constant)
    # g*/b*   : (1, C)         LayerNormChannel scale / shift (norm1, norm2)
    # w1_ref  : (C, Ch) bf16, fb1_ref: (1, Ch)  -- fc1 (1x1 conv), Ch = mlp_ratio*C
    # w2_ref  : (Ch, C) bf16, fb2_ref: (1, C)   -- fc2 (1x1 conv)
    # o_ref   : (K, H, W, C)
    # padh_ref: (K, H+2, W, C) f32 scratch (zero rows 0 / H+1)
    # padw_ref: (K, H, W+2, C) f32 scratch (zero cols 0 / W+1)
    K, H, W, C = x_ref.shape
    x = x_ref[...].astype(jnp.float32)

    def layernorm_channel(t, g, b):
        # One-pass stats: mean and E[t^2] are independent lane-axis reductions.
        u = jnp.mean(t, axis=-1, keepdims=True)
        e2 = jnp.mean(t * t, axis=-1, keepdims=True)
        v = e2 - u * u
        return (t - u) * jax.lax.rsqrt(v + eps) * g + b

    # ---- norm1 (LayerNorm over channels = lane-axis reduction) ----
    xn = layernorm_channel(x, g1_ref[0], b1_ref[0])

    # ---- 3x3 avg pool, stride 1, pad 1, count_include_pad=False, minus input ----
    # Separable box sum.  Re-zero only the 1-wide borders every step (cheap and
    # megacore-safe under dimension_semantics=("parallel",)).
    padh_ref[:, 0:1, :, :] = jnp.zeros((K, 1, W, C), jnp.float32)
    padh_ref[:, H + 1:H + 2, :, :] = jnp.zeros((K, 1, W, C), jnp.float32)
    padh_ref[:, 1:H + 1, :, :] = xn
    vsum = (padh_ref[:, 0:H, :, :]
            + padh_ref[:, 1:H + 1, :, :]
            + padh_ref[:, 2:H + 2, :, :])

    padw_ref[:, :, 0:1, :] = jnp.zeros((K, H, 1, C), jnp.float32)
    padw_ref[:, :, W + 1:W + 2, :] = jnp.zeros((K, H, 1, C), jnp.float32)
    padw_ref[:, :, 1:W + 1, :] = vsum
    box = (padw_ref[:, :, 0:W, :]
           + padw_ref[:, :, 1:W + 1, :]
           + padw_ref[:, :, 2:W + 2, :])

    # count_include_pad=False: multiply by the data-independent inverse count.
    x1 = x + box * icnt_ref[...] - xn                 # token-mixing residual

    # ---- norm2 + MLP (two 1x1 convs -> MXU matmuls, bf16 in / f32 acc) + residual ----
    xn2 = layernorm_channel(x1, g2_ref[0], b2_ref[0])
    m = xn2.reshape(K * H * W, C).astype(jnp.bfloat16)
    h32 = jnp.dot(m, w1_ref[...], preferred_element_type=jnp.float32) + fb1_ref[...]
    h = _gelu_tanh(h32.astype(jnp.bfloat16))          # bf16 GELU chain, bf16 output
    y = jnp.dot(h, w2_ref[...], preferred_element_type=jnp.float32) + fb2_ref[...]
    o_ref[...] = (x1 + y.reshape(K, H, W, C)).astype(o_ref.dtype)


# ------------------------- Sizing helpers (host) --------------------------- #
def _per_image_vmem_bytes(H, W, C, Ch):
    f32 = 4
    return (2 * 2 * H * W * C * f32          # in + out blocks, double-buffered
            + (H + 2) * W * C * f32          # H-padded pooling scratch
            + H * (W + 2) * C * f32          # W-padded pooling scratch
            + H * W * Ch * (f32 + 2))        # fc1 f32 accumulator + bf16 GELU copy


def _choose_block_batch(B, H, W, C, Ch, act_budget_bytes=16 << 20):
    """Images per grid step.  Larger K amortizes per-step pipeline overhead and
    raises MXU M; the budget keeps the per-step footprint v7x-safe, and the
    B//2 cap keeps >= 2 grid steps so both cores (megacore / v7x 2-TC) get work."""
    per_img = _per_image_vmem_bytes(H, W, C, Ch)
    k = max(1, min(act_budget_bytes // per_img, max(1, B // 2)))
    for d in range(min(k, B), 0, -1):
        if B % d == 0:
            return d
    return 1


def _vmem_limit_bytes(K, H, W, C, Ch):
    w_bytes = 2 * 2 * 2 * C * Ch             # 2 bf16 weights, double-buffered
    est = K * _per_image_vmem_bytes(H, W, C, Ch) + w_bytes + (8 << 20)  # + headroom
    return int(min(48 << 20, max(32 << 20, est)))


def _inv_count_map(H, W):
    """Inverse valid-neighbor count of a 3x3 / stride-1 / pad-1 window with
    count_include_pad=False (interior 1/9, edge 1/6, corner 1/4).  Shape (H, W, 1)."""
    def counts(n):
        i = jnp.arange(n)
        return (jnp.minimum(i + 1, n - 1) - jnp.maximum(i - 1, 0) + 1).astype(jnp.float32)
    cnt = counts(H)[:, None] * counts(W)[None, :]
    return (1.0 / cnt)[:, :, None]


# ------------------------------ Wrappers ----------------------------------- #
def poolformer_block_forward_nhwc(x_nhwc, norm1_w, norm1_b, norm2_w, norm2_b,
                                  w1_t, fc1_b2d, w2_t, fc2_b2d, *,
                                  eps=1e-5, block_batch=None):
    """Hot-path entry point: NHWC in, NHWC out (no layout glue).

    In a full network, keep activations NHWC across consecutive PoolFormer blocks
    and transpose only at model entry/exit.
    """
    B, H, W, C = x_nhwc.shape
    Ch = w1_t.shape[1]
    K = block_batch if block_batch is not None else _choose_block_batch(B, H, W, C, Ch)
    assert B % K == 0, (B, K)
    inv_cnt = _inv_count_map(H, W)

    return pl.pallas_call(
        functools.partial(_poolformer_block_kernel, eps=eps),
        out_shape=jax.ShapeDtypeStruct((B, H, W, C), x_nhwc.dtype),
        grid=(B // K,),
        in_specs=[
            pl.BlockSpec((K, H, W, C), lambda b: (b, 0, 0, 0)),   # x (streamed)
            pl.BlockSpec((H, W, 1), lambda b: (0, 0, 0)),         # inverse-count map
            pl.BlockSpec((1, C), lambda b: (0, 0)),               # norm1 weight
            pl.BlockSpec((1, C), lambda b: (0, 0)),               # norm1 bias
            pl.BlockSpec((1, C), lambda b: (0, 0)),               # norm2 weight
            pl.BlockSpec((1, C), lambda b: (0, 0)),               # norm2 bias
            pl.BlockSpec((C, Ch), lambda b: (0, 0)),              # fc1 weight (bf16)
            pl.BlockSpec((1, Ch), lambda b: (0, 0)),              # fc1 bias
            pl.BlockSpec((Ch, C), lambda b: (0, 0)),              # fc2 weight (bf16)
            pl.BlockSpec((1, C), lambda b: (0, 0)),               # fc2 bias
        ],
        out_specs=pl.BlockSpec((K, H, W, C), lambda b: (b, 0, 0, 0)),
        scratch_shapes=[pltpu.VMEM((K, H + 2, W, C), jnp.float32),
                        pltpu.VMEM((K, H, W + 2, C), jnp.float32)],
        compiler_params=pltpu.CompilerParams(
            dimension_semantics=("parallel",),
            vmem_limit_bytes=_vmem_limit_bytes(K, H, W, C, Ch)),
    )(x_nhwc, inv_cnt, norm1_w, norm1_b, norm2_w, norm2_b,
      w1_t, fc1_b2d, w2_t, fc2_b2d)


def poolformer_block_forward(x, norm1_w, norm1_b, norm2_w, norm2_b,
                             w1_t, fc1_b2d, w2_t, fc2_b2d, *,
                             eps=1e-5, block_batch=None):
    """PyTorch-layout (NCHW) convenience wrapper used by the demo.  The two
    transposes are model-entry/exit glue only; chained blocks should call
    poolformer_block_forward_nhwc directly and stay NHWC."""
    x_nhwc = jnp.transpose(x, (0, 2, 3, 1))
    out_nhwc = poolformer_block_forward_nhwc(
        x_nhwc, norm1_w, norm1_b, norm2_w, norm2_b,
        w1_t, fc1_b2d, w2_t, fc2_b2d, eps=eps, block_batch=block_batch)
    return jnp.transpose(out_nhwc, (0, 3, 1, 2))


def prepare_params(norm1_w, norm1_b, norm2_w, norm2_b, fc1_w, fc1_b, fc2_w, fc2_b):
    """PyTorch-layout params -> kernel layout.  Done ONCE (hoisted out of the hot path)."""
    C = norm1_w.shape[0]
    Ch = fc1_w.shape[0]
    return (norm1_w.reshape(1, C).astype(jnp.float32),
            norm1_b.reshape(1, C).astype(jnp.float32),
            norm2_w.reshape(1, C).astype(jnp.float32),
            norm2_b.reshape(1, C).astype(jnp.float32),
            jnp.transpose(fc1_w).astype(jnp.bfloat16),   # [C, Ch]
            fc1_b.reshape(1, Ch).astype(jnp.float32),
            jnp.transpose(fc2_w).astype(jnp.bfloat16),   # [Ch, C]
            fc2_b.reshape(1, C).astype(jnp.float32))


# --------------------------- Pure-JAX reference ---------------------------- #
def _reference_block(x, norm1_w, norm1_b, norm2_w, norm2_b,
                     fc1_w, fc1_b, fc2_w, fc2_b, eps=1e-5):
    def ln_c(t, g, b):
        u = jnp.mean(t, axis=1, keepdims=True)
        s = jnp.mean((t - u) ** 2, axis=1, keepdims=True)
        return (t - u) / jnp.sqrt(s + eps) * g[None, :, None, None] + b[None, :, None, None]

    def avgpool3x3(t):
        pads = [(0, 0), (0, 0), (1, 1), (1, 1)]
        s = jax.lax.reduce_window(t, 0.0, jax.lax.add, (1, 1, 3, 3), (1, 1, 1, 1), pads)
        n = jax.lax.reduce_window(jnp.ones_like(t), 0.0, jax.lax.add,
                                  (1, 1, 3, 3), (1, 1, 1, 1), pads)
        return s / n  # count_include_pad=False

    xn = ln_c(x, norm1_w, norm1_b)
    x1 = x + (avgpool3x3(xn) - xn)
    h = jnp.einsum("bchw,oc->bohw", ln_c(x1, norm2_w, norm2_b), fc1_w) \
        + fc1_b[None, :, None, None]
    h = _gelu_tanh(h)
    y = jnp.einsum("bchw,oc->bohw", h, fc2_w) + fc2_b[None, :, None, None]
    return x1 + y


# ------------------------------- Main -------------------------------------- #
if __name__ == "__main__":
    # PoolFormer stage-1 sized block (hidden_size=128 -> lane-dense channels), small spatial.
    B, C, H, W = 2, 128, 16, 16
    mlp_ratio = 4
    Ch = C * mlp_ratio
    eps = 1e-5

    key = jax.random.PRNGKey(0)
    kx, k1, k2, k3, k4, k5, k6, k7, k8 = jax.random.split(key, 9)
    x = jax.random.normal(kx, (B, C, H, W), dtype=jnp.float32)

    # LayerNormChannel params (perturbed from the ones/zeros init to exercise all paths).
    norm1_w = 1.0 + 0.1 * jax.random.normal(k1, (C,), jnp.float32)
    norm1_b = 0.1 * jax.random.normal(k2, (C,), jnp.float32)
    norm2_w = 1.0 + 0.1 * jax.random.normal(k3, (C,), jnp.float32)
    norm2_b = 0.1 * jax.random.normal(k4, (C,), jnp.float32)
    # Mlp 1x1-conv params (trunc_normal std=0.02 ~ normal*0.02; nonzero biases for coverage).
    fc1_w = 0.02 * jax.random.normal(k5, (Ch, C), jnp.float32)
    fc1_b = 0.02 * jax.random.normal(k6, (Ch,), jnp.float32)
    fc2_w = 0.02 * jax.random.normal(k7, (C, Ch), jnp.float32)
    fc2_b = 0.02 * jax.random.normal(k8, (C,), jnp.float32)

    # Hoisted: transpose + bf16-cast the conv weights once, outside the per-call path.
    kparams = prepare_params(norm1_w, norm1_b, norm2_w, norm2_b,
                             fc1_w, fc1_b, fc2_w, fc2_b)

    fwd = jax.jit(functools.partial(poolformer_block_forward, eps=eps))
    out = fwd(x, *kparams)
    out = jax.block_until_ready(out)
    assert out.shape == (B, C, H, W), out.shape

    ref = _reference_block(x, norm1_w, norm1_b, norm2_w, norm2_b,
                           fc1_w, fc1_b, fc2_w, fc2_b, eps=eps)
    max_err = float(jnp.max(jnp.abs(out - ref)))
    assert jnp.allclose(out, ref, atol=2e-2, rtol=2e-2), f"mismatch vs reference, max_abs_err={max_err}"

    print("KERNEL_OK")
</pallas_src>

<mosaic_0001>
module attributes {stable_mosaic.version = 11 : i64} {
  func.func @_poolformer_block_kernel(%arg0: i32, %arg1: memref<1x16x16x128xf32, #tpu.memory_space<vmem>>, %arg2: memref<16x16x1xf32, #tpu.memory_space<vmem>>, %arg3: memref<1x128xf32, #tpu.memory_space<vmem>>, %arg4: memref<1x128xf32, #tpu.memory_space<vmem>>, %arg5: memref<1x128xf32, #tpu.memory_space<vmem>>, %arg6: memref<1x128xf32, #tpu.memory_space<vmem>>, %arg7: memref<128x512xbf16, #tpu.memory_space<vmem>>, %arg8: memref<1x512xf32, #tpu.memory_space<vmem>>, %arg9: memref<512x128xbf16, #tpu.memory_space<vmem>>, %arg10: memref<1x128xf32, #tpu.memory_space<vmem>>, %arg11: memref<1x16x16x128xf32, #tpu.memory_space<vmem>>, %arg12: memref<1x18x16x128xf32, #tpu.memory_space<vmem>>, %arg13: memref<1x16x18x128xf32, #tpu.memory_space<vmem>>) attributes {dimension_semantics = [#tpu.dimension_semantics<parallel>], iteration_bounds = array<i64: 2>, scalar_prefetch = 0 : i64, scratch_operands = 2 : i64, tpu.core_type = #tpu.core_type<tc>, window_params = [{transform_indices = @transform_0, window_bounds = array<i64: 1, 16, 16, 128>}, {pipeline_mode = #tpu.pipeline_mode<synchronous>, transform_indices = @transform_1, window_bounds = array<i64: 16, 16, 1>}, {pipeline_mode = #tpu.pipeline_mode<synchronous>, transform_indices = @transform_2, window_bounds = array<i64: 1, 128>}, {pipeline_mode = #tpu.pipeline_mode<synchronous>, transform_indices = @transform_3, window_bounds = array<i64: 1, 128>}, {pipeline_mode = #tpu.pipeline_mode<synchronous>, transform_indices = @transform_4, window_bounds = array<i64: 1, 128>}, {pipeline_mode = #tpu.pipeline_mode<synchronous>, transform_indices = @transform_5, window_bounds = array<i64: 1, 128>}, {pipeline_mode = #tpu.pipeline_mode<synchronous>, transform_indices = @transform_6, window_bounds = array<i64: 128, 512>}, {pipeline_mode = #tpu.pipeline_mode<synchronous>, transform_indices = @transform_7, window_bounds = array<i64: 1, 512>}, {pipeline_mode = #tpu.pipeline_mode<synchronous>, transform_indices = @transform_8, window_bounds = array<i64: 512, 128>}, {pipeline_mode = #tpu.pipeline_mode<synchronous>, transform_indices = @transform_9, window_bounds = array<i64: 1, 128>}, {transform_indices = @transform_10, window_bounds = array<i64: 1, 16, 16, 128>}]} {
    %c0 = arith.constant 0 : index
    %c0_0 = arith.constant 0 : index
    %c0_1 = arith.constant 0 : index
    %c0_2 = arith.constant 0 : index
    %0 = vector.load %arg1[%c0, %c0_0, %c0_1, %c0_2] : memref<1x16x16x128xf32, #tpu.memory_space<vmem>>, vector<1x16x16x128xf32>
    %c0_3 = arith.constant 0 : index
    %c0_4 = arith.constant 0 : index
    %1 = vector.load %arg3[%c0_3, %c0_4] : memref<1x128xf32, #tpu.memory_space<vmem>>, vector<1x128xf32>
    %2 = vector.shape_cast %1 : vector<1x128xf32> to vector<128xf32>
    %c0_5 = arith.constant 0 : index
    %c0_6 = arith.constant 0 : index
    %3 = vector.load %arg4[%c0_5, %c0_6] : memref<1x128xf32, #tpu.memory_space<vmem>>, vector<1x128xf32>
    %4 = vector.shape_cast %3 : vector<1x128xf32> to vector<128xf32>
    %cst = arith.constant dense<0.000000e+00> : vector<1x16x16xf32>
    %5 = vector.multi_reduction <add>, %0, %cst [3] : vector<1x16x16x128xf32> to vector<1x16x16xf32>
    %6 = vector.shape_cast %5 : vector<1x16x16xf32> to vector<1x16x16x1xf32>
    %cst_7 = arith.constant 1.280000e+02 : f32
    %7 = vector.broadcast %cst_7 : f32 to vector<1x16x16x1xf32>
    %8 = arith.divf %6, %7 : vector<1x16x16x1xf32>
    %9 = arith.mulf %0, %0 : vector<1x16x16x128xf32>
    %cst_8 = arith.constant dense<0.000000e+00> : vector<1x16x16xf32>
    %10 = vector.multi_reduction <add>, %9, %cst_8 [3] : vector<1x16x16x128xf32> to vector<1x16x16xf32>
    %11 = vector.shape_cast %10 : vector<1x16x16xf32> to vector<1x16x16x1xf32>
    %cst_9 = arith.constant 1.280000e+02 : f32
    %12 = vector.broadcast %cst_9 : f32 to vector<1x16x16x1xf32>
    %13 = arith.divf %11, %12 : vector<1x16x16x1xf32>
    %14 = arith.mulf %8, %8 : vector<1x16x16x1xf32>
    %15 = arith.subf %13, %14 : vector<1x16x16x1xf32>
    %16 = vector.broadcast %8 : vector<1x16x16x1xf32> to vector<1x16x16x128xf32>
    %17 = arith.subf %0, %16 : vector<1x16x16x128xf32>
    %cst_10 = arith.constant 9.99999974E-6 : f32
    %18 = vector.broadcast %cst_10 : f32 to vector<1x16x16x1xf32>
    %19 = arith.addf %15, %18 : vector<1x16x16x1xf32>
    %20 = math.rsqrt %19 : vector<1x16x16x1xf32>
    %21 = vector.broadcast %20 : vector<1x16x16x1xf32> to vector<1x16x16x128xf32>
    %22 = arith.mulf %17, %21 : vector<1x16x16x128xf32>
    %23 = vector.shape_cast %2 : vector<128xf32> to vector<1x1x1x128xf32>
    %24 = vector.broadcast %23 : vector<1x1x1x128xf32> to vector<1x16x16x128xf32>
    %25 = arith.mulf %22, %24 : vector<1x16x16x128xf32>
    %26 = vector.shape_cast %4 : vector<128xf32> to vector<1x1x1x128xf32>
    %27 = vector.broadcast %26 : vector<1x1x1x128xf32> to vector<1x16x16x128xf32>
    %28 = arith.addf %25, %27 : vector<1x16x16x128xf32>
    %cst_11 = arith.constant 0.000000e+00 : f32
    %29 = vector.broadcast %cst_11 : f32 to vector<1x1x16x128xf32>
    %c0_12 = arith.constant 0 : index
    %c0_13 = arith.constant 0 : index
    %c0_14 = arith.constant 0 : index
    %c0_15 = arith.constant 0 : index
    %30 = vector.load %arg12[%c0_12, %c0_13, %c0_14, %c0_15] : memref<1x18x16x128xf32, #tpu.memory_space<vmem>>, vector<1x1x16x128xf32>
    tpu.vector_store %arg12[%c0_12, %c0_13, %c0_14, %c0_15], %29 {strides = array<i32>} : memref<1x18x16x128xf32, #tpu.memory_space<vmem>>, vector<1x1x16x128xf32>,
    %cst_16 = arith.constant 0.000000e+00 : f32
    %31 = vector.broadcast %cst_16 : f32 to vector<1x1x16x128xf32>
    %c0_17 = arith.constant 0 : index
    %c17 = arith.constant 17 : index
    %c0_18 = arith.constant 0 : index
    %c0_19 = arith.constant 0 : index
    %32 = vector.load %arg12[%c0_17, %c17, %c0_18, %c0_19] : memref<1x18x16x128xf32, #tpu.memory_space<vmem>>, vector<1x1x16x128xf32>
    tpu.vector_store %arg12[%c0_17, %c17, %c0_18, %c0_19], %31 {strides = array<i32>} : memref<1x18x16x128xf32, #tpu.memory_space<vmem>>, vector<1x1x16x128xf32>,
    %c0_20 = arith.constant 0 : index
    %c1 = arith.constant 1 : index
    %c0_21 = arith.constant 0 : index
    %c0_22 = arith.constant 0 : index
    %33 = vector.load %arg12[%c0_20, %c1, %c0_21, %c0_22] : memref<1x18x16x128xf32, #tpu.memory_space<vmem>>, vector<1x16x16x128xf32>
    tpu.vector_store %arg12[%c0_20, %c1, %c0_21, %c0_22], %28 {strides = array<i32>} : memref<1x18x16x128xf32, #tpu.memory_space<vmem>>, vector<1x16x16x128xf32>,
    %c0_23 = arith.constant 0 : index
    %c0_24 = arith.constant 0 : index
    %c0_25 = arith.constant 0 : index
    %c0_26 = arith.constant 0 : index
    %34 = vector.load %arg12[%c0_23, %c0_24, %c0_25, %c0_26] : memref<1x18x16x128xf32, #tpu.memory_space<vmem>>, vector<1x16x16x128xf32>
    %c0_27 = arith.constant 0 : index
    %c1_28 = arith.constant 1 : index
    %c0_29 = arith.constant 0 : index
    %c0_30 = arith.constant 0 : index
    %35 = vector.load %arg12[%c0_27, %c1_28, %c0_29, %c0_30] : memref<1x18x16x128xf32, #tpu.memory_space<vmem>>, vector<1x16x16x128xf32>
    %36 = arith.addf %34, %35 : vector<1x16x16x128xf32>
    %c0_31 = arith.constant 0 : index
    %c2 = arith.constant 2 : index
    %c0_32 = arith.constant 0 : index
    %c0_33 = arith.constant 0 : index
    %37 = vector.load %arg12[%c0_31, %c2, %c0_32, %c0_33] : memref<1x18x16x128xf32, #tpu.memory_space<vmem>>, vector<1x16x16x128xf32>
    %38 = arith.addf %36, %37 : vector<1x16x16x128xf32>
    %cst_34 = arith.constant 0.000000e+00 : f32
    %39 = vector.broadcast %cst_34 : f32 to vector<1x16x1x128xf32>
    %c0_35 = arith.constant 0 : index
    %c0_36 = arith.constant 0 : index
    %c0_37 = arith.constant 0 : index
    %c0_38 = arith.constant 0 : index
    %40 = vector.load %arg13[%c0_35, %c0_36, %c0_37, %c0_38] : memref<1x16x18x128xf32, #tpu.memory_space<vmem>>, vector<1x16x1x128xf32>
    tpu.vector_store %arg13[%c0_35, %c0_36, %c0_37, %c0_38], %39 {strides = array<i32>} : memref<1x16x18x128xf32, #tpu.memory_space<vmem>>, vector<1x16x1x128xf32>,
    %cst_39 = arith.constant 0.000000e+00 : f32
    %41 = vector.broadcast %cst_39 : f32 to vector<1x16x1x128xf32>
    %c0_40 = arith.constant 0 : index
    %c0_41 = arith.constant 0 : index
    %c17_42 = arith.constant 17 : index
    %c0_43 = arith.constant 0 : index
    %42 = vector.load %arg13[%c0_40, %c0_41, %c17_42, %c0_43] : memref<1x16x18x128xf32, #tpu.memory_space<vmem>>, vector<1x16x1x128xf32>
    tpu.vector_store %arg13[%c0_40, %c0_41, %c17_42, %c0_43], %41 {strides = array<i32>} : memref<1x16x18x128xf32, #tpu.memory_space<vmem>>, vector<1x16x1x128xf32>,
    %c0_44 = arith.constant 0 : index
    %c0_45 = arith.constant 0 : index
    %c1_46 = arith.constant 1 : index
    %c0_47 = arith.constant 0 : index
    %43 = vector.load %arg13[%c0_44, %c0_45, %c1_46, %c0_47] : memref<1x16x18x128xf32, #tpu.memory_space<vmem>>, vector<1x16x16x128xf32>
    tpu.vector_store %arg13[%c0_44, %c0_45, %c1_46, %c0_47], %38 {strides = array<i32>} : memref<1x16x18x128xf32, #tpu.memory_space<vmem>>, vector<1x16x16x128xf32>,
    %c0_48 = arith.constant 0 : index
    %c0_49 = arith.constant 0 : index
    %c0_50 = arith.constant 0 : index
    %c0_51 = arith.constant 0 : index
    %44 = vector.load %arg13[%c0_48, %c0_49, %c0_50, %c0_51] : memref<1x16x18x128xf32, #tpu.memory_space<vmem>>, vector<1x16x16x128xf32>
    %c0_52 = arith.constant 0 : index
    %c0_53 = arith.constant 0 : index
    %c1_54 = arith.constant 1 : index
    %c0_55 = arith.constant 0 : index
    %45 = vector.load %arg13[%c0_52, %c0_53, %c1_54, %c0_55] : memref<1x16x18x128xf32, #tpu.memory_space<vmem>>, vector<1x16x16x128xf32>
    %46 = arith.addf %44, %45 : vector<1x16x16x128xf32>
    %c0_56 = arith.constant 0 : index
    %c0_57 = arith.constant 0 : index
    %c2_58 = arith.constant 2 : index
    %c0_59 = arith.constant 0 : index
    %47 = vector.load %arg13[%c0_56, %c0_57, %c2_58, %c0_59] : memref<1x16x18x128xf32, #tpu.memory_space<vmem>>, vector<1x16x16x128xf32>
    %48 = arith.addf %46, %47 : vector<1x16x16x128xf32>
    %c0_60 = arith.constant 0 : index
    %c0_61 = arith.constant 0 : index
    %c0_62 = arith.constant 0 : index
    %49 = vector.load %arg2[%c0_60, %c0_61, %c0_62] : memref<16x16x1xf32, #tpu.memory_space<vmem>>, vector<16x16x1xf32>
    %50 = vector.shape_cast %49 : vector<16x16x1xf32> to vector<1x16x16x1xf32>
    %51 = vector.broadcast %50 : vector<1x16x16x1xf32> to vector<1x16x16x128xf32>
    %52 = arith.mulf %48, %51 : vector<1x16x16x128xf32>
    %53 = arith.addf %0, %52 : vector<1x16x16x128xf32>
    %54 = arith.subf %53, %28 : vector<1x16x16x128xf32>
    %c0_63 = arith.constant 0 : index
    %c0_64 = arith.constant 0 : index
    %55 = vector.load %arg5[%c0_63, %c0_64] : memref<1x128xf32, #tpu.memory_space<vmem>>, vector<1x128xf32>
    %56 = vector.shape_cast %55 : vector<1x128xf32> to vector<128xf32>
    %c0_65 = arith.constant 0 : index
    %c0_66 = arith.constant 0 : index
    %57 = vector.load %arg6[%c0_65, %c0_66] : memref<1x128xf32, #tpu.memory_space<vmem>>, vector<1x128xf32>
    %58 = vector.shape_cast %57 : vector<1x128xf32> to vector<128xf32>
    %cst_67 = arith.constant dense<0.000000e+00> : vector<1x16x16xf32>
    %59 = vector.multi_reduction <add>, %54, %cst_67 [3] : vector<1x16x16x128xf32> to vector<1x16x16xf32>
    %60 = vector.shape_cast %59 : vector<1x16x16xf32> to vector<1x16x16x1xf32>
    %cst_68 = arith.constant 1.280000e+02 : f32
    %61 = vector.broadcast %cst_68 : f32 to vector<1x16x16x1xf32>
    %62 = arith.divf %60, %61 : vector<1x16x16x1xf32>
    %63 = arith.mulf %54, %54 : vector<1x16x16x128xf32>
    %cst_69 = arith.constant dense<0.000000e+00> : vector<1x16x16xf32>
    %64 = vector.multi_reduction <add>, %63, %cst_69 [3] : vector<1x16x16x128xf32> to vector<1x16x16xf32>
    %65 = vector.shape_cast %64 : vector<1x16x16xf32> to vector<1x16x16x1xf32>
    %cst_70 = arith.constant 1.280000e+02 : f32
    %66 = vector.broadcast %cst_70 : f32 to vector<1x16x16x1xf32>
    %67 = arith.divf %65, %66 : vector<1x16x16x1xf32>
    %68 = arith.mulf %62, %62 : vector<1x16x16x1xf32>
    %69 = arith.subf %67, %68 : vector<1x16x16x1xf32>
    %70 = vector.broadcast %62 : vector<1x16x16x1xf32> to vector<1x16x16x128xf32>
    %71 = arith.subf %54, %70 : vector<1x16x16x128xf32>
    %cst_71 = arith.constant 9.99999974E-6 : f32
    %72 = vector.broadcast %cst_71 : f32 to vector<1x16x16x1xf32>
    %73 = arith.addf %69, %72 : vector<1x16x16x1xf32>
    %74 = math.rsqrt %73 : vector<1x16x16x1xf32>
    %75 = vector.broadcast %74 : vector<1x16x16x1xf32> to vector<1x16x16x128xf32>
    %76 = arith.mulf %71, %75 : vector<1x16x16x128xf32>
    %77 = vector.shape_cast %56 : vector<128xf32> to vector<1x1x1x128xf32>
    %78 = vector.broadcast %77 : vector<1x1x1x128xf32> to vector<1x16x16x128xf32>
    %79 = arith.mulf %76, %78 : vector<1x16x16x128xf32>
    %80 = vector.shape_cast %58 : vector<128xf32> to vector<1x1x1x128xf32>
    %81 = vector.broadcast %80 : vector<1x1x1x128xf32> to vector<1x16x16x128xf32>
    %82 = arith.addf %79, %81 : vector<1x16x16x128xf32>
    %83 = vector.shape_cast %82 : vector<1x16x16x128xf32> to vector<256x128xf32>
    %84 = arith.truncf %83 : vector<256x128xf32> to vector<256x128xbf16>
    %c0_72 = arith.constant 0 : index
    %c0_73 = arith.constant 0 : index
    %85 = vector.load %arg7[%c0_72, %c0_73] : memref<128x512xbf16, #tpu.memory_space<vmem>>, vector<128x512xbf16>
    %cst_74 = arith.constant dense<0.000000e+00> : vector<256x512xf32>
    %86 = tpu.matmul %84, %85, %cst_74 {dimension_numbers = #tpu.dot_dimension_numbers<[1], [0], [0], [1], [0, 0, 1, 1], [], []>} : vector<256x128xbf16>, vector<128x512xbf16>, vector<256x512xf32> -> vector<256x512xf32>
    %c0_75 = arith.constant 0 : index
    %c0_76 = arith.constant 0 : index
    %87 = vector.load %arg8[%c0_75, %c0_76] : memref<1x512xf32, #tpu.memory_space<vmem>>, vector<1x512xf32>
    %88 = vector.broadcast %87 : vector<1x512xf32> to vector<256x512xf32>
    %89 = arith.addf %86, %88 : vector<256x512xf32>
    %90 = arith.truncf %89 : vector<256x512xf32> to vector<256x512xbf16>
    %cst_77 = arith.constant 4.467770e-02 : bf16
    %91 = vector.broadcast %cst_77 : bf16 to vector<256x512xbf16>
    %92 = arith.mulf %91, %90 : vector<256x512xbf16>
    %93 = arith.mulf %92, %90 : vector<256x512xbf16>
    %94 = arith.mulf %93, %90 : vector<256x512xbf16>
    %95 = arith.addf %90, %94 : vector<256x512xbf16>
    %cst_78 = arith.constant 7.968750e-01 : bf16
    %96 = vector.broadcast %cst_78 : bf16 to vector<256x512xbf16>
    %97 = arith.mulf %96, %95 : vector<256x512xbf16>
    %98 = arith.extf %97 : vector<256x512xbf16> to vector<256x512xf32>
    %99 = math.tanh %98 : vector<256x512xf32>
    %cst_79 = arith.constant 5.000000e-01 : bf16
    %100 = vector.broadcast %cst_79 : bf16 to vector<256x512xbf16>
    %101 = arith.mulf %100, %90 : vector<256x512xbf16>
    %102 = arith.truncf %99 : vector<256x512xf32> to vector<256x512xbf16>
    %cst_80 = arith.constant 1.000000e+00 : bf16
    %103 = vector.broadcast %cst_80 : bf16 to vector<256x512xbf16>
    %104 = arith.addf %103, %102 : vector<256x512xbf16>
    %105 = arith.mulf %101, %104 : vector<256x512xbf16>
    %c0_81 = arith.constant 0 : index
    %c0_82 = arith.constant 0 : index
    %106 = vector.load %arg9[%c0_81, %c0_82] : memref<512x128xbf16, #tpu.memory_space<vmem>>, vector<512x128xbf16>
    %cst_83 = arith.constant dense<0.000000e+00> : vector<256x128xf32>
    %107 = tpu.matmul %105, %106, %cst_83 {dimension_numbers = #tpu.dot_dimension_numbers<[1], [0], [0], [1], [0, 0, 1, 1], [], []>} : vector<256x512xbf16>, vector<512x128xbf16>, vector<256x128xf32> -> vector<256x128xf32>
    %c0_84 = arith.constant 0 : index
    %c0_85 = arith.constant 0 : index
    %108 = vector.load %arg10[%c0_84, %c0_85] : memref<1x128xf32, #tpu.memory_space<vmem>>, vector<1x128xf32>
    %109 = vector.broadcast %108 : vector<1x128xf32> to vector<256x128xf32>
    %110 = arith.addf %107, %109 : vector<256x128xf32>
    %111 = vector.shape_cast %110 : vector<256x128xf32> to vector<1x16x16x128xf32>
    %112 = arith.addf %54, %111 : vector<1x16x16x128xf32>
    %c0_86 = arith.constant 0 : index
    %c0_87 = arith.constant 0 : index
    %c0_88 = arith.constant 0 : index
    %c0_89 = arith.constant 0 : index
    %113 = vector.load %arg11[%c0_86, %c0_87, %c0_88, %c0_89] : memref<1x16x16x128xf32, #tpu.memory_space<vmem>>, vector<1x16x16x128xf32>
    tpu.vector_store %arg11[%c0_86, %c0_87, %c0_88, %c0_89], %112 {strides = array<i32>} : memref<1x16x16x128xf32, #tpu.memory_space<vmem>>, vector<1x16x16x128xf32>,
    return
  }
  func.func @transform_0(%arg0: i32) -> (i32, i32, i32, i32) {
    %c0_i32 = arith.constant 0 : i32
    %c0_i32_0 = arith.constant 0 : i32
    %c0_i32_1 = arith.constant 0 : i32
    %c0_i32_2 = arith.constant 0 : i32
    return %arg0, %c0_i32, %c0_i32_0, %c0_i32_1 : i32, i32, i32, i32
  }
  func.func @transform_1(%arg0: i32) -> (i32, i32, i32) {
    %c0_i32 = arith.constant 0 : i32
    %c0_i32_0 = arith.constant 0 : i32
    %c0_i32_1 = arith.constant 0 : i32
    %c0_i32_2 = arith.constant 0 : i32
    return %c0_i32, %c0_i32_0, %c0_i32_1 : i32, i32, i32
  }
  func.func @transform_2(%arg0: i32) -> (i32, i32) {
    %c0_i32 = arith.constant 0 : i32
    %c0_i32_0 = arith.constant 0 : i32
    %c0_i32_1 = arith.constant 0 : i32
    return %c0_i32, %c0_i32_0 : i32, i32
  }
  func.func @transform_3(%arg0: i32) -> (i32, i32) {
    %c0_i32 = arith.constant 0 : i32
    %c0_i32_0 = arith.constant 0 : i32
    %c0_i32_1 = arith.constant 0 : i32
    return %c0_i32, %c0_i32_0 : i32, i32
  }
  func.func @transform_4(%arg0: i32) -> (i32, i32) {
    %c0_i32 = arith.constant 0 : i32
    %c0_i32_0 = arith.constant 0 : i32
    %c0_i32_1 = arith.constant 0 : i32
    return %c0_i32, %c0_i32_0 : i32, i32
  }
  func.func @transform_5(%arg0: i32) -> (i32, i32) {
    %c0_i32 = arith.constant 0 : i32
    %c0_i32_0 = arith.constant 0 : i32
    %c0_i32_1 = arith.constant 0 : i32
    return %c0_i32, %c0_i32_0 : i32, i32
  }
  func.func @transform_6(%arg0: i32) -> (i32, i32) {
    %c0_i32 = arith.constant 0 : i32
    %c0_i32_0 = arith.constant 0 : i32
    %c0_i32_1 = arith.constant 0 : i32
    return %c0_i32, %c0_i32_0 : i32, i32
  }
  func.func @transform_7(%arg0: i32) -> (i32, i32) {
    %c0_i32 = arith.constant 0 : i32
    %c0_i32_0 = arith.constant 0 : i32
    %c0_i32_1 = arith.constant 0 : i32
    return %c0_i32, %c0_i32_0 : i32, i32
  }
  func.func @transform_8(%arg0: i32) -> (i32, i32) {
    %c0_i32 = arith.constant 0 : i32
    %c0_i32_0 = arith.constant 0 : i32
    %c0_i32_1 = arith.constant 0 : i32
    return %c0_i32, %c0_i32_0 : i32, i32
  }
  func.func @transform_9(%arg0: i32) -> (i32, i32) {
    %c0_i32 = arith.constant 0 : i32
    %c0_i32_0 = arith.constant 0 : i32
    %c0_i32_1 = arith.constant 0 : i32
    return %c0_i32, %c0_i32_0 : i32, i32
  }
  func.func @transform_10(%arg0: i32) -> (i32, i32, i32, i32) {
    %c0_i32 = arith.constant 0 : i32
    %c0_i32_0 = arith.constant 0 : i32
    %c0_i32_1 = arith.constant 0 : i32
    %c0_i32_2 = arith.constant 0 : i32
    return %arg0, %c0_i32, %c0_i32_0, %c0_i32_1 : i32, i32, i32, i32
  }
}

</mosaic_0001>

<bundles_post_ra>
// kernel: poolformer_block_forward.1
= control target key start
LH: loop header
LB: loop body
LE: loop exit
PB: predicated region body
PF: predicated region fallthrough
CT: control target
= control target key end

     0   :  { %s8405_s0 = inlined_call_operand.hbm [shape: f32[2,16,16,128], index: 0, kind: input, shape index: {}]   ;;  %s8406_s1 = inlined_call_operand.vmem [shape: f32[16,16,1], index: 1, kind: input, shape index: {}]   ;;  %s8407_s2 = inlined_call_operand.vmem [shape: f32[1,128], index: 2, kind: input, shape index: {}]   ;;  %s8408_s3 = inlined_call_operand.vmem [shape: f32[1,128], index: 3, kind: input, shape index: {}]   ;;  %s8409_s4 = inlined_call_operand.vmem [shape: f32[1,128], index: 4, kind: input, shape index: {}]   ;;  %s8410_s5 = inlined_call_operand.vmem [shape: f32[1,128], index: 5, kind: input, shape index: {}]   ;;  %s8411_s6 = inlined_call_operand.vmem [shape: bf16[128,512], index: 6, kind: input, shape index: {}]   ;;  %s8412_s7 = inlined_call_operand.vmem [shape: f32[1,512], index: 7, kind: input, shape index: {}]   ;;  %s8413_s8 = inlined_call_operand.hbm [shape: bf16[512,128], index: 8, kind: input, shape index: {}]   ;;  %s8414_s9 = inlined_call_operand.vmem [shape: f32[1,128], index: 9, kind: input, shape index: {}]   ;;  %s8415_s10 = inlined_call_operand.hbm [shape: f32[2,16,16,128], index: 10, kind: output, shape index: {}]  }
   0x1   :  { %8490 = sst [smem:[#allocation71_spill]] %s8413_s8 }
   0x2   :  { %15 = vsyncpa [#allocation5], 0 }
   0x3   :  { %17 = vsyncpa [#allocation5 + $0x1], 0 }
   0x4   :  { %18 = vsyncpa [#allocation8], 0 }
   0x5   :  { %19 = vsyncpa [#allocation6], 0 }
   0x6   :  { %21 = vsyncpa [#allocation6 + $0x1], 0  ;;  %s5470_s13 = smov 0   ;;  %s5472_s14 = smov 0  }
   0x7   :  { %s5474_s15 = smov 0   ;;  %s5476_s16 = smov 0  }
   0x8 LB: > { %8491 = sst [smem:[#allocation13_spill]] %s5390_s13  ;;  %s5491_s17 = sadd.s32 4294967295, %s5402_s16   ;;  %s5402_s16 = sphi %s5476_s16, %s8677_s16   ;;  %s5398_s15 = sphi %s5474_s15, %s8680_s15   ;;  %s5394_s14 = sphi %s5472_s14, %s8679_s14   ;;  %s5390_s13 = sphi %s5470_s13, %s8678_s13  }
   0x9   : > { %s4388_s18 = sadd.s32 4294967294, %s5402_s16   ;;  %p47_p0 = scmp.ne.s32.totalorder %s5394_s14, %s5390_s13 }
   0xa   : > { %p8420_p1 = scmp.eq.s32.totalorder %s5491_s17, 0  ;;  %p266_p3 = scmp.eq.s32.totalorder %s4388_s18, 1 }
   0xb   : > { %p4389_p5 = scmp.ge.s32.totalorder %s5402_s16, 1  ;;  %p273_p7 = scmp.lt.s32.totalorder %s5402_s16, 3 }
   0xc   : > { %p5500_p4 = por %p8420_p1, %p47_p0  ;;  %p5505_p6 = por %p266_p3, %p47_p0 }
   0xd   : > { %p5510_p8 = pnand %p4389_p5, %p273_p7  ;;  %s5404_s22 = smov [#allocation7]  }
   0xe   : > { %s8492_s19 = scalar_select %p5500_p4, 1, 0 }
   0xf   : > { %s8493_s20 = scalar_select %p5505_p6, 1, 0 }
  0x10   : > { %s8495_s21 = scalar_select %p5510_p8, 1, 0 }
  0x11   : > { %8494 = sst [smem:[#allocation14_spill]] %s8493_s20  ;;  %s306_s23 = sshll.u32 %s5404_s22, 4  ;;  %s307_s23 = int_to_ptr.vmem [resolvable:$true] %s306_s23 }
  0x12   : > { %p4707_p9 = pneg %p5510_p8  ;;  %s5524_s25 = sadd.s32 1, %s5402_s16  }
  0x13   : > { %8497 = sst [smem:[#allocation15_spill]] %s5524_s25  ;;  %s34_s26 = sadd.s32 1, %s5398_s15 }
  0x14   : > { %p5519_p11 = pnand %p4707_p9, %p8420_p1  ;;  %s31_s27 = ssub.s32 %s5402_s16, %s5524_s25 }
  0x15   : > { %s5291_s28 = scalar_lea.vmem %s307_s23, 4096  ;;  %p5299_p5 = scmp.lt.s32.totalorder %s307_s23, %s307_s23 }
  0x16   : > { %p5282_p12 = pneg %p5519_p11  ;;  %p5292_p13 = scmp.ne.s32.totalorder %s307_s23, %s5291_s28 }
  0x17   : > { %p5300_p7 = scmp.lt.s32.totalorder %s5291_s28, %s5291_s28 }
  0x18   : > { %p5294_p0 = pnand %p5292_p13, %p5282_p12 }
  0x19   : > { %p5301_p10 = por %p5300_p7, %p5299_p5 }
  0x1a   : > { %p5295_p3 = pneg %p5294_p0 }
  0x1c   : > { %p5302_p2 = pnand %p5301_p10, %p5295_p3 }
  0x1e   : > { %5305 = shalt.err (!%p5302_p2)
}
  0x1f   : > { %s5405_s29 = smov 64   ;;  %s5406_s30 = smov 4  }
  0x20   : > { %s8498_s8 = sld [smem:[#allocation71_spill]]  ;;  %p32_p9 = scmp.eq.s32.totalorder %s31_s27, 0 }
  0x21   : > { %p41_p12 = scmp.ne.s32.totalorder %s5398_s15, %s5394_s14  ;;  %p42_p10 = scmp.eq.s32.totalorder %s5402_s16, 0 }
  0x22   : > { %p4720_p2 = scmp.lt.s32.totalorder %s5402_s16, 2  ;;  %p8499_p0 = scmp.eq.s32.totalorder %s5491_s17, 1 }
  0x23   : > { %s5541_s18 = scalar_select %p32_p9, %s5398_s15, %s34_s26  }
  0x24   : > { %p43_p13 = por %p42_p10, %p41_p12  ;;  %p5545_p3 = por %p8499_p0, %p41_p12 }
  0x25   : > { %s323_s28 = sand.u32 1, %s5398_s15   ;;  %s4473_s25 = sshll.u32 %s5402_s16, 12 }
  0x26   : > { %4710 = dma.hbm_to_vmem [thread:$0]  (!%p5519_p11), %s8498_s8, 4096, %s307_s23, [#allocation8], %s5405_s29, %s5405_s29, %s5406_s30  }
  0x27   : > { %s8500_s22 = scalar_select %p5545_p3, 1, 0 }
  0x28   : > { %s4392_s20 = sshll.u32 %s323_s28, 8  ;;  %s5554_s11 = scalar_lea.hbm %s8405_s0, %s4473_s25 }
  0x29   : > { %s327_s23 = scalar_lea.vmem [#allocation4], %s4392_s20  ;;  %p5556_p11 = pnand %p4720_p2, %p43_p13 }
  0x2a   : > { %s334_s26 = sshll.u32 %s327_s23, 4  ;;  %s5562_s29 = scalar_lea.sflag [#allocation5], %s323_s28  ;;  %s5560_s26 = int_to_ptr.vmem [resolvable:$true] %s334_s26 }
  0x2b   : > { %s5306_s30 = scalar_lea.hbm %s5554_s11, 4096  ;;  %p5308_p7 = pneg %p5556_p11 }
  0x2c   : > { %p5307_p5 = scmp.ne.s32.totalorder %s5554_s11, %s5306_s30  ;;  %s5311_s20 = scalar_lea.hbm %s8405_s0, 8192 }
  0x2d   : > { %p5312_p10 = scmp.lt.s32.totalorder %s5554_s11, %s8405_s0  ;;  %p5313_p2 = scmp.lt.s32.totalorder %s5311_s20, %s5306_s30 }
  0x2e   : > { %p5309_p9 = pnand %p5308_p7, %p5307_p5 }
  0x2f   : > { %p5314_p13 = por %p5313_p2, %p5312_p10 }
  0x30   : > { %p5310_p12 = pneg %p5309_p9 }
  0x32   : > { %p5315_p0 = pnand %p5314_p13, %p5310_p12 }
  0x34   : > { %5318 = shalt.err (!%p5315_p0)
}
  0x35   : > { %s5319_s28 = scalar_lea.vmem %s5560_s26, 4096  ;;  %s5407_s23 = smov [#allocation4]  }
  0x36   : > { %p5320_p1 = scmp.ne.s32.totalorder %s5560_s26, %s5319_s28  ;;  %s5324_s8 = sshll.u32 %s5407_s23, 4  ;;  %s5325_s8 = int_to_ptr.vmem [resolvable:$false] %s5324_s8 }
  0x37   : > { %s5326_s13 = scalar_lea.vmem %s5325_s8, 8192  ;;  %p5327_p9 = scmp.lt.s32.totalorder %s5560_s26, %s5325_s8 }
  0x38   : > { %p5322_p6 = pnand %p5320_p1, %p5308_p7  ;;  %p5328_p3 = scmp.lt.s32.totalorder %s5326_s13, %s5319_s28 }
  0x3a   : > { %p5323_p5 = pneg %p5322_p6  ;;  %p5329_p4 = por %p5328_p3, %p5327_p9 }
  0x3c   : > { %p5330_p8 = pnand %p5329_p4, %p5323_p5 }
  0x3e   : > { %5333 = shalt.err (!%p5330_p8)
}
  0x3f   : > { %s5408_s30 = smov 128   ;;  %s5409_s25 = smov 8  }
  0x40   : > { %4714 = dma.hbm_to_vmem [thread:$0]  (!%p5556_p11), %s5554_s11, 4096, %s5560_s26, %s5562_s29, %s5408_s30, %s5408_s30, %s5409_s25  }
  0x41   : > { %p8502_p1 = scmp.ne.s32.totalorder %s8495_s21, 0 }
  0x43   : > { %346 = sbr.rel (%p8502_p1) target bundleno = 1421 (0x58d), region = 60 }
  0x48   : > { %s5586_s20 = sand.u32 1, %s5394_s14   ;;  %p8503_p4 = scmp.ne.s32.totalorder %s8492_s19, 0 }
  0x49   : > { %s4396_s8 = sshll.u32 %s5586_s20, 8  ;;  %s349_s12 = scalar_lea.sflag [#allocation5], %s5586_s20 }
  0x4a   : > { %s5592_s24 = scalar_lea.vmem [#allocation4], %s4396_s8 }
  0x4b   : > { %5377 = dma.done.wait (%p8503_p4), %s349_s12, 4096  }
  0x4c   : > { %5379 = vsyncadd (%p8503_p4), %s349_s12, 4294963200  ;;  %p8504_p6 = scmp.eq.s32.totalorder %s5491_s17, 0 }
  0x4e   : > { %5381 = dma.done.wait (%p8504_p6), [#allocation8], 4096   ;;  %p8505_p8 = pmov %p8504_p6 }
  0x4f   : > { %v8424_v0 = vmov 0   ;;  %v5607_v1 = vld [vmem:[%s5592_s24 + $0x10] sm:$0xff]  ;;  %v5610_v2 = vld [vmem:[%s5592_s24] sm:$0xff]  ;;  %v5615_v3 = vld [vmem:[%s5592_s24 + $0x18] sm:$0xff]  ;;  %v5411_v29 = vmov 0.0   ;;  %s8108_s26 = scalar_lea.vmem [#allocation9], %s4396_s8 }
  0x50   : > { %5383 = vsyncadd (%p8505_p8), [#allocation8], 4294963200  ;;  %4764 = vset.pattern.permute.xlu1 %v8424_v0  ;;  %4765 = vset.pattern.permute.xlu0 %v8424_v0  ;;  %v5618_v4 = vld [vmem:[%s5592_s24 + $0x8] sm:$0xff]  ;;  %v529_v6 = vmul.f32 %v5610_v2, %v5610_v2  ;;  %v532_v7 = vmul.f32 %v5615_v3, %v5615_v3  ;;  %v531_v8 = vmul.f32 %v5607_v1, %v5607_v1  ;;  %v5634_v10 = vld [vmem:[%s5592_s24 + $0x20] sm:$0xff]  ;;  %s4474_s8 = sshll.u32 %s5491_s17, 12  ;;  %s4305_s27 = sshll.u32 %s8108_s26, 4  ;;  %s8360_s27 = int_to_ptr.vmem [resolvable:$true] %s4305_s27 }
  0x51   : > { %2392 = vmatprep.mubr.bf16.mxu0 %v8424_v0  ;;  %2585 = vmatprep.mubr.bf16.mxu1 %v8424_v0  ;;  %v530_v5 = vmul.f32 %v5618_v4, %v5618_v4  ;;  %v5631_v9 = vld [vmem:[%s5592_s24 + $0x28] sm:$0xff]  ;;  %v533_v12 = vmul.f32 %v5634_v10, %v5634_v10  ;;  %v5643_v13 = vld [vmem:[%s5592_s24 + $0x38] sm:$0xff]  ;;  %v5646_v14 = vld [vmem:[%s5592_s24 + $0x30] sm:$0xff]  ;;  %1140 = vst [vmem:[#allocation3 + $0x11] sm:$0x1] %v5411_v29  ;;  %s8358_s23 = scalar_lea.hbm %s8415_s10, %s4474_s8  ;;  %s5334_s13 = scalar_lea.vmem %s8360_s27, 4096 }
  0x52   : > { %436 = vadd.xlane.f32.xlu1 %v5607_v1  ;;  %432 = vadd.xlane.f32.xlu0 %v5610_v2  ;;  %v534_v11 = vmul.f32 %v5631_v9, %v5631_v9  ;;  %v536_v15 = vmul.f32 %v5643_v13, %v5643_v13  ;;  %v535_v16 = vmul.f32 %v5646_v14, %v5646_v14  ;;  %v5655_v17 = vld [vmem:[%s5592_s24 + $0x48] sm:$0xff]  ;;  %v5658_v18 = vld [vmem:[%s5592_s24 + $0x40] sm:$0xff]  ;;  %v5667_v21 = vld [vmem:[%s5592_s24 + $0x58] sm:$0xff]  ;;  %p5335_p3 = scmp.ne.s32.totalorder %s8360_s27, %s5334_s13  ;;  %p8672_p11 = scmp.ne.s32.totalorder %s8500_s22, 0 }
  0x53   : > { %v538_v19 = vmul.f32 %v5655_v17, %v5655_v17  ;;  %v537_v20 = vmul.f32 %v5658_v18, %v5658_v18  ;;  %v5670_v22 = vld [vmem:[%s5592_s24 + $0x50] sm:$0xff]  ;;  %v540_v23 = vmul.f32 %v5667_v21, %v5667_v21  ;;  %v5679_v25 = vld [vmem:[%s5592_s24 + $0x68] sm:$0xff]  ;;  %v5682_v26 = vld [vmem:[%s5592_s24 + $0x60] sm:$0xff]  ;;  %1124 = vst [vmem:[#allocation3] sm:$0x1] %v5411_v29  ;;  %s5412_s17 = smov [#allocation9]  }
  0x54   : > { %v539_v24 = vmul.f32 %v5670_v22, %v5670_v22  ;;  %v542_v27 = vmul.f32 %v5679_v25, %v5679_v25  ;;  %v541_v28 = vmul.f32 %v5682_v26, %v5682_v26  ;;  %1125 = vst [vmem:[#allocation3 + $0x18] sm:$0x1] %v5411_v29  ;;  %1126 = vst [vmem:[#allocation3 + $0x30] sm:$0x1] %v5411_v29  ;;  %v5691_v30 = vld [vmem:[%s5592_s24 + $0x78] sm:$0xff]  ;;  %v5694_v31 = vld [vmem:[%s5592_s24 + $0x70] sm:$0xff]  ;;  %p5336_p7 = pnand %p5335_p3, %p8672_p11 }
  0x55   : > { %1127 = vst [vmem:[#allocation3 + $0x48] sm:$0x1] %v5411_v29  ;;  %1128 = vst [vmem:[#allocation3 + $0x60] sm:$0x1] %v5411_v29  ;;  %v543_v32 = vmul.f32 %v5694_v31, %v5694_v31  ;;  %v544_v33 = vmul.f32 %v5691_v30, %v5691_v30  ;;  %v5703_v34 = vld [vmem:[%s5592_s24 + $0x88] sm:$0xff]  ;;  %v5708_v36 = vld [vmem:[%s5592_s24 + $0x80] sm:$0xff] }
  0x56   : > { %438 = vadd.xlane.f32.xlu1 %v5615_v3  ;;  %434 = vadd.xlane.f32.xlu0 %v5618_v4  ;;  %1129 = vst [vmem:[#allocation3 + $0x78] sm:$0x1] %v5411_v29  ;;  %1130 = vst [vmem:[#allocation3 + $0x90] sm:$0x1] %v5411_v29  ;;  %v546_v35 = vmul.f32 %v5703_v34, %v5703_v34  ;;  %v5711_v37 = vld [vmem:[%s5592_s24 + $0x98] sm:$0xff]  ;;  %v5717_v39 = vld [vmem:[%s5592_s24 + $0xa8] sm:$0xff]  ;;  %v545_v40 = vmul.f32 %v5708_v36, %v5708_v36  ;;  %p5337_p12 = pneg %p5336_p7 }
  0x57   : > { %1131 = vst [vmem:[#allocation3 + $0xa8] sm:$0x1] %v5411_v29  ;;  %1132 = vst [vmem:[#allocation3 + $0xc0] sm:$0x1] %v5411_v29  ;;  %v548_v38 = vmul.f32 %v5711_v37, %v5711_v37  ;;  %v550_v41 = vmul.f32 %v5717_v39, %v5717_v39  ;;  %v416_v42 = vld [vmem:[%s5592_s24 + $0x90] sm:$0xff]  ;;  %v5729_v44 = vld [vmem:[%s5592_s24 + $0xb8] sm:$0xff] }
  0x58   : > { %1133 = vst [vmem:[#allocation3 + $0xd8] sm:$0x1] %v5411_v29  ;;  %1134 = vst [vmem:[#allocation3 + $0xf0] sm:$0x1] %v5411_v29  ;;  %v5726_v43 = vld [vmem:[%s5592_s24 + $0xb0] sm:$0xff]  ;;  %v552_v45 = vmul.f32 %v5729_v44, %v5729_v44  ;;  %v5736_v46 = vld [vmem:[%s5592_s24 + $0xc0] sm:$0xff]  ;;  %v547_v62 = vmul.f32 %v416_v42, %v416_v42 }
  0x59   : > { %1135 = vst [vmem:[#allocation3 + $0x108] sm:$0x1] %v5411_v29  ;;  %1136 = vst [vmem:[#allocation3 + $0x120] sm:$0x1] %v5411_v29  ;;  %v5739_v47 = vld [vmem:[%s5592_s24 + $0xc8] sm:$0xff]  ;;  %v5745_v49 = vld [vmem:[%s5592_s24 + $0xd0] sm:$0xff] }
  0x5a   : > { %563 = vadd.xlane.f32.xlu1 %v530_v5  ;;  %561 = vadd.xlane.f32.xlu0 %v529_v6  ;;  %1137 = vst [vmem:[#allocation3 + $0x138] sm:$0x1] %v5411_v29  ;;  %1138 = vst [vmem:[#allocation3 + $0x150] sm:$0x1] %v5411_v29  ;;  %v554_v48 = vmul.f32 %v5739_v47, %v5739_v47  ;;  %v1349_v50 = vld [vmem:[%s8406_s1 + $0x8] sm:$0xff]  ;;  %v1350_v51 = vld [vmem:[%s8406_s1 + $0x10] sm:$0xff] }
  0x5b   : > { %1139 = vst [vmem:[#allocation3 + $0x168] sm:$0x1] %v5411_v29  ;;  %1141 = vst [vmem:[#allocation3 + $0x29] sm:$0x1] %v5411_v29  ;;  %v1352_v52 = vld [vmem:[%s8406_s1 + $0x20] sm:$0xff]  ;;  %v1351_v54 = vld [vmem:[%s8406_s1 + $0x18] sm:$0xff] }
  0x5c   : > { %1142 = vst [vmem:[#allocation3 + $0x41] sm:$0x1] %v5411_v29  ;;  %1143 = vst [vmem:[#allocation3 + $0x59] sm:$0x1] %v5411_v29  ;;  %v1348_v53 = vld [vmem:[%s8406_s1] sm:$0xff]  ;;  %v1353_v55 = vld [vmem:[%s8406_s1 + $0x28] sm:$0xff] }
  0x5d   : > { %1144 = vst [vmem:[#allocation3 + $0x71] sm:$0x1] %v5411_v29  ;;  %1145 = vst [vmem:[#allocation3 + $0x89] sm:$0x1] %v5411_v29  ;;  %v1354_v56 = vld [vmem:[%s8406_s1 + $0x30] sm:$0xff]  ;;  %v1356_v57 = vld [vmem:[%s8406_s1 + $0x40] sm:$0xff] }
  0x5e   : > { %567 = vadd.xlane.f32.xlu1 %v532_v7  ;;  %565 = vadd.xlane.f32.xlu0 %v531_v8  ;;  %1146 = vst [vmem:[#allocation3 + $0xa1] sm:$0x1] %v5411_v29  ;;  %1147 = vst [vmem:[#allocation3 + $0xb9] sm:$0x1] %v5411_v29  ;;  %v1358_v58 = vld [vmem:[%s8406_s1 + $0x50] sm:$0xff]  ;;  %v1360_v59 = vld [vmem:[%s8406_s1 + $0x60] sm:$0xff] }
  0x5f   : > { %1148 = vst [vmem:[#allocation3 + $0xd1] sm:$0x1] %v5411_v29  ;;  %1149 = vst [vmem:[#allocation3 + $0xe9] sm:$0x1] %v5411_v29  ;;  %v418_v8 = vld [vmem:[%s5592_s24 + $0xa0] sm:$0xff]  ;;  %s5338_s30 = sshll.u32 %s5412_s17, 4  ;;  %s5339_s30 = int_to_ptr.vmem [resolvable:$false] %s5338_s30 }
  0x60   : > { %1150 = vst [vmem:[#allocation3 + $0x101] sm:$0x1] %v5411_v29  ;;  %1151 = vst [vmem:[#allocation3 + $0x119] sm:$0x1] %v5411_v29  ;;  %s5340_s25 = scalar_lea.vmem %s5339_s30, 8192  ;;  %p5341_p10 = scmp.lt.s32.totalorder %s8360_s27, %s5339_s30 }
  0x61   : > { %1152 = vst [vmem:[#allocation3 + $0x131] sm:$0x1] %v5411_v29  ;;  %1153 = vst [vmem:[#allocation3 + $0x149] sm:$0x1] %v5411_v29  ;;  %p5342_p2 = scmp.lt.s32.totalorder %s5340_s25, %s5334_s13 }
  0x62   : > { %442 = vadd.xlane.f32.xlu1 %v5631_v9  ;;  %440 = vadd.xlane.f32.xlu0 %v5634_v10  ;;  %1154 = vst [vmem:[#allocation3 + $0x161] sm:$0x1] %v5411_v29  ;;  %1155 = vst [vmem:[#allocation3 + $0x179] sm:$0x1] %v5411_v29 }
  0x63   : > { %p5343_p13 = por %p5342_p2, %p5341_p10 }
  0x65   : > { %p5344_p0 = pnand %p5343_p13, %p5337_p12 }
  0x66   : > { %571 = vadd.xlane.f32.xlu1 %v534_v11  ;;  %569 = vadd.xlane.f32.xlu0 %v533_v12 }
  0x6a   : > { %446 = vadd.xlane.f32.xlu1 %v5643_v13  ;;  %444 = vadd.xlane.f32.xlu0 %v5646_v14 }
  0x6e   : > { %575 = vadd.xlane.f32.xlu1 %v536_v15  ;;  %573 = vadd.xlane.f32.xlu0 %v535_v16 }
  0x72   : > { %450 = vadd.xlane.f32.xlu1 %v5655_v17  ;;  %448 = vadd.xlane.f32.xlu0 %v5658_v18 }
  0x76   : > { %579 = vadd.xlane.f32.xlu1 %v538_v19  ;;  %577 = vadd.xlane.f32.xlu0 %v537_v20 }
  0x7a   : > { %454 = vadd.xlane.f32.xlu1 %v5667_v21  ;;  %452 = vadd.xlane.f32.xlu0 %v5670_v22 }
  0x7e   : > { %583 = vadd.xlane.f32.xlu1 %v540_v23  ;;  %581 = vadd.xlane.f32.xlu0 %v539_v24 }
  0x82   : > { %458 = vadd.xlane.f32.xlu1 %v5679_v25  ;;  %456 = vadd.xlane.f32.xlu0 %v5682_v26 }
  0x86   : > { %587 = vadd.xlane.f32.xlu1 %v542_v27  ;;  %585 = vadd.xlane.f32.xlu0 %v541_v28 }
  0x8a   : > { %462 = vadd.xlane.f32.xlu1 %v5691_v30  ;;  %460 = vadd.xlane.f32.xlu0 %v5694_v31 }
  0x8e   : > { %589 = vadd.xlane.f32.xlu1 %v543_v32  ;;  %591 = vadd.xlane.f32.xlu0 %v544_v33 }
  0x92   : > { %464 = vadd.xlane.f32.xlu1 %v5708_v36  ;;  %595 = vadd.xlane.f32.xlu0 %v546_v35 }
  0x96   : > { %466 = vadd.xlane.f32.xlu1 %v5703_v34  ;;  %599 = vadd.xlane.f32.xlu0 %v548_v38  ;;  %v549_v38 = vmul.f32 %v418_v8, %v418_v8 }
  0x9a   : > { %593 = vadd.xlane.f32.xlu1 %v545_v40  ;;  %603 = vadd.xlane.f32.xlu0 %v550_v41 }
  0x9e   : > { %468 = vadd.xlane.f32.xlu1 %v416_v42  ;;  %476 = vadd.xlane.f32.xlu0 %v5726_v43 }
  0xa2   : > { %470 = vadd.xlane.f32.xlu1 %v5711_v37  ;;  %607 = vadd.xlane.f32.xlu0 %v552_v45 }
  0xa6   : > { %480 = vadd.xlane.f32.xlu0 %v5736_v46 }
  0xaa   : > { %611 = vadd.xlane.f32.xlu0 %v554_v48 }
  0xae   : > { %484 = vadd.xlane.f32.xlu0 %v5745_v49 }
  0xb3   : > { %1387 = vperm.xlu1 %4764, %v1349_v50  }
  0xb7   : > { %1392 = vperm.xlu1 %4764, %v1350_v51  }
  0xbb   : > { %1402 = vperm.xlu1 %4764, %v1352_v52  }
  0xc4   : > { %1382 = vperm.xlu0 %4765, %v1348_v53  }
  0xc8   : > { %1397 = vperm.xlu0 %4765, %v1351_v54  }
  0xcc   : > { %1407 = vperm.xlu0 %4765, %v1353_v55  }
  0xd0   : > { %1412 = vperm.xlu0 %4765, %v1354_v56  }
  0xd4   : > { %1422 = vperm.xlu0 %4765, %v1356_v57  }
  0xd8   : > { %1432 = vperm.xlu0 %4765, %v1358_v58  }
  0xdb   : > { %v437_v60 = vpop.xlane.xlu1 %436  ;;  %v433_v61 = vpop.xlane.xlu0 %432 }
  0xdc   : > { %1442 = vperm.xlu0 %4765, %v1360_v59   ;;  %v5778_v6 = vmul.f32 0.0078125, %v433_v61  ;;  %v5783_v11 = vmul.f32 0.0078125, %v437_v60  ;;  %v551_v59 = vmul.f32 %v5726_v43, %v5726_v43 }
  0xde   : > { %v657_v19 = vmul.f32 %v5778_v6, %v5778_v6  ;;  %v659_v27 = vmul.f32 %v5783_v11, %v5783_v11 }
  0xdf   : > { %v439_v63 = vpop.xlane.xlu1 %438  ;;  %597 = vadd.xlane.f32.xlu1 %v547_v62  ;;  %v435_v5 = vpop.xlane.xlu0 %434 }
  0xe0   : > { %v5780_v7 = vmul.f32 0.0078125, %v435_v5  ;;  %v5785_v12 = vmul.f32 0.0078125, %v439_v63 }
  0xe2   : > { %v658_v20 = vmul.f32 %v5780_v7, %v5780_v7  ;;  %v660_v28 = vmul.f32 %v5785_v12, %v5785_v12 }
  0xe3   : > { %472 = vadd.xlane.f32.xlu1 %v418_v8  ;;  %v564_v15 = vpop.xlane.xlu1 %563  ;;  %v562_v16 = vpop.xlane.xlu0 %561 }
  0xe4   : > { %v626_v23 = vmul.f32 0.0078125, %v564_v15  ;;  %v625_v24 = vmul.f32 0.0078125, %v562_v16  ;;  %v425_v16 = vld [vmem:[%s5592_s24 + $0xd8] sm:$0xff] }
  0xe6   : > { %v690_v29 = vsub.f32 %v626_v23, %v658_v20  ;;  %v689_v32 = vsub.f32 %v625_v24, %v657_v19  ;;  %v553_v24 = vmul.f32 %v5736_v46, %v5736_v46 }
  0xe7   : > { %474 = vadd.xlane.f32.xlu1 %v5717_v39  ;;  %v568_v33 = vpop.xlane.xlu1 %567  ;;  %v566_v35 = vpop.xlane.xlu0 %565 }
  0xe8   : > { %v754_v40 = vadd.f32 1e-05, %v690_v29  ;;  %v753_v41 = vadd.f32 1e-05, %v689_v32  ;;  %v628_v42 = vmul.f32 0.0078125, %v568_v33  ;;  %v627_v45 = vmul.f32 0.0078125, %v566_v35 }
  0xe9   : > { %v722_v29 = vsub.f32 %v5618_v4, %v5780_v7  ;;  %v556_v35 = vmul.f32 %v425_v16, %v425_v16  ;;  %v723_v7 = vsub.f32 %v5607_v1, %v5783_v11 }
  0xea   : > { %4846 = vrsqrt.f32 %v754_v40  ;;  %v692_v48 = vsub.f32 %v628_v42, %v660_v28  ;;  %v691_v50 = vsub.f32 %v627_v45, %v659_v27  ;;  %v721_v28 = vsub.f32 %v5610_v2, %v5778_v6  ;;  %v5826_v2 = vld [vmem:[%s8407_s2] ss:$0 sm:$0xff] }
  0xeb   : > { %4848 = vrsqrt.f32 %v753_v41  ;;  %601 = vadd.xlane.f32.xlu1 %v549_v38  ;;  %v443_v51 = vpop.xlane.xlu1 %442  ;;  %v441_v52 = vpop.xlane.xlu0 %440 }
  0xec   : > { %v756_v53 = vadd.f32 1e-05, %v692_v48  ;;  %v755_v54 = vadd.f32 1e-05, %v691_v50  ;;  %v5796_v55 = vmul.f32 0.0078125, %v443_v51  ;;  %v5798_v56 = vmul.f32 0.0078125, %v441_v52 }
  0xed   : > { %v724_v48 = vsub.f32 %v5615_v3, %v5785_v12  ;;  %v426_v52 = vld [vmem:[%s5592_s24 + $0xe0] sm:$0xff] }
  0xee   : > { %4850 = vrsqrt.f32 %v756_v53  ;;  %v662_v39 = vmul.f32 %v5796_v55, %v5796_v55  ;;  %v661_v60 = vmul.f32 %v5798_v56, %v5798_v56  ;;  %v427_v53 = vld [vmem:[%s5592_s24 + $0xe8] sm:$0xff]  ;;  %v5843_v3 = vld [vmem:[%s8408_s3] ss:$0 sm:$0xff] }
  0xef   : > { %4852 = vrsqrt.f32 %v755_v54  ;;  %478 = vadd.xlane.f32.xlu1 %v5729_v44  ;;  %v572_v57 = vpop.xlane.xlu1 %571  ;;  %v570_v58 = vpop.xlane.xlu0 %569 }
  0xf0   : > { %v630_v61 = vmul.f32 0.0078125, %v572_v57  ;;  %v629_v62 = vmul.f32 0.0078125, %v570_v58 }
  0xf2   : > { %v694_v63 = vsub.f32 %v630_v61, %v662_v39  ;;  %v693_v5 = vsub.f32 %v629_v62, %v661_v60  ;;  %v555_v62 = vmul.f32 %v5745_v49, %v5745_v49 }
  0xf3   : > { %605 = vadd.xlane.f32.xlu1 %v551_v59  ;;  %v447_v8 = vpop.xlane.xlu1 %446  ;;  %v445_v15 = vpop.xlane.xlu0 %444 }
  0xf4   : > { %v758_v19 = vadd.f32 1e-05, %v694_v63  ;;  %v757_v20 = vadd.f32 1e-05, %v693_v5  ;;  %v5808_v23 = vmul.f32 0.0078125, %v447_v8  ;;  %v5810_v44 = vmul.f32 0.0078125, %v445_v15 }
  0xf5   : > { %v558_v15 = vmul.f32 %v427_v53, %v427_v53 }
  0xf6   : > { %4854 = vrsqrt.f32 %v758_v19  ;;  %v664_v43 = vmul.f32 %v5808_v23, %v5808_v23  ;;  %v663_v40 = vmul.f32 %v5810_v44, %v5810_v44 }
  0xf7   : > { %v4847_v27 = vpop.eup %4846  ;;  %4856 = vrsqrt.f32 %v757_v20  ;;  %482 = vadd.xlane.f32.xlu1 %v5739_v47  ;;  %v576_v32 = vpop.xlane.xlu1 %575 }
  0xf8   : > { %v574_v33 = vpop.xlane.xlu0 %573  ;;  %v4849_v38 = vpop.eup %4848  ;;  %v632_v46 = vmul.f32 0.0078125, %v576_v32  ;;  %v818_v45 = vmul.f32 %v4847_v27, %v722_v29  ;;  %v726_v29 = vsub.f32 %v5631_v9, %v5796_v55 }
  0xf9   : > { %v631_v41 = vmul.f32 0.0078125, %v574_v33  ;;  %v817_v42 = vmul.f32 %v4849_v38, %v721_v28 }
  0xfa   : > { %v696_v4 = vsub.f32 %v632_v46, %v664_v43  ;;  %v856_v11 = vmul.f32 %v5826_v2, %v818_v45 }
  0xfb   : > { %v695_v47 = vsub.f32 %v631_v41, %v663_v40  ;;  %v4851_v6 = vpop.eup %4850  ;;  %609 = vadd.xlane.f32.xlu1 %v553_v24  ;;  %v451_v50 = vpop.xlane.xlu1 %450  ;;  %615 = vadd.xlane.f32.xlu0 %v556_v35  ;;  %v855_v60 = vmul.f32 %v5826_v2, %v817_v42  ;;  %v725_v40 = vsub.f32 %v5634_v10, %v5798_v56 }
  0xfc   : > { %v449_v51 = vpop.xlane.xlu0 %448  ;;  %v4853_v54 = vpop.eup %4852  ;;  %v760_v39 = vadd.f32 1e-05, %v696_v4  ;;  %v5834_v58 = vmul.f32 0.0078125, %v451_v50  ;;  %v820_v1 = vmul.f32 %v4851_v6, %v724_v48  ;;  %v428_v6 = vld [vmem:[%s5592_s24 + $0xf0] sm:$0xff]  ;;  %v429_v50 = vld [vmem:[%s5592_s24 + $0xf8] sm:$0xff] }
  0xfd   : > { %v759_v57 = vadd.f32 1e-05, %v695_v47  ;;  %v5836_v59 = vmul.f32 0.0078125, %v449_v51  ;;  %v819_v61 = vmul.f32 %v4853_v54, %v723_v7  ;;  %v5854_v27 = vadd.f32 %v5843_v3, %v855_v60 }
  0xfe   : > { %4858 = vrsqrt.f32 %v760_v39  ;;  %v666_v12 = vmul.f32 %v5834_v58, %v5834_v58  ;;  %v858_v19 = vmul.f32 %v5826_v2, %v820_v1  ;;  %v560_v60 = vmul.f32 %v429_v50, %v429_v50 }
  0xff   : > { %v857_v63 = vmul.f32 %v5826_v2, %v819_v61  ;;  %4860 = vrsqrt.f32 %v759_v57  ;;  %486 = vadd.xlane.f32.xlu1 %v425_v16  ;;  %v580_v5 = vpop.xlane.xlu1 %579  ;;  %488 = vadd.xlane.f32.xlu0 %v426_v52  ;;  %v665_v20 = vmul.f32 %v5836_v59, %v5836_v59  ;;  %v5863_v16 = vadd.f32 %v5843_v3, %v856_v11 }
 0x100   : > { %v578_v8 = vpop.xlane.xlu0 %577  ;;  %v634_v43 = vmul.f32 0.0078125, %v580_v5  ;;  %v5860_v28 = vadd.f32 %v5843_v3, %v858_v19  ;;  %v557_v57 = vmul.f32 %v426_v52, %v426_v52  ;;  %v727_v19 = vsub.f32 %v5646_v14, %v5810_v44 }
 0x101   : > { %v633_v24 = vmul.f32 0.0078125, %v578_v8  ;;  %v5857_v49 = vadd.f32 %v5843_v3, %v857_v63  ;;  %v728_v63 = vsub.f32 %v5643_v13, %v5808_v23 }
 0x102   : > { %v698_v32 = vsub.f32 %v634_v43, %v666_v12  ;;  %v5875_v42 = vadd.f32 %v5860_v28, %v5863_v16 }
 0x103   : > { %v697_v33 = vsub.f32 %v633_v24, %v665_v20  ;;  %v4855_v35 = vpop.eup %4854  ;;  %v5869_v38 = vadd.f32 %v5857_v49, %v5854_v27  ;;  %613 = vadd.xlane.f32.xlu1 %v555_v62  ;;  %v455_v46 = vpop.xlane.xlu1 %454  ;;  %619 = vadd.xlane.f32.xlu0 %v558_v15 }
 0x104   : > { %v453_v41 = vpop.xlane.xlu0 %452  ;;  %v4857_v9 = vpop.eup %4856  ;;  %v822_v55 = vmul.f32 %v4855_v35, %v726_v29  ;;  %v762_v45 = vadd.f32 1e-05, %v698_v32  ;;  %v5877_v47 = vmul.f32 0.0078125, %v455_v46  ;;  %1157 = vst [vmem:[#allocation3 + $0x9] sm:$0xff] %v5875_v42 }
 0x105   : > { %v761_v4 = vadd.f32 1e-05, %v697_v33  ;;  %1156 = vst [vmem:[#allocation3 + $0x1] sm:$0xff] %v5869_v38  ;;  %v821_v7 = vmul.f32 %v4857_v9, %v725_v40  ;;  %v5881_v10 = vmul.f32 0.0078125, %v453_v41  ;;  %v559_v9 = vmul.f32 %v428_v6, %v428_v6 }
 0x106   : > { %v860_v56 = vmul.f32 %v5826_v2, %v822_v55  ;;  %4862 = vrsqrt.f32 %v762_v45  ;;  %v668_v48 = vmul.f32 %v5877_v47, %v5877_v47 }
 0x107   : > { %v859_v51 = vmul.f32 %v5826_v2, %v821_v7  ;;  %4864 = vrsqrt.f32 %v761_v4  ;;  %490 = vadd.xlane.f32.xlu1 %v427_v53  ;;  %v584_v54 = vpop.xlane.xlu1 %583  ;;  %492 = vadd.xlane.f32.xlu0 %v428_v6  ;;  %v667_v61 = vmul.f32 %v5881_v10, %v5881_v10  ;;  %v730_v6 = vsub.f32 %v5655_v17, %v5834_v58 }
 0x108   : > { %v582_v39 = vpop.xlane.xlu0 %581  ;;  %v636_v1 = vmul.f32 0.0078125, %v584_v54  ;;  %v5892_v12 = vadd.f32 %v5843_v3, %v860_v56 }
 0x109   : > { %v635_v11 = vmul.f32 0.0078125, %v582_v39  ;;  %v5895_v62 = vadd.f32 %v5843_v3, %v859_v51 }
 0x10a   : > { %v700_v53 = vsub.f32 %v636_v1, %v668_v48  ;;  %v5901_v52 = vadd.f32 %v5875_v42, %v5892_v12  ;;  %v1032_v55 = vadd.f32 %v5892_v12, %v5860_v28 }
 0x10b   : > { %v699_v5 = vsub.f32 %v635_v11, %v667_v61  ;;  %v4859_v8 = vpop.eup %4858  ;;  %v5905_v15 = vadd.f32 %v5869_v38, %v5895_v62  ;;  %617 = vadd.xlane.f32.xlu1 %v557_v57  ;;  %v459_v20 = vpop.xlane.xlu1 %458  ;;  %623 = vadd.xlane.f32.xlu0 %v560_v60  ;;  %v1031_v48 = vadd.f32 %v5895_v62, %v5857_v49 }
 0x10c   : > { %v457_v43 = vpop.xlane.xlu0 %456  ;;  %v4861_v24 = vpop.eup %4860  ;;  %v824_v13 = vmul.f32 %v4859_v8, %v728_v63  ;;  %v764_v23 = vadd.f32 1e-05, %v700_v53  ;;  %v5909_v32 = vmul.f32 0.0078125, %v459_v20  ;;  %1159 = vst [vmem:[#allocation3 + $0x21] sm:$0xff] %v5901_v52  ;;  %v729_v61 = vsub.f32 %v5658_v18, %v5836_v59 }
 0x10d   : > { %v763_v29 = vadd.f32 1e-05, %v699_v5  ;;  %1158 = vst [vmem:[#allocation3 + $0x19] sm:$0xff] %v5905_v15  ;;  %v823_v33 = vmul.f32 %v4861_v24, %v727_v19  ;;  %v5913_v35 = vmul.f32 0.0078125, %v457_v43 }
 0x10e   : > { %v862_v40 = vmul.f32 %v5826_v2, %v824_v13  ;;  %4866 = vrsqrt.f32 %v764_v23  ;;  %v670_v14 = vmul.f32 %v5909_v32, %v5909_v32 }
 0x10f   : > { %v861_v44 = vmul.f32 %v5826_v2, %v823_v33  ;;  %4868 = vrsqrt.f32 %v763_v29  ;;  %494 = vadd.xlane.f32.xlu1 %v429_v50  ;;  %v588_v46 = vpop.xlane.xlu1 %587  ;;  %v669_v4 = vmul.f32 %v5913_v35, %v5913_v35 }
 0x110   : > { %v586_v41 = vpop.xlane.xlu0 %585  ;;  %v5922_v45 = vadd.f32 %v5843_v3, %v862_v40  ;;  %v638_v7 = vmul.f32 0.0078125, %v588_v46  ;;  %v732_v46 = vsub.f32 %v5667_v21, %v5877_v47 }
 0x111   : > { %v637_v56 = vmul.f32 0.0078125, %v586_v41  ;;  %v5929_v51 = vadd.f32 %v5843_v3, %v861_v44 }
 0x112   : > { %v702_v50 = vsub.f32 %v638_v7, %v670_v14  ;;  %v5934_v39 = vadd.f32 %v1032_v55, %v5922_v45  ;;  %v1034_v13 = vadd.f32 %v5922_v45, %v5892_v12 }
 0x113   : > { %v701_v54 = vsub.f32 %v637_v56, %v669_v4  ;;  %v4863_v57 = vpop.eup %4862  ;;  %v5937_v60 = vadd.f32 %v1031_v48, %v5929_v51  ;;  %621 = vadd.xlane.f32.xlu1 %v559_v9  ;;  %v463_v1 = vpop.xlane.xlu1 %462  ;;  %v1033_v14 = vadd.f32 %v5929_v51, %v5895_v62  ;;  %v731_v56 = vsub.f32 %v5670_v22, %v5881_v10 }
 0x114   : > { %v461_v11 = vpop.xlane.xlu0 %460  ;;  %v4865_v63 = vpop.eup %4864  ;;  %v826_v53 = vmul.f32 %v4863_v57, %v730_v6  ;;  %v766_v5 = vadd.f32 1e-05, %v702_v50  ;;  %v5941_v17 = vmul.f32 0.0078125, %v463_v1  ;;  %1161 = vst [vmem:[#allocation3 + $0x39] sm:$0xff] %v5934_v39 }
 0x115   : > { %v765_v8 = vadd.f32 1e-05, %v701_v54  ;;  %1160 = vst [vmem:[#allocation3 + $0x31] sm:$0xff] %v5937_v60  ;;  %v825_v58 = vmul.f32 %v4865_v63, %v729_v61  ;;  %v5945_v19 = vmul.f32 0.0078125, %v461_v11 }
 0x116   : > { %v864_v20 = vmul.f32 %v5826_v2, %v826_v53  ;;  %4870 = vrsqrt.f32 %v766_v5  ;;  %v672_v18 = vmul.f32 %v5941_v17, %v5941_v17 }
 0x117   : > { %v863_v59 = vmul.f32 %v5826_v2, %v825_v58  ;;  %4872 = vrsqrt.f32 %v765_v8  ;;  %v590_v43 = vpop.xlane.xlu1 %589  ;;  %v671_v29 = vmul.f32 %v5945_v19, %v5945_v19 }
 0x118   : > { %v592_v24 = vpop.xlane.xlu0 %591  ;;  %v5954_v23 = vadd.f32 %v5843_v3, %v864_v20  ;;  %v639_v33 = vmul.f32 0.0078125, %v590_v43  ;;  %v734_v20 = vsub.f32 %v5679_v25, %v5909_v32 }
 0x119   : > { %v640_v40 = vmul.f32 0.0078125, %v592_v24  ;;  %v5961_v44 = vadd.f32 %v5843_v3, %v863_v59 }
 0x11a   : > { %v703_v41 = vsub.f32 %v639_v33, %v671_v29  ;;  %v1099_v55 = vadd.f32 %v1034_v13, %v5954_v23  ;;  %v1036_v10 = vadd.f32 %v5954_v23, %v5922_v45  ;;  %v733_v33 = vsub.f32 %v5682_v26, %v5913_v35 }
 0x11b   : > { %v704_v9 = vsub.f32 %v640_v40, %v672_v18  ;;  %v4867_v4 = vpop.eup %4866  ;;  %v5967_v7 = vadd.f32 %v1033_v14, %v5961_v44  ;;  %v465_v48 = vpop.xlane.xlu1 %464  ;;  %v1035_v8 = vadd.f32 %v5961_v44, %v5929_v51 }
 0x11c   : > { %v596_v6 = vpop.xlane.xlu0 %595  ;;  %v4869_v50 = vpop.eup %4868  ;;  %v828_v54 = vmul.f32 %v4867_v4, %v732_v46  ;;  %v767_v57 = vadd.f32 1e-05, %v703_v41  ;;  %1163 = vst [vmem:[#allocation3 + $0x51] sm:$0xff] %v1099_v55  ;;  %v5973_v1 = vmul.f32 0.0078125, %v465_v48  ;;  %v1189_v48 = vld [vmem:[#allocation3 + $0x8] sm:$0xff] }
 0x11d   : > { %v768_v61 = vadd.f32 1e-05, %v704_v9  ;;  %1162 = vst [vmem:[#allocation3 + $0x49] sm:$0xff] %v5967_v7  ;;  %v827_v21 = vmul.f32 %v4869_v50, %v731_v56  ;;  %v642_v43 = vmul.f32 0.0078125, %v596_v6 }
 0x11e   : > { %v866_v47 = vmul.f32 %v5826_v2, %v828_v54  ;;  %4874 = vrsqrt.f32 %v767_v57  ;;  %v673_v59 = vmul.f32 %v5973_v1, %v5973_v1 }
 0x11f   : > { %v865_v11 = vmul.f32 %v5826_v2, %v827_v21  ;;  %4876 = vrsqrt.f32 %v768_v61  ;;  %v467_v63 = vpop.xlane.xlu1 %466 }
 0x120   : > { %v600_v22 = vpop.xlane.xlu0 %599  ;;  %v5979_v53 = vadd.f32 %v5843_v3, %v866_v47  ;;  %v5981_v5 = vmul.f32 0.0078125, %v467_v63  ;;  %v1253_v47 = vadd.f32 %v1189_v48, %v5875_v42  ;;  %v735_v63 = vsub.f32 %v5694_v31, %v5945_v19 }
 0x121   : > { %v5986_v58 = vadd.f32 %v5843_v3, %v865_v11 }
 0x122   : > { %v1101_v18 = vadd.f32 %v1036_v10, %v5979_v53  ;;  %v674_v24 = vmul.f32 %v5981_v5, %v5981_v5  ;;  %v1038_v35 = vadd.f32 %v5979_v53, %v5954_v23 }
 0x123   : > { %v4871_v13 = vpop.eup %4870  ;;  %v5996_v29 = vadd.f32 %v1035_v8, %v5986_v58  ;;  %v594_v40 = vpop.xlane.xlu1 %593  ;;  %v1037_v61 = vadd.f32 %v5986_v58, %v5961_v44 }
 0x124   : > { %v6000_v14 = vpop.xlane.xlu0 %603  ;;  %v4873_v25 = vpop.eup %4872  ;;  %1165 = vst [vmem:[#allocation3 + $0x69] sm:$0xff] %v1101_v18  ;;  %v830_v32 = vmul.f32 %v4871_v13, %v734_v20  ;;  %v706_v46 = vsub.f32 %v642_v43, %v674_v24  ;;  %v641_v41 = vmul.f32 0.0078125, %v594_v40  ;;  %v736_v20 = vsub.f32 %v5691_v30, %v5941_v17  ;;  %v1190_v43 = vld [vmem:[#allocation3 + $0x18] sm:$0xff] }
 0x125   : > { %1164 = vst [vmem:[#allocation3 + $0x61] sm:$0xff] %v5996_v29  ;;  %v829_v9 = vmul.f32 %v4873_v25, %v733_v33  ;;  %v1285_v33 = vld [vmem:[#allocation3 + $0xa] sm:$0xff]  ;;  %v644_v25 = vmul.f32 0.0078125, %v600_v22  ;;  %v1254_v17 = vadd.f32 %v1190_v43, %v5905_v15  ;;  %v1286_v15 = vld [vmem:[#allocation3 + $0x1a] sm:$0xff] }
 0x126   : > { %v868_v55 = vmul.f32 %v5826_v2, %v830_v32  ;;  %v770_v4 = vadd.f32 1e-05, %v706_v46  ;;  %v705_v56 = vsub.f32 %v641_v41, %v673_v59  ;;  %v1317_v19 = vadd.f32 %v1285_v33, %v1253_v47 }
 0x127   : > { %v867_v6 = vmul.f32 %v5826_v2, %v829_v9  ;;  %v6005_v50 = vpop.xlane.xlu1 %468  ;;  %v1318_v47 = vadd.f32 %v1286_v15, %v1254_v17  ;;  %v1192_v15 = vld [vmem:[#allocation3 + $0x30] sm:$0xff] }
 0x128   : > { %v6007_v26 = vpop.xlane.xlu0 %476  ;;  %v6012_v54 = vadd.f32 %v5843_v3, %v868_v55  ;;  %4878 = vrsqrt.f32 %v770_v4  ;;  %v769_v57 = vadd.f32 1e-05, %v705_v56 }
 0x129   : > { %v6017_v21 = vadd.f32 %v5843_v3, %v867_v6 }
 0x12a   : > { %v1103_v11 = vadd.f32 %v1038_v35, %v6012_v54  ;;  %4880 = vrsqrt.f32 %v769_v57  ;;  %v1040_v22 = vadd.f32 %v6012_v54, %v5979_v53  ;;  %v5230_v57 = vld [vmem:[%s5592_s24 + $0x8] sm:$0xff] }
 0x12b   : > { %v4875_v10 = vpop.eup %4874  ;;  %v6024_v8 = vadd.f32 %v1037_v61, %v6017_v21  ;;  %v471_v18 = vpop.xlane.xlu1 %470  ;;  %v1039_v9 = vadd.f32 %v6017_v21, %v5986_v58 }
 0x12c   : > { %v6028_v59 = vpop.xlane.xlu0 %607  ;;  %v4877_v24 = vpop.eup %4876  ;;  %1167 = vst [vmem:[#allocation3 + $0x81] sm:$0xff] %v1103_v11  ;;  %v831_v42 = vmul.f32 %v4875_v10, %v735_v63  ;;  %v6030_v13 = vmul.f32 0.0078125, %v471_v18  ;;  %v738_v10 = vsub.f32 %v5703_v34, %v5981_v5  ;;  %v5231_v5 = vld [vmem:[%s5592_s24 + $0x10] sm:$0xff] }
 0x12d   : > { %1166 = vst [vmem:[#allocation3 + $0x79] sm:$0xff] %v6024_v8  ;;  %v832_v31 = vmul.f32 %v4877_v24, %v736_v20 }
 0x12e   : > { %v869_v40 = vmul.f32 %v5826_v2, %v831_v42  ;;  %v676_v30 = vmul.f32 %v6030_v13, %v6030_v13  ;;  %v737_v42 = vsub.f32 %v5708_v36, %v5973_v1 }
 0x12f   : > { %v870_v32 = vmul.f32 %v5826_v2, %v832_v31  ;;  %v1388_v46 = vpop.permute.xlu1 %1387 }
 0x130   : > { %v6038_v41 = vpop.xlane.xlu0 %480  ;;  %v6043_v55 = vadd.f32 %v5843_v3, %v869_v40  ;;  %v708_v4 = vsub.f32 %v644_v25, %v676_v30  ;;  %v1541_v56 = vmul.f32 %v1388_v46, %v1317_v19  ;;  %v1188_v19 = vld [vmem:[#allocation3] sm:$0xff] }
 0x131   : > { %v6048_v48 = vadd.f32 %v5843_v3, %v870_v32  ;;  %v1252_v1 = vadd.f32 %v1188_v19, %v5869_v38  ;;  %v1191_v46 = vld [vmem:[#allocation3 + $0x20] sm:$0xff] }
 0x132   : > { %v6051_v6 = vadd.f32 %v1039_v9, %v6043_v55  ;;  %v772_v35 = vadd.f32 1e-05, %v708_v4  ;;  %v1573_v61 = vadd.f32 %v5230_v57, %v1541_v56  ;;  %v1041_v9 = vadd.f32 %v6043_v55, %v6017_v21 }
 0x133   : > { %v1105_v11 = vadd.f32 %v1040_v22, %v6048_v48  ;;  %v1393_v63 = vpop.permute.xlu1 %1392  ;;  %v1042_v17 = vadd.f32 %v6048_v48, %v6012_v54 }
 0x134   : > { %1168 = vst [vmem:[#allocation3 + $0x91] sm:$0xff] %v6051_v6  ;;  %4882 = vrsqrt.f32 %v772_v35  ;;  %v6059_v20 = vsub.f32 %v1573_v61, %v5863_v16  ;;  %v1542_v18 = vmul.f32 %v1393_v63, %v1318_v47  ;;  %v6061_v24 = vpop.xlane.xlu0 %611  ;;  %v1284_v35 = vld [vmem:[#allocation3 + $0x2] sm:$0xff]  ;;  %v1255_v61 = vadd.f32 %v1191_v46, %v5901_v52  ;;  %v1193_v47 = vld [vmem:[#allocation3 + $0x38] sm:$0xff] }
 0x135   : > { %v4879_v43 = vpop.eup %4878  ;;  %1169 = vst [vmem:[#allocation3 + $0x99] sm:$0xff] %v1105_v11  ;;  %v1316_v57 = vadd.f32 %v1284_v35, %v1252_v1  ;;  %v740_v63 = vsub.f32 %v5711_v37, %v6030_v13  ;;  %v1289_v13 = vld [vmem:[#allocation3 + $0x3a] sm:$0xff] }
 0x136   : > { %8506 = vst [vmem:[#allocation16_spill] sm:$0xff] %v6059_v20  ;;  %v834_v33 = vmul.f32 %v4879_v43, %v738_v10  ;;  %1640 = vadd.xlane.f32.xlu1 %v6059_v20  ;;  %v1574_v25 = vadd.f32 %v5231_v5, %v1542_v18  ;;  %v1735_v16 = vmul.f32 %v6059_v20, %v6059_v20  ;;  %v1287_v43 = vld [vmem:[#allocation3 + $0x22] sm:$0xff]  ;;  %v1288_v5 = vld [vmem:[#allocation3 + $0x32] sm:$0xff] }
 0x137   : > { %v4881_v31 = vpop.eup %4880  ;;  %v1403_v52 = vpop.permute.xlu1 %1402 }
 0x138   : > { %v872_v40 = vmul.f32 %v5826_v2, %v834_v33  ;;  %v833_v34 = vmul.f32 %v4881_v31, %v737_v42  ;;  %v6077_v32 = vpop.xlane.xlu0 %484  ;;  %v6086_v22 = vsub.f32 %v1574_v25, %v5857_v49  ;;  %v1256_v49 = vadd.f32 %v1192_v15, %v5937_v60  ;;  %v5232_v31 = vld [vmem:[%s5592_s24] sm:$0xff] }
 0x139   : > { %v1257_v42 = vadd.f32 %v1193_v47, %v5934_v39  ;;  %v1290_v47 = vld [vmem:[#allocation3 + $0x4a] sm:$0xff] }
 0x13a   : > { %v6071_v30 = vadd.f32 %v5843_v3, %v872_v40  ;;  %v871_v36 = vmul.f32 %v5826_v2, %v833_v34  ;;  %1768 = vadd.xlane.f32.xlu1 %v1735_v16  ;;  %8507 = vst [vmem:[#allocation17_spill] sm:$0xff] %v6086_v22  ;;  %v1319_v40 = vadd.f32 %v1287_v43, %v1255_v61  ;;  %v1194_v34 = vld [vmem:[#allocation3 + $0x48] sm:$0xff] }
 0x13b   : > { %v1258_v39 = vadd.f32 %v1194_v34, %v5967_v7 }
 0x13c   : > { %v1107_v4 = vadd.f32 %v1042_v17, %v6071_v30  ;;  %v6083_v56 = vadd.f32 %v5843_v3, %v871_v36  ;;  %v1320_v17 = vadd.f32 %v1288_v5, %v1256_v49  ;;  %v1321_v36 = vadd.f32 %v1289_v13, %v1257_v42 }
 0x13d   : > { %v1044_v1 = vadd.f32 %v6071_v30, %v6048_v48  ;;  %v1322_v43 = vadd.f32 %v1290_v47, %v1258_v39 }
 0x13e   : > { %1171 = vst [vmem:[#allocation3 + $0xb1] sm:$0xff] %v1107_v4  ;;  %v1106_v38 = vadd.f32 %v1041_v9, %v6083_v56  ;;  %1642 = vadd.xlane.f32.xlu1 %v6086_v22  ;;  %v1544_v9 = vmul.f32 %v1403_v52, %v1320_v17  ;;  %v5233_v4 = vld [vmem:[%s5592_s24 + $0x18] sm:$0xff]  ;;  %v5236_v52 = vld [vmem:[%s5592_s24 + $0x30] sm:$0xff] }
 0x13f   : > { %v1383_v11 = vpop.permute.xlu0 %1382  ;;  %v1200_v17 = vld [vmem:[#allocation3 + $0x90] sm:$0xff] }
 0x140   : > { %1170 = vst [vmem:[#allocation3 + $0xa9] sm:$0xff] %v1106_v38  ;;  %v1540_v10 = vmul.f32 %v1383_v11, %v1316_v57 }
 0x141   : > { %v4883_v18 = vpop.eup %4882 }
 0x142   : > { %v836_v33 = vmul.f32 %v4883_v18, %v740_v63  ;;  %v1572_v19 = vadd.f32 %v5232_v31, %v1540_v10  ;;  %v5234_v63 = vld [vmem:[%s5592_s24 + $0x20] sm:$0xff]  ;;  %v5235_v10 = vld [vmem:[%s5592_s24 + $0x28] sm:$0xff] }
 0x143   : > { %v1398_v25 = vpop.permute.xlu0 %1397  ;;  %v1576_v49 = vadd.f32 %v5234_v63, %v1544_v9  ;;  %v1264_v9 = vadd.f32 %v1200_v17, %v6051_v6  ;;  %v4789_v17 = vld [vmem:[%s8411_s6 + $0x88] ss:$16 sps:$4 sm:$0xff]  }
 0x144   : > { %v874_v16 = vmul.f32 %v5826_v2, %v836_v33  ;;  %v6098_v37 = vsub.f32 %v1572_v19, %v5854_v27  ;;  %v1543_v60 = vmul.f32 %v1398_v25, %v1319_v40  ;;  %v1196_v27 = vld [vmem:[#allocation3 + $0x60] sm:$0xff]  ;;  %v1198_v33 = vld [vmem:[#allocation3 + $0x78] sm:$0xff] }
 0x145   : > { %v1260_v11 = vadd.f32 %v1196_v27, %v5996_v29  ;;  %v1292_v19 = vld [vmem:[#allocation3 + $0x62] sm:$0xff]  ;;  %v6120_v29 = vsub.f32 %v1576_v49, %v5895_v62  ;;  %v1262_v25 = vadd.f32 %v1198_v33, %v6024_v8  ;;  %v1736_v62 = vmul.f32 %v6086_v22, %v6086_v22 }
 0x146   : > { %8508 = vst [vmem:[#allocation18_spill] sm:$0xff] %v6098_v37  ;;  %v6104_v46 = vadd.f32 %v5843_v3, %v874_v16  ;;  %v1575_v15 = vadd.f32 %v5233_v4, %v1543_v60  ;;  %1638 = vadd.xlane.f32.xlu0 %v6098_v37  ;;  %v1734_v61 = vmul.f32 %v6098_v37, %v6098_v37  ;;  %v4768_v4 = vld [vmem:[%s8411_s6 + $0xec] ss:$16 sps:$4 sm:$0xff]   ;;  %v4772_v49 = vld [vmem:[%s8411_s6 + $0xc4] ss:$16 sps:$4 sm:$0xff]  }
 0x147   : > { %v1408_v35 = vpop.permute.xlu0 %1407  ;;  %v1324_v40 = vadd.f32 %v1292_v19, %v1260_v11  ;;  %8510 = vst [vmem:[#allocation20_spill] sm:$0xff] %v6120_v29  ;;  %2553 = vmatprep.subr.bf16.mxu1 %v4768_v4  ;;  %v5239_v33 = vld [vmem:[%s5592_s24 + $0x60] sm:$0xff]  ;;  %v4780_v19 = vld [vmem:[%s8411_s6 + $0xac] ss:$16 sps:$4 sm:$0xff]  }
 0x148   : > { %v1109_v38 = vadd.f32 %v1044_v1, %v6104_v46  ;;  %v6110_v57 = vsub.f32 %v1575_v15, %v5860_v28  ;;  %v1545_v7 = vmul.f32 %v1408_v35, %v1321_v36  ;;  %v1294_v36 = vld [vmem:[#allocation3 + $0x7a] sm:$0xff] }
 0x149   : > { %v1326_v1 = vadd.f32 %v1294_v36, %v1262_v25  ;;  %v4770_v15 = vld [vmem:[%s8411_s6 + $0xe0] ss:$16 sps:$4 sm:$0xff]   ;;  %v4771_v35 = vld [vmem:[%s8411_s6 + $0xe8] ss:$16 sps:$4 sm:$0xff]   ;;  %v4784_v25 = vld [vmem:[%s8411_s6 + $0x84] ss:$16 sps:$4 sm:$0xff]  }
 0x14a   : > { %8509 = vst [vmem:[#allocation19_spill] sm:$0xff] %v6110_v57  ;;  %1173 = vst [vmem:[#allocation3 + $0xc9] sm:$0xff] %v1109_v38  ;;  %v1577_v18 = vadd.f32 %v5235_v10, %v1545_v7  ;;  %1766 = vadd.xlane.f32.xlu0 %v1734_v61  ;;  %v1737_v42 = vmul.f32 %v6110_v57, %v6110_v57  ;;  %v1296_v7 = vld [vmem:[#allocation3 + $0x92] sm:$0xff]  ;;  %2554 = vmatpush1.bf16.msra.mxu1 %v4771_v35  ;;  %v4792_v36 = vld [vmem:[%s8411_s6 + $0x6c] ss:$16 sps:$4 sm:$0xff]  }
 0x14b   : > { %v1413_v28 = vpop.permute.xlu0 %1412  ;;  %v5238_v61 = vld [vmem:[%s5592_s24 + $0x50] sm:$0xff]  ;;  %v1328_v11 = vadd.f32 %v1296_v7, %v1264_v9 }
 0x14c   : > { %v1546_v31 = vmul.f32 %v1413_v28, %v1322_v43  ;;  %1772 = vadd.xlane.f32.xlu1 %v1737_v42  ;;  %v6123_v34 = vsub.f32 %v1577_v18, %v5892_v12  ;;  %v5237_v12 = vld [vmem:[%s5592_s24 + $0x40] sm:$0xff]  ;;  %v1738_v43 = vmul.f32 %v6120_v29, %v6120_v29  ;;  %v4777_v28 = vld [vmem:[%s8411_s6 + $0xc8] ss:$16 sps:$4 sm:$0xff]  }
 0x14d   : > { %v4776_v42 = vld [vmem:[%s8411_s6 + $0xc0] ss:$16 sps:$4 sm:$0xff]   ;;  %v4796_v9 = vld [vmem:[%s8411_s6 + $0x44] ss:$16 sps:$4 sm:$0xff]  }
 0x14e   : > { %8511 = vst [vmem:[#allocation21_spill] sm:$0xff] %v6123_v34  ;;  %v1578_v5 = vadd.f32 %v5236_v52, %v1546_v31  ;;  %1644 = vadd.xlane.f32.xlu0 %v6110_v57  ;;  %v1739_v8 = vmul.f32 %v6123_v34, %v6123_v34  ;;  %v4782_v52 = vld [vmem:[%s8411_s6 + $0xa0] ss:$16 sps:$4 sm:$0xff]  }
 0x14f   : > { %v1423_v16 = vpop.permute.xlu0 %1422 }
 0x150   : > { %v6129_v60 = vsub.f32 %v1578_v5, %v5929_v51  ;;  %v1548_v13 = vmul.f32 %v1423_v16, %v1324_v40  ;;  %1646 = vadd.xlane.f32.xlu1 %v6120_v29  ;;  %v4766_v51 = vld [vmem:[%s8411_s6 + $0xe4] ss:$16 sps:$4 sm:$0xff]   ;;  %v4783_v5 = vld [vmem:[%s8411_s6 + $0xa8] ss:$16 sps:$4 sm:$0xff]   ;;  %v4788_v16 = vld [vmem:[%s8411_s6 + $0x80] ss:$16 sps:$4 sm:$0xff]  }
 0x151   : > { %2360 = vmatprep.subr.bf16.mxu0 %v4766_v51  ;;  %v4798_v51 = vld [vmem:[%s8411_s6 + $0x4c] ss:$16 sps:$4 sm:$0xff]  }
 0x152   : > { %8512 = vst [vmem:[#allocation22_spill] sm:$0xff] %v6129_v60  ;;  %v1580_v39 = vadd.f32 %v5237_v12, %v1548_v13  ;;  %1770 = vadd.xlane.f32.xlu0 %v1736_v62  ;;  %2361 = vmatpush1.bf16.msra.mxu0 %v4770_v15  ;;  %v1355_v13 = vld [vmem:[%s8406_s1 + $0x38] sm:$0xff]  ;;  %v4790_v62 = vld [vmem:[%s8411_s6 + $0x64] ss:$16 sps:$4 sm:$0xff]   ;;  %v4794_v12 = vld [vmem:[%s8411_s6 + $0x60] ss:$16 sps:$4 sm:$0xff]  }
 0x153   : > { %v1433_v27 = vpop.permute.xlu0 %1432  ;;  %2362 = vmatprep.subr.bf16.mxu0 %v4772_v49  ;;  %v4801_v15 = vld [vmem:[%s8411_s6 + $0x48] ss:$16 sps:$4 sm:$0xff]  }
 0x154   : > { %v6151_v38 = vsub.f32 %v1580_v39, %v5961_v44  ;;  %v1550_v6 = vmul.f32 %v1433_v27, %v1326_v1  ;;  %1776 = vadd.xlane.f32.xlu1 %v1739_v8  ;;  %v4774_v44 = vld [vmem:[%s8411_s6 + $0xcc] ss:$16 sps:$4 sm:$0xff]   ;;  %v4795_v39 = vld [vmem:[%s8411_s6 + $0x68] ss:$16 sps:$4 sm:$0xff]   ;;  %v6216_v1 = vmul.f32 0.0078125, %v6005_v50 }
 0x155   : > { %2555 = vmatprep.subr.bf16.mxu1 %v4774_v44  ;;  %v1357_v8 = vld [vmem:[%s8406_s1 + $0x48] sm:$0xff]  ;;  %v4800_v50 = vld [vmem:[%s8411_s6 + $0x40] ss:$16 sps:$4 sm:$0xff]  }
 0x156   : > { %8513 = vst [vmem:[#allocation23_spill] sm:$0xff] %v6151_v38  ;;  %v1582_v47 = vadd.f32 %v5238_v61, %v1550_v6  ;;  %1648 = vadd.xlane.f32.xlu0 %v6123_v34  ;;  %2363 = vmatpush1.bf16.msra.mxu0 %v4776_v42  ;;  %v675_v27 = vmul.f32 %v6216_v1, %v6216_v1  ;;  %v1359_v6 = vld [vmem:[%s8406_s1 + $0x58] sm:$0xff]  ;;  %v4802_v61 = vld [vmem:[%s8411_s6 + $0x24] ss:$16 sps:$4 sm:$0xff]  }
 0x157   : > { %v1443_v63 = vpop.permute.xlu0 %1442  ;;  %2556 = vmatpush1.bf16.msra.mxu1 %v4777_v28  ;;  %v4807_v49 = vld [vmem:[%s8411_s6 + $0x28] ss:$16 sps:$4 sm:$0xff]   ;;  %v4808_v42 = vld [vmem:[%s8411_s6 + $0x4] ss:$16 sps:$4 sm:$0xff]   ;;  %v4810_v28 = vld [vmem:[%s8411_s6 + $0xc] ss:$16 sps:$4 sm:$0xff]  }
 0x158   : > { %v6162_v10 = vsub.f32 %v1582_v47, %v5986_v58  ;;  %v1552_v18 = vmul.f32 %v1443_v63, %v1328_v11  ;;  %v4778_v58 = vld [vmem:[%s8411_s6 + $0xa4] ss:$16 sps:$4 sm:$0xff]   ;;  %2557 = vmatprep.subr.bf16.mxu1 %v4780_v19  ;;  %v4804_v47 = vld [vmem:[%s8411_s6 + $0x2c] ss:$16 sps:$4 sm:$0xff]   ;;  %v4806_v63 = vld [vmem:[%s8411_s6 + $0x20] ss:$16 sps:$4 sm:$0xff]  }
 0x159   : > { %2364 = vmatprep.subr.bf16.mxu0 %v4778_v58  ;;  %v4813_v58 = vld [vmem:[%s8411_s6 + $0x8] ss:$16 sps:$4 sm:$0xff]  }
 0x15a   : > { %8514 = vst [vmem:[#allocation24_spill] sm:$0xff] %v6162_v10  ;;  %v1584_v31 = vadd.f32 %v5239_v33, %v1552_v18  ;;  %1774 = vadd.xlane.f32.xlu0 %v1738_v43  ;;  %2365 = vmatpush1.bf16.msra.mxu0 %v4782_v52  ;;  %v1361_v18 = vld [vmem:[%s8406_s1 + $0x68] sm:$0xff]  ;;  %v1363_v52 = vld [vmem:[%s8406_s1 + $0x78] sm:$0xff] }
 0x15b   : > { %2558 = vmatpush1.bf16.msra.mxu1 %v4783_v5  ;;  %2366 = vmatprep.subr.bf16.mxu0 %v4784_v25  ;;  %v646_v5 = vmul.f32 0.0078125, %v6000_v14  ;;  %v6281_v14 = vmul.f32 0.0078125, %v6007_v26 }
 0x15c   : > { %v6180_v40 = vsub.f32 %v1584_v31, %v6017_v21  ;;  %v4786_v21 = vld [vmem:[%s8411_s6 + $0x8c] ss:$16 sps:$4 sm:$0xff]   ;;  %v4812_v31 = vld [vmem:[%s8411_s6] ss:$16 sps:$4 sm:$0xff]  }
 0x15d   : > { %2559 = vmatprep.subr.bf16.mxu1 %v4786_v21 }
 0x15e   : > { %8515 = vst [vmem:[#allocation25_spill] sm:$0xff] %v6180_v40  ;;  %2367 = vmatpush1.bf16.msra.mxu0 %v4788_v16 }
 0x15f   : > { %2560 = vmatpush1.bf16.msra.mxu1 %v4789_v17  ;;  %2368 = vmatprep.subr.bf16.mxu0 %v4790_v62  ;;  %v1365_v62 = vld [vmem:[%s8406_s1 + $0x88] sm:$0xff] }
 0x160   : > { %2561 = vmatprep.subr.bf16.mxu1 %v4792_v36 }
 0x162   : > { %2369 = vmatpush1.bf16.msra.mxu0 %v4794_v12 }
 0x163   : > { %2562 = vmatpush1.bf16.msra.mxu1 %v4795_v39  ;;  %2370 = vmatprep.subr.bf16.mxu0 %v4796_v9 }
 0x164   : > { %2563 = vmatprep.subr.bf16.mxu1 %v4798_v51  ;;  %v1367_v51 = vld [vmem:[%s8406_s1 + $0x98] sm:$0xff] }
 0x165   : > { %1417 = vperm.xlu1 %4764, %v1355_v13  }
 0x166   : > { %2371 = vmatpush1.bf16.msra.mxu0 %v4800_v50 }
 0x167   : > { %2564 = vmatpush1.bf16.msra.mxu1 %v4801_v15  ;;  %2372 = vmatprep.subr.bf16.mxu0 %v4802_v61  ;;  %v648_v15 = vmul.f32 0.0078125, %v6028_v59 }
 0x168   : > { %v598_v4 = vpop.xlane.xlu1 %597  ;;  %2565 = vmatprep.subr.bf16.mxu1 %v4804_v47 }
 0x169   : > { %v643_v35 = vmul.f32 0.0078125, %v598_v4  ;;  %1427 = vperm.xlu1 %4764, %v1357_v8   ;;  %v5240_v4 = vld [vmem:[%s5592_s24 + $0x90] sm:$0xff] }
 0x16a   : > { %2373 = vmatpush1.bf16.msra.mxu0 %v4806_v63  ;;  %v739_v50 = vsub.f32 %v5240_v4, %v6216_v1  ;;  %v1369_v1 = vld [vmem:[%s8406_s1 + $0xa8] sm:$0xff]  ;;  %v6323_v4 = vmul.f32 0.0078125, %v6077_v32  ;;  %v6336_v32 = vld [vmem:[%s8407_s2] ss:$0 sm:$0xff] }
 0x16b   : > { %v707_v7 = vsub.f32 %v643_v35, %v675_v27  ;;  %2566 = vmatpush1.bf16.msra.mxu1 %v4807_v49  ;;  %2374 = vmatprep.subr.bf16.mxu0 %v4808_v42  ;;  %v1043_v49 = vadd.f32 %v6083_v56, %v6043_v55 }
 0x16c   : > { %v473_v11 = vpop.xlane.xlu1 %472  ;;  %2567 = vmatprep.subr.bf16.mxu1 %v4810_v28 }
 0x16d   : > { %v771_v44 = vadd.f32 1e-05, %v707_v7  ;;  %1437 = vperm.xlu1 %4764, %v1359_v6   ;;  %v6253_v43 = vmul.f32 0.0078125, %v473_v11  ;;  %v679_v6 = vmul.f32 %v6281_v14, %v6281_v14 }
 0x16e   : > { %2375 = vmatpush1.bf16.msra.mxu0 %v4812_v31  ;;  %v650_v31 = vmul.f32 0.0078125, %v6061_v24  ;;  %v5242_v24 = vld [vmem:[%s5592_s24 + $0xa0] sm:$0xff] }
 0x16f   : > { %4884 = vrsqrt.f32 %v771_v44  ;;  %v677_v25 = vmul.f32 %v6253_v43, %v6253_v43  ;;  %2568 = vmatpush1.bf16.msra.mxu1 %v4813_v58  ;;  %v6302_v44 = vmul.f32 0.0078125, %v6038_v41  ;;  %v1371_v58 = vld [vmem:[%s8406_s1 + $0xb8] sm:$0xff]  ;;  %v5241_v41 = vld [vmem:[%s5592_s24 + $0xa8] sm:$0xff] }
 0x170   : > { %v475_v33 = vpop.xlane.xlu1 %474 }
 0x171   : > { %v6267_v19 = vmul.f32 0.0078125, %v475_v33  ;;  %1447 = vperm.xlu1 %4764, %v1361_v18  }
 0x173   : > { %v678_v21 = vmul.f32 %v6267_v19, %v6267_v19 }
 0x174   : > { %v602_v16 = vpop.xlane.xlu1 %601 }
 0x175   : > { %v710_v17 = vsub.f32 %v646_v5, %v678_v21  ;;  %v645_v13 = vmul.f32 0.0078125, %v602_v16  ;;  %1457 = vperm.xlu1 %4764, %v1363_v52   ;;  %v742_v5 = vsub.f32 %v5241_v41, %v6267_v19  ;;  %v5245_v41 = vld [vmem:[%s5592_s24 + $0xb0] sm:$0xff] }
 0x177   : > { %v774_v36 = vadd.f32 1e-05, %v710_v17  ;;  %v709_v12 = vsub.f32 %v645_v13, %v677_v25  ;;  %v681_v17 = vmul.f32 %v6302_v44, %v6302_v44  ;;  %v741_v13 = vsub.f32 %v5242_v24, %v6253_v43 }
 0x178   : > { %v479_v39 = vpop.xlane.xlu1 %478  ;;  %v1046_v43 = vadd.f32 %v6104_v46, %v6071_v30 }
 0x179   : > { %4886 = vrsqrt.f32 %v774_v36  ;;  %v773_v8 = vadd.f32 1e-05, %v709_v12  ;;  %v6283_v9 = vmul.f32 0.0078125, %v479_v39  ;;  %1467 = vperm.xlu1 %4764, %v1365_v62  }
 0x17b   : > { %4888 = vrsqrt.f32 %v773_v8  ;;  %v680_v27 = vmul.f32 %v6283_v9, %v6283_v9 }
 0x17c   : > { %v4885_v26 = vpop.eup %4884  ;;  %v606_v35 = vpop.xlane.xlu1 %605 }
 0x17d   : > { %v835_v7 = vmul.f32 %v4885_v26, %v739_v50  ;;  %v712_v61 = vsub.f32 %v648_v15, %v680_v27  ;;  %v647_v47 = vmul.f32 0.0078125, %v606_v35  ;;  %1477 = vperm.xlu1 %4764, %v1367_v51  }
 0x17f   : > { %v873_v59 = vmul.f32 %v5826_v2, %v835_v7  ;;  %v776_v11 = vadd.f32 1e-05, %v712_v61  ;;  %v711_v63 = vsub.f32 %v647_v47, %v679_v6  ;;  %v5244_v47 = vld [vmem:[%s5592_s24 + $0xb8] sm:$0xff] }
 0x180   : > { %v483_v18 = vpop.xlane.xlu1 %482 }
 0x181   : > { %v6305_v42 = vadd.f32 %v5843_v3, %v873_v59  ;;  %4890 = vrsqrt.f32 %v776_v11  ;;  %v775_v28 = vadd.f32 1e-05, %v711_v63  ;;  %v6307_v33 = vmul.f32 0.0078125, %v483_v18  ;;  %1487 = vperm.xlu1 %4764, %v1369_v1  }
 0x182   : > { %v744_v1 = vsub.f32 %v5244_v47, %v6283_v9  ;;  %v683_v59 = vmul.f32 %v6323_v4, %v6323_v4 }
 0x183   : > { %v1108_v52 = vadd.f32 %v1043_v49, %v6305_v42  ;;  %4892 = vrsqrt.f32 %v775_v28  ;;  %v682_v25 = vmul.f32 %v6307_v33, %v6307_v33  ;;  %v1045_v49 = vadd.f32 %v6305_v42, %v6083_v56 }
 0x184   : > { %v610_v21 = vpop.xlane.xlu1 %609  ;;  %v616_v16 = vpop.xlane.xlu0 %615 }
 0x185   : > { %1172 = vst [vmem:[#allocation3 + $0xc1] sm:$0xff] %v1108_v52  ;;  %v714_v62 = vsub.f32 %v650_v31, %v682_v25  ;;  %v649_v36 = vmul.f32 0.0078125, %v610_v21  ;;  %1497 = vperm.xlu1 %4764, %v1371_v58   ;;  %v652_v7 = vmul.f32 0.0078125, %v616_v16 }
 0x186   : > { %v4887_v12 = vpop.eup %4886 }
 0x187   : > { %v838_v39 = vmul.f32 %v4887_v12, %v742_v5  ;;  %v778_v8 = vadd.f32 1e-05, %v714_v62  ;;  %v713_v19 = vsub.f32 %v649_v36, %v681_v17  ;;  %v743_v5 = vsub.f32 %v5245_v41, %v6281_v14 }
 0x188   : > { %v4889_v51 = vpop.eup %4888  ;;  %v487_v50 = vpop.xlane.xlu1 %486 }
 0x189   : > { %v489_v15 = vpop.xlane.xlu0 %488  ;;  %v876_v27 = vmul.f32 %v5826_v2, %v838_v39  ;;  %v837_v26 = vmul.f32 %v4889_v51, %v741_v13  ;;  %4894 = vrsqrt.f32 %v778_v8  ;;  %v777_v35 = vadd.f32 1e-05, %v713_v19  ;;  %v5246_v51 = vld [vmem:[%s5592_s24 + $0xc8] sm:$0xff] }
 0x18a   : > { %v6328_v6 = vmul.f32 0.0078125, %v487_v50  ;;  %v6357_v13 = vmul.f32 0.0078125, %v489_v15  ;;  %v746_v50 = vsub.f32 %v5246_v51, %v6307_v33  ;;  %v6369_v15 = vld [vmem:[%s8408_s3] ss:$0 sm:$0xff] }
 0x18b   : > { %v6331_v61 = vadd.f32 %v5843_v3, %v876_v27  ;;  %v875_v2 = vmul.f32 %v6336_v32, %v837_v26  ;;  %4896 = vrsqrt.f32 %v777_v35 }
 0x18c   : > { %v684_v11 = vmul.f32 %v6328_v6, %v6328_v6  ;;  %v614_v63 = vpop.xlane.xlu1 %613 }
 0x18d   : > { %v6348_v18 = vadd.f32 %v1046_v43, %v6331_v61  ;;  %v6351_v28 = vadd.f32 %v5843_v3, %v875_v2  ;;  %v651_v31 = vmul.f32 0.0078125, %v614_v63  ;;  %v620_v58 = vpop.xlane.xlu0 %619  ;;  %v1048_v19 = vadd.f32 %v6331_v61, %v6104_v46 }
 0x18e   : > { %v4891_v9 = vpop.eup %4890  ;;  %v716_v52 = vsub.f32 %v652_v7, %v684_v11  ;;  %v654_v62 = vmul.f32 0.0078125, %v620_v58  ;;  %v685_v43 = vmul.f32 %v6357_v13, %v6357_v13 }
 0x18f   : > { %1175 = vst [vmem:[#allocation3 + $0xe1] sm:$0xff] %v6348_v18  ;;  %v1110_v25 = vadd.f32 %v1045_v49, %v6351_v28  ;;  %v840_v21 = vmul.f32 %v4891_v9, %v744_v1  ;;  %v715_v16 = vsub.f32 %v651_v31, %v683_v59  ;;  %v1047_v7 = vadd.f32 %v6351_v28, %v6305_v42  ;;  %v5248_v49 = vld [vmem:[%s5592_s24 + $0xc0] sm:$0xff] }
 0x190   : > { %v4893_v17 = vpop.eup %4892  ;;  %v780_v24 = vadd.f32 1e-05, %v716_v52  ;;  %v491_v3 = vpop.xlane.xlu1 %490  ;;  %v745_v31 = vsub.f32 %v5248_v49, %v6302_v44 }
 0x191   : > { %1174 = vst [vmem:[#allocation3 + $0xd9] sm:$0xff] %v1110_v25  ;;  %v878_v36 = vmul.f32 %v6336_v32, %v840_v21  ;;  %v839_v12 = vmul.f32 %v4893_v17, %v743_v5  ;;  %v779_v39 = vadd.f32 1e-05, %v715_v16  ;;  %v6360_v8 = vmul.f32 0.0078125, %v491_v3  ;;  %v493_v14 = vpop.xlane.xlu0 %492 }
 0x192   : > { %4898 = vrsqrt.f32 %v780_v24  ;;  %v6387_v63 = vmul.f32 0.0078125, %v493_v14 }
 0x193   : > { %v6372_v27 = vadd.f32 %v6369_v15, %v878_v36  ;;  %v877_v26 = vmul.f32 %v6336_v32, %v839_v12  ;;  %4900 = vrsqrt.f32 %v779_v39  ;;  %v686_v35 = vmul.f32 %v6360_v8, %v6360_v8 }
 0x194   : > { %v618_v33 = vpop.xlane.xlu1 %617  ;;  %v687_v44 = vmul.f32 %v6387_v63, %v6387_v63 }
 0x195   : > { %v6382_v2 = vadd.f32 %v1048_v19, %v6372_v27  ;;  %v6385_v47 = vadd.f32 %v6369_v15, %v877_v26  ;;  %v718_v1 = vsub.f32 %v654_v62, %v686_v35  ;;  %v653_v11 = vmul.f32 0.0078125, %v618_v33  ;;  %v624_v41 = vpop.xlane.xlu0 %623  ;;  %v5249_v19 = vld [vmem:[%s5592_s24 + $0xd8] sm:$0xff] }
 0x196   : > { %v4895_v59 = vpop.eup %4894  ;;  %v656_v62 = vmul.f32 0.0078125, %v624_v41  ;;  %v1050_v36 = vadd.f32 %v6372_v27, %v6331_v61  ;;  %v748_v51 = vsub.f32 %v5249_v19, %v6328_v6 }
 0x197   : > { %1177 = vst [vmem:[#allocation3 + $0xf9] sm:$0xff] %v6382_v2  ;;  %v1112_v58 = vadd.f32 %v1047_v7, %v6385_v47  ;;  %v842_v9 = vmul.f32 %v4895_v59, %v746_v50  ;;  %v782_v52 = vadd.f32 1e-05, %v718_v1  ;;  %v717_v25 = vsub.f32 %v653_v11, %v685_v43  ;;  %v5250_v59 = vld [vmem:[%s5592_s24 + $0xd0] sm:$0xff] }
 0x198   : > { %v4897_v5 = vpop.eup %4896  ;;  %v495_v21 = vpop.xlane.xlu1 %494  ;;  %v1049_v26 = vadd.f32 %v6385_v47, %v6351_v28  ;;  %v747_v11 = vsub.f32 %v5250_v59, %v6323_v4 }
 0x199   : > { %1176 = vst [vmem:[#allocation3 + $0xf1] sm:$0xff] %v1112_v58  ;;  %v880_v16 = vmul.f32 %v6336_v32, %v842_v9  ;;  %v841_v17 = vmul.f32 %v4897_v5, %v745_v31  ;;  %4902 = vrsqrt.f32 %v782_v52  ;;  %v6394_v24 = vmul.f32 0.0078125, %v495_v21  ;;  %v5251_v21 = vld [vmem:[%s5592_s24 + $0xe8] sm:$0xff] }
 0x19a   : > { %v781_v3 = vadd.f32 1e-05, %v717_v25  ;;  %v750_v4 = vsub.f32 %v5251_v21, %v6360_v8 }
 0x19b   : > { %v6401_v12 = vadd.f32 %v6369_v15, %v880_v16  ;;  %v879_v39 = vmul.f32 %v6336_v32, %v841_v17  ;;  %v688_v14 = vmul.f32 %v6394_v24, %v6394_v24 }
 0x19c   : > { %4904 = vrsqrt.f32 %v781_v3  ;;  %v622_v50 = vpop.xlane.xlu1 %621 }
 0x19d   : > { %v6411_v35 = vadd.f32 %v1050_v36, %v6401_v12  ;;  %v6414_v43 = vadd.f32 %v6369_v15, %v879_v39  ;;  %v655_v33 = vmul.f32 0.0078125, %v622_v50  ;;  %v720_v7 = vsub.f32 %v656_v62, %v688_v14  ;;  %v5252_v39 = vld [vmem:[%s5592_s24 + $0xe0] sm:$0xff] }
 0x19e   : > { %v1052_v16 = vadd.f32 %v6401_v12, %v6372_v27  ;;  %v749_v8 = vsub.f32 %v5252_v39, %v6357_v13 }
 0x19f   : > { %v4899_v1 = vpop.eup %4898  ;;  %1179 = vst [vmem:[#allocation3 + $0x111] sm:$0xff] %v6411_v35  ;;  %v1114_v6 = vadd.f32 %v1049_v26, %v6414_v43  ;;  %v719_v49 = vsub.f32 %v655_v33, %v687_v44  ;;  %v784_v9 = vadd.f32 1e-05, %v720_v7  ;;  %v1051_v3 = vadd.f32 %v6414_v43, %v6385_v47 }
 0x1a0   : > { %v4901_v31 = vpop.eup %4900  ;;  %v844_v58 = vmul.f32 %v4899_v1, %v748_v51  ;;  %v5253_v1 = vld [vmem:[%s5592_s24 + $0xf8] sm:$0xff] }
 0x1a1   : > { %1178 = vst [vmem:[#allocation3 + $0x109] sm:$0xff] %v1114_v6  ;;  %v843_v52 = vmul.f32 %v4901_v31, %v747_v11  ;;  %v783_v41 = vadd.f32 1e-05, %v719_v49  ;;  %4906 = vrsqrt.f32 %v784_v9  ;;  %v752_v59 = vsub.f32 %v5253_v1, %v6394_v24  ;;  %v5254_v6 = vld [vmem:[%s5592_s24 + $0xf0] sm:$0xff] }
 0x1a2   : > { %v882_v5 = vmul.f32 %v6336_v32, %v844_v58  ;;  %v751_v49 = vsub.f32 %v5254_v6, %v6387_v63 }
 0x1a3   : > { %v881_v25 = vmul.f32 %v6336_v32, %v843_v52  ;;  %4908 = vrsqrt.f32 %v783_v41 }
 0x1a4   : > { %v6427_v17 = vadd.f32 %v6369_v15, %v882_v5 }
 0x1a5   : > { %v6432_v44 = vadd.f32 %v6369_v15, %v881_v25 }
 0x1a6   : > { %v4903_v62 = vpop.eup %4902  ;;  %v6435_v36 = vadd.f32 %v1052_v16, %v6427_v17  ;;  %v1054_v33 = vadd.f32 %v6427_v17, %v6401_v12 }
 0x1a7   : > { %v1116_v14 = vadd.f32 %v1051_v3, %v6432_v44  ;;  %v846_v19 = vmul.f32 %v4903_v62, %v750_v4  ;;  %v1053_v31 = vadd.f32 %v6432_v44, %v6414_v43 }
 0x1a8   : > { %1181 = vst [vmem:[#allocation3 + $0x129] sm:$0xff] %v6435_v36 }
 0x1a9   : > { %v4905_v51 = vpop.eup %4904  ;;  %1180 = vst [vmem:[#allocation3 + $0x121] sm:$0xff] %v1116_v14  ;;  %v884_v50 = vmul.f32 %v6336_v32, %v846_v19  ;;  %1650 = vadd.xlane.f32.xlu1 %v6129_v60 }
 0x1aa   : > { %v845_v26 = vmul.f32 %v4905_v51, %v749_v8 }
 0x1ab   : > { %v6446_v7 = vadd.f32 %v6369_v15, %v884_v50 }
 0x1ac   : > { %v883_v13 = vmul.f32 %v6336_v32, %v845_v26 }
 0x1ad   : > { %v6452_v11 = vadd.f32 %v1054_v33, %v6446_v7  ;;  %v1056_v25 = vadd.f32 %v6446_v7, %v6427_v17 }
 0x1ae   : > { %v6459_v58 = vadd.f32 %v6369_v15, %v883_v13  ;;  %v4907_v9 = vpop.eup %4906 }
 0x1af   : > { %1183 = vst [vmem:[#allocation3 + $0x141] sm:$0xff] %v6452_v11  ;;  %v848_v5 = vmul.f32 %v4907_v9, %v752_v59 }
 0x1b0   : > { %v4909_v52 = vpop.eup %4908  ;;  %v1118_v41 = vadd.f32 %v1053_v31, %v6459_v58  ;;  %v1055_v3 = vadd.f32 %v6459_v58, %v6432_v44 }
 0x1b1   : > { %v847_v24 = vmul.f32 %v4909_v52, %v751_v49  ;;  %v886_v63 = vmul.f32 %v6336_v32, %v848_v5 }
 0x1b2   : > { %1182 = vst [vmem:[#allocation3 + $0x139] sm:$0xff] %v1118_v41 }
 0x1b3   : > { %v885_v21 = vmul.f32 %v6336_v32, %v847_v24  ;;  %v6468_v4 = vadd.f32 %v6369_v15, %v886_v63  ;;  %v1195_v63 = vld [vmem:[#allocation3 + $0x50] sm:$0xff] }
 0x1b5   : > { %8516 = vst [vmem:[#allocation26_spill] sm:$0xff] %v6468_v4  ;;  %v6471_v16 = vadd.f32 %v6369_v15, %v885_v21  ;;  %v6477_v62 = vadd.f32 %v6468_v4, %v6446_v7  ;;  %v6480_v39 = vadd.f32 %v1056_v25, %v6468_v4 }
 0x1b7   : > { %8517 = vst [vmem:[#allocation27_spill] sm:$0xff] %v6471_v16  ;;  %v1057_v8 = vadd.f32 %v6471_v16, %v6459_v58  ;;  %v1120_v32 = vadd.f32 %v1055_v3, %v6471_v16  ;;  %1185 = vst [vmem:[#allocation3 + $0x159] sm:$0xff] %v6480_v39 }
 0x1b8   : > { %1187 = vst [vmem:[#allocation3 + $0x171] sm:$0xff] %v6477_v62 }
 0x1b9   : > { %1184 = vst [vmem:[#allocation3 + $0x151] sm:$0xff] %v1120_v32  ;;  %1186 = vst [vmem:[#allocation3 + $0x169] sm:$0xff] %v1057_v8 }
 0x1bf   : > { %v1641_v15 = vpop.xlane.xlu1 %1640 }
 0x1c0   : > { %v1703_v19 = vmul.f32 0.0078125, %v1641_v15  ;;  %v5255_v15 = vld [vmem:[#allocation3 + $0x51] sm:$0xff] }
 0x1c2   : > { %v1863_v50 = vmul.f32 %v1703_v19, %v1703_v19 }
 0x1c3   : > { %v1769_v14 = vpop.xlane.xlu1 %1768 }
 0x1c4   : > { %v1831_v51 = vmul.f32 0.0078125, %v1769_v14  ;;  %v1259_v14 = vadd.f32 %v5255_v15, %v1195_v63 }
 0x1c6   : > { %v1895_v26 = vsub.f32 %v1831_v51, %v1863_v50 }
 0x1c7   : > { %v1643_v59 = vpop.xlane.xlu1 %1642 }
 0x1c8   : > { %v1959_v1 = vadd.f32 1e-05, %v1895_v26  ;;  %v6491_v5 = vmul.f32 0.0078125, %v1643_v59 }
 0x1ca   : > { %4910 = vrsqrt.f32 %v1959_v1  ;;  %v1864_v51 = vmul.f32 %v6491_v5, %v6491_v5  ;;  %v1229_v1 = vld [vmem:[#allocation3 + $0x69] sm:$0xff] }
 0x1cf   : > { %v1639_v33 = vpop.xlane.xlu0 %1638 }
 0x1d0   : > { %v6487_v13 = vmul.f32 0.0078125, %v1639_v33  ;;  %v1197_v33 = vld [vmem:[#allocation3 + $0x68] sm:$0xff] }
 0x1d2   : > { %v1862_v49 = vmul.f32 %v6487_v13, %v6487_v13 }
 0x1d3   : > { %v1767_v6 = vpop.xlane.xlu0 %1766 }
 0x1d4   : > { %v1830_v31 = vmul.f32 0.0078125, %v1767_v6 }
 0x1d5   : > { %v1773_v9 = vpop.xlane.xlu1 %1772 }
 0x1d6   : > { %v1894_v52 = vsub.f32 %v1830_v31, %v1862_v49  ;;  %v1833_v3 = vmul.f32 0.0078125, %v1773_v9  ;;  %v1291_v31 = vld [vmem:[#allocation3 + $0x52] sm:$0xff]  ;;  %v1261_v9 = vadd.f32 %v1229_v1, %v1197_v33 }
 0x1d7   : > { %v1645_v41 = vpop.xlane.xlu0 %1644  ;;  %v4911_v4 = vpop.eup %4910 }
 0x1d8   : > { %v1958_v24 = vadd.f32 1e-05, %v1894_v52  ;;  %v6493_v25 = vmul.f32 0.0078125, %v1645_v41  ;;  %v1323_v41 = vadd.f32 %v1291_v31, %v1259_v14  ;;  %v1927_v14 = vsub.f32 %v6059_v20, %v1703_v19 }
 0x1d9   : > { %v1647_v21 = vpop.xlane.xlu1 %1646 }
 0x1da   : > { %4912 = vrsqrt.f32 %v1958_v24  ;;  %v1865_v8 = vmul.f32 %v6493_v25, %v6493_v25  ;;  %v6499_v24 = vmul.f32 0.0078125, %v1647_v21  ;;  %v2023_v16 = vmul.f32 %v4911_v4, %v1927_v14 }
 0x1db   : > { %v1771_v32 = vpop.xlane.xlu0 %1770 }
 0x1dc   : > { %v1897_v50 = vsub.f32 %v1833_v3, %v1865_v8  ;;  %v1832_v26 = vmul.f32 0.0078125, %v1771_v32  ;;  %v1866_v1 = vmul.f32 %v6499_v24, %v6499_v24 }
 0x1dd   : > { %v1777_v59 = vpop.xlane.xlu1 %1776 }
 0x1de   : > { %v1961_v6 = vadd.f32 1e-05, %v1897_v50  ;;  %v1896_v49 = vsub.f32 %v1832_v26, %v1864_v51  ;;  %v1835_v3 = vmul.f32 0.0078125, %v1777_v59  ;;  %v1293_v51 = vld [vmem:[#allocation3 + $0x6a] sm:$0xff]  ;;  %v1199_v50 = vld [vmem:[#allocation3 + $0x80] sm:$0xff] }
 0x1df   : > { %v1649_v52 = vpop.xlane.xlu0 %1648  ;;  %v1231_v26 = vld [vmem:[#allocation3 + $0x81] sm:$0xff]  ;;  %v1325_v21 = vadd.f32 %v1293_v51, %v1261_v9 }
 0x1e0   : > { %4914 = vrsqrt.f32 %v1961_v6  ;;  %v1960_v0 = vadd.f32 1e-05, %v1896_v49  ;;  %v6501_v63 = vmul.f32 0.0078125, %v1649_v52  ;;  %v5256_v49 = vld [vmem:[%s5592_s24 + $0x38] sm:$0xff]  ;;  %v1263_v52 = vadd.f32 %v1231_v26, %v1199_v50  ;;  %v1295_v26 = vld [vmem:[#allocation3 + $0x82] sm:$0xff] }
 0x1e1   : > { %v1418_v15 = vpop.permute.xlu1 %1417 }
 0x1e2   : > { %4916 = vrsqrt.f32 %v1960_v0  ;;  %v1867_v8 = vmul.f32 %v6501_v63, %v6501_v63  ;;  %v1547_v32 = vmul.f32 %v1418_v15, %v1323_v41  ;;  %v6512_v41 = vld [vmem:[%s8409_s4] ss:$0 sm:$0xff] }
 0x1e3   : > { %v1775_v33 = vpop.xlane.xlu0 %1774 }
 0x1e4   : > { %v1899_v6 = vsub.f32 %v1835_v3, %v1867_v8  ;;  %v1579_v31 = vadd.f32 %v5256_v49, %v1547_v32  ;;  %v1834_v0 = vmul.f32 0.0078125, %v1775_v33  ;;  %v1926_v3 = vsub.f32 %v6098_v37, %v6487_v13  ;;  %v5257_v32 = vld [vmem:[%s5592_s24 + $0x48] sm:$0xff]  ;;  %v1233_v49 = vld [vmem:[#allocation3 + $0x99] sm:$0xff] }
 0x1e5   : > { %v1428_v59 = vpop.permute.xlu1 %1427  ;;  %v1740_v13 = vmul.f32 %v6129_v60, %v6129_v60  ;;  %v1237_v37 = vld [vmem:[#allocation3 + $0xc9] sm:$0xff] }
 0x1e6   : > { %v1963_v15 = vadd.f32 1e-05, %v1899_v6  ;;  %v6515_v19 = vsub.f32 %v1579_v31, %v5922_v45  ;;  %v1898_v9 = vsub.f32 %v1834_v0, %v1866_v1  ;;  %v1549_v51 = vmul.f32 %v1428_v59, %v1325_v21  ;;  %v6529_v1 = vld [vmem:[%s8410_s5] ss:$0 sm:$0xff]  ;;  %v1201_v6 = vld [vmem:[#allocation3 + $0x98] sm:$0xff] }
 0x1e7   : > { %v4913_v20 = vpop.eup %4912  ;;  %v2061_v45 = vmul.f32 %v6512_v41, %v2023_v16  ;;  %v1327_v21 = vadd.f32 %v1295_v26, %v1263_v52 }
 0x1e8   : > { %8518 = vst [vmem:[#allocation28_spill] sm:$0xff] %v6515_v19  ;;  %4918 = vrsqrt.f32 %v1963_v15  ;;  %v1962_v8 = vadd.f32 1e-05, %v1898_v9  ;;  %v1581_v50 = vadd.f32 %v5257_v32, %v1549_v51  ;;  %1652 = vadd.xlane.f32.xlu0 %v6515_v19  ;;  %v1741_v4 = vmul.f32 %v6515_v19, %v6515_v19 }
 0x1e9   : > { %v1438_v14 = vpop.permute.xlu1 %1437  ;;  %v2022_v33 = vmul.f32 %v4913_v20, %v1926_v3  ;;  %v1929_v20 = vsub.f32 %v6110_v57, %v6493_v25  ;;  %v2099_v9 = vadd.f32 %v6529_v1, %v2061_v45  ;;  %v1928_v51 = vsub.f32 %v6086_v22, %v6491_v5  ;;  %v1204_v57 = vld [vmem:[#allocation3 + $0xc0] sm:$0xff] }
 0x1ea   : > { %4920 = vrsqrt.f32 %v1962_v8  ;;  %1780 = vadd.xlane.f32.xlu1 %v1741_v4  ;;  %v6535_v16 = vsub.f32 %v1581_v50, %v5954_v23  ;;  %v1551_v0 = vmul.f32 %v1438_v14, %v1327_v21  ;;  %v1265_v8 = vadd.f32 %v1233_v49, %v1201_v6  ;;  %v5258_v50 = vld [vmem:[%s5592_s24 + $0x58] sm:$0xff] }
 0x1eb   : > { %v2060_v31 = vmul.f32 %v6512_v41, %v2022_v33  ;;  %v1297_v33 = vld [vmem:[#allocation3 + $0x9a] sm:$0xff]  ;;  %v1742_v21 = vmul.f32 %v6151_v38, %v6151_v38  ;;  %v1931_v49 = vsub.f32 %v6123_v34, %v6501_v63 }
 0x1ec   : > { %8519 = vst [vmem:[#allocation29_spill] sm:$0xff] %v6535_v16  ;;  %1778 = vadd.xlane.f32.xlu0 %v1740_v13  ;;  %v1583_v4 = vadd.f32 %v5258_v50, %v1551_v0  ;;  %v1743_v26 = vmul.f32 %v6535_v16, %v6535_v16  ;;  %v1329_v45 = vadd.f32 %v1297_v33, %v1265_v8  ;;  %v8520_v13 = vmov 0  }
 0x1ed   : > { %v4915_v59 = vpop.eup %4914  ;;  %v1448_v52 = vpop.permute.xlu1 %1447  ;;  %v2098_v15 = vadd.f32 %v6529_v1, %v2060_v31 }
 0x1ee   : > { %v2025_v3 = vmul.f32 %v4915_v59, %v1929_v20  ;;  %1654 = vadd.xlane.f32.xlu1 %v6151_v38  ;;  %v6557_v31 = vsub.f32 %v1583_v4, %v5979_v53  ;;  %v1553_v20 = vmul.f32 %v1448_v52, %v1329_v45 }
 0x1ef   : > { %v4917_v32 = vpop.eup %4916  ;;  %v2130_v25 = vpack.c.bf16 %v2099_v9, %v2098_v15  ;;  %v1209_v15 = vld [vmem:[#allocation3 + $0xf8] sm:$0xff] }
 0x1f0   : > { %v2063_v23 = vmul.f32 %v6512_v41, %v2025_v3  ;;  %1656 = vadd.xlane.f32.xlu0 %v6535_v16  ;;  %v2024_v14 = vmul.f32 %v4917_v32, %v1928_v51  ;;  %8521 = vst [vmem:[#allocation30_spill] sm:$0xff] %v6557_v31  ;;  %v1930_v3 = vsub.f32 %v6120_v29, %v6499_v24 }
 0x1f1   : > { %2393 = vmatmul.mubr.bf16.vlgmr.msra.gmra.mxu0 %v2130_v25  ;;  %2586 = vmatmul.mubr.bf16.vlgmr.msra.gmra.mxu1 %v2130_v25  ;;  %v6547_v5 = vpop.permute.xlu1 %1457  ;;  %v1273_v53 = vadd.f32 %v1209_v15, %v6382_v2  ;;  %v5259_v25 = vld [vmem:[%s5592_s24 + $0x68] sm:$0xff]  ;;  %v1305_v2 = vld [vmem:[#allocation3 + $0xfa] sm:$0xff] }
 0x1f2   : > { %1784 = vadd.xlane.f32.xlu1 %v1743_v26  ;;  %2402 = vmatprep.mubr.bf16.mxu0 %v8520_v13  ;;  %v2062_v6 = vmul.f32 %v6512_v41, %v2024_v14  ;;  %v2101_v59 = vadd.f32 %v6529_v1, %v2063_v23  ;;  %v1585_v50 = vadd.f32 %v5259_v25, %v1553_v20  ;;  %v1211_v26 = vld [vmem:[#allocation3 + $0x110] sm:$0xff]  ;;  %v1377_v25 = vld [vmem:[%s8406_s1 + $0xe8] sm:$0xff] }
 0x1f3   : > { %2595 = vmatprep.mubr.bf16.mxu1 %v8520_v13  ;;  %v1745_v23 = vmul.f32 %v6557_v31, %v6557_v31  ;;  %v1744_v14 = vmul.f32 %v6162_v10, %v6162_v10  ;;  %v1337_v45 = vadd.f32 %v1305_v2, %v1273_v53  ;;  %v1275_v20 = vadd.f32 %v1211_v26, %v6411_v35  ;;  %v1375_v53 = vld [vmem:[%s8406_s1 + $0xd8] sm:$0xff]  ;;  %v1368_v26 = vld [vmem:[%s8406_s1 + $0xa0] sm:$0xff] }
 0x1f4   : > { %1782 = vadd.xlane.f32.xlu0 %v1742_v21  ;;  %v2100_v0 = vadd.f32 %v6529_v1, %v2062_v6  ;;  %v6580_v21 = vsub.f32 %v1585_v50, %v6012_v54  ;;  %v1746_v35 = vmul.f32 %v6180_v40, %v6180_v40  ;;  %v1364_v50 = vld [vmem:[%s8406_s1 + $0x80] sm:$0xff] }
 0x1f5   : > { %v4919_v9 = vpop.eup %4918  ;;  %v6561_v51 = vpop.permute.xlu1 %1467  ;;  %v1372_v2 = vld [vmem:[%s8406_s1 + $0xc0] sm:$0xff] }
 0x1f6   : > { %v2027_v63 = vmul.f32 %v4919_v9, %v1931_v49  ;;  %1658 = vadd.xlane.f32.xlu1 %v6162_v10  ;;  %v2131_v8 = vpack.c.bf16 %v2101_v59, %v2100_v0  ;;  %8522 = vst [vmem:[#allocation31_spill] sm:$0xff] %v6580_v21  ;;  %v1307_v9 = vld [vmem:[#allocation3 + $0x112] sm:$0xff]  ;;  %v1747_v54 = vmul.f32 %v6580_v21, %v6580_v21 }
 0x1f7   : > { %v4921_v32 = vpop.eup %4920 }
 0x1f8   : > { %v2065_v52 = vmul.f32 %v6512_v41, %v2027_v63  ;;  %1660 = vadd.xlane.f32.xlu0 %v6557_v31  ;;  %v2026_v4 = vmul.f32 %v4921_v32, %v1930_v3  ;;  %v1339_v3 = vadd.f32 %v1307_v9, %v1275_v20  ;;  %v1373_v32 = vld [vmem:[%s8406_s1 + $0xc8] sm:$0xff]  ;;  %v1235_v20 = vld [vmem:[#allocation3 + $0xb1] sm:$0xff] }
 0x1f9   : > { %2403 = vmatmul.mubr.bf16.gmra.mxu0 %v2131_v8  ;;  %2596 = vmatmul.mubr.bf16.gmra.mxu1 %v2131_v8  ;;  %v6572_v24 = vpop.permute.xlu1 %1477 }
 0x1fa   : > { %1788 = vadd.xlane.f32.xlu1 %v1745_v23  ;;  %2412 = vmatprep.mubr.bf16.mxu0 %v8520_v13  ;;  %v2064_v33 = vmul.f32 %v6512_v41, %v2026_v4  ;;  %v2103_v49 = vadd.f32 %v6529_v1, %v2065_v52  ;;  %v1362_v52 = vld [vmem:[%s8406_s1 + $0x70] sm:$0xff]  ;;  %v1379_v23 = vld [vmem:[%s8406_s1 + $0xf8] sm:$0xff] }
 0x1fb   : > { %2605 = vmatprep.mubr.bf16.mxu1 %v8520_v13  ;;  %v1366_v4 = vld [vmem:[%s8406_s1 + $0x90] sm:$0xff] }
 0x1fc   : > { %1786 = vadd.xlane.f32.xlu0 %v1744_v14  ;;  %v2102_v6 = vadd.f32 %v6529_v1, %v2064_v33  ;;  %v1370_v14 = vld [vmem:[%s8406_s1 + $0xb0] sm:$0xff] }
 0x1fd   : > { %v1488_v0 = vpop.permute.xlu1 %1487  ;;  %v1374_v33 = vld [vmem:[%s8406_s1 + $0xd0] sm:$0xff] }
 0x1fe   : > { %v6585_v59 = vmul.f32 %v1488_v0, %v1337_v45  ;;  %1662 = vadd.xlane.f32.xlu1 %v6180_v40  ;;  %v2132_v15 = vpack.c.bf16 %v2103_v49, %v2102_v6  ;;  %v1376_v45 = vld [vmem:[%s8406_s1 + $0xe0] sm:$0xff]  ;;  %v1378_v6 = vld [vmem:[%s8406_s1 + $0xf0] sm:$0xff] }
 0x1ff   : > { %v1203_v49 = vld [vmem:[#allocation3 + $0xb0] sm:$0xff] }
 0x200   : > { %1664 = vadd.xlane.f32.xlu0 %v6580_v21  ;;  %v1267_v0 = vadd.f32 %v1235_v20, %v1203_v49 }
 0x201   : > { %2413 = vmatmul.mubr.bf16.gmra.mxu0 %v2132_v15  ;;  %2606 = vmatmul.mubr.bf16.gmra.mxu1 %v2132_v15  ;;  %v1498_v63 = vpop.permute.xlu1 %1497  ;;  %v1299_v15 = vld [vmem:[#allocation3 + $0xb2] sm:$0xff] }
 0x202   : > { %v6591_v8 = vmul.f32 %v1498_v63, %v1339_v3  ;;  %1792 = vadd.xlane.f32.xlu1 %v1747_v54  ;;  %2422 = vmatprep.mubr.bf16.mxu0 %v8520_v13  ;;  %v1331_v9 = vadd.f32 %v1299_v15, %v1267_v0  ;;  %v5260_v54 = vld [vmem:[%s5592_s24 + $0x78] sm:$0xff] }
 0x203   : > { %2615 = vmatprep.mubr.bf16.mxu1 %v8520_v13 }
 0x204   : > { %1790 = vadd.xlane.f32.xlu0 %v1746_v35  ;;  %v1555_v3 = vmul.f32 %v6547_v5, %v1331_v9 }
 0x206   : > { %v1587_v63 = vadd.f32 %v5260_v54, %v1555_v3 }
 0x208   : > { %v6639_v35 = vsub.f32 %v1587_v63, %v6048_v48 }
 0x20a   : > { %8523 = vst [vmem:[#allocation32_spill] sm:$0xff] %v6639_v35 }
 0x213   : > { %1507 = vperm.xlu1 %4764, %v1373_v32  }
 0x217   : > { %1517 = vperm.xlu1 %4764, %v1375_v53  }
 0x21a   : > { %1452 = vperm.xlu0 %4765, %v1362_v52  }
 0x21b   : > { %1527 = vperm.xlu1 %4764, %v1377_v25  }
 0x21e   : > { %1462 = vperm.xlu0 %4765, %v1364_v50  }
 0x21f   : > { %1537 = vperm.xlu1 %4764, %v1379_v23  }
 0x222   : > { %1472 = vperm.xlu0 %4765, %v1366_v4  }
 0x226   : > { %1482 = vperm.xlu0 %4765, %v1368_v26  }
 0x22a   : > { %1492 = vperm.xlu0 %4765, %v1370_v14  }
 0x22e   : > { %1502 = vperm.xlu0 %4765, %v1372_v2  }
 0x232   : > { %1512 = vperm.xlu0 %4765, %v1374_v33   ;;  %v1651_v32 = vpop.xlane.xlu1 %1650 }
 0x233   : > { %v1708_v52 = vmul.f32 0.0078125, %v1651_v32 }
 0x235   : > { %v1868_v14 = vmul.f32 %v1708_v52, %v1708_v52 }
 0x236   : > { %1522 = vperm.xlu0 %4765, %v1376_v45  }
 0x23a   : > { %1532 = vperm.xlu0 %4765, %v1378_v6  }
 0x259   : > { %1668 = vadd.xlane.f32.xlu0 %v6639_v35 }
 0x271   : > { %v1653_v53 = vpop.xlane.xlu0 %1652 }
 0x272   : > { %v1709_v25 = vmul.f32 0.0078125, %v1653_v53 }
 0x273   : > { %v1781_v50 = vpop.xlane.xlu1 %1780 }
 0x274   : > { %v1869_v23 = vmul.f32 %v1709_v25, %v1709_v25  ;;  %v1837_v4 = vmul.f32 0.0078125, %v1781_v50 }
 0x275   : > { %v1779_v26 = vpop.xlane.xlu0 %1778 }
 0x276   : > { %v1901_v2 = vsub.f32 %v1837_v4, %v1869_v23  ;;  %v1836_v33 = vmul.f32 0.0078125, %v1779_v26 }
 0x277   : > { %v1655_v45 = vpop.xlane.xlu1 %1654 }
 0x278   : > { %v1965_v5 = vadd.f32 1e-05, %v1901_v2  ;;  %v1900_v6 = vsub.f32 %v1836_v33, %v1868_v14  ;;  %v6642_v20 = vmul.f32 0.0078125, %v1655_v45 }
 0x279   : > { %v1657_v49 = vpop.xlane.xlu0 %1656 }
 0x27a   : > { %4922 = vrsqrt.f32 %v1965_v5  ;;  %v1964_v48 = vadd.f32 1e-05, %v1900_v6  ;;  %v6644_v0 = vmul.f32 0.0078125, %v1657_v49  ;;  %v1870_v63 = vmul.f32 %v6642_v20, %v6642_v20 }
 0x27b   : > { %v1785_v15 = vpop.xlane.xlu1 %1784 }
 0x27c   : > { %4924 = vrsqrt.f32 %v1964_v48  ;;  %v1839_v9 = vmul.f32 0.0078125, %v1785_v15  ;;  %v1871_v3 = vmul.f32 %v6644_v0, %v6644_v0  ;;  %v1933_v48 = vsub.f32 %v6515_v19, %v1709_v25 }
 0x27d   : > { %v1783_v54 = vpop.xlane.xlu0 %1782 }
 0x27e   : > { %v1838_v32 = vmul.f32 0.0078125, %v1783_v54  ;;  %v1903_v53 = vsub.f32 %v1839_v9, %v1871_v3 }
 0x27f   : > { %v1659_v50 = vpop.xlane.xlu1 %1658 }
 0x280   : > { %v1902_v23 = vsub.f32 %v1838_v32, %v1870_v63  ;;  %v1967_v4 = vadd.f32 1e-05, %v1903_v53  ;;  %v6650_v2 = vmul.f32 0.0078125, %v1659_v50 }
 0x281   : > { %v1661_v26 = vpop.xlane.xlu0 %1660 }
 0x282   : > { %v1966_v14 = vadd.f32 1e-05, %v1902_v23  ;;  %v6652_v33 = vmul.f32 0.0078125, %v1661_v26  ;;  %4926 = vrsqrt.f32 %v1967_v4  ;;  %v1872_v15 = vmul.f32 %v6650_v2, %v6650_v2 }
 0x283   : > { %v1789_v45 = vpop.xlane.xlu1 %1788  ;;  %v1932_v4 = vsub.f32 %v6129_v60, %v1708_v52  ;;  %v1202_v52 = vld [vmem:[#allocation3 + $0xa8] sm:$0xff] }
 0x284   : > { %4928 = vrsqrt.f32 %v1966_v14  ;;  %v1873_v5 = vmul.f32 %v6652_v33, %v6652_v33  ;;  %v1841_v6 = vmul.f32 0.0078125, %v1789_v45 }
 0x285   : > { %v1787_v49 = vpop.xlane.xlu0 %1786 }
 0x286   : > { %v1905_v9 = vsub.f32 %v1841_v6, %v1873_v5  ;;  %v1840_v3 = vmul.f32 0.0078125, %v1787_v49 }
 0x287   : > { %v4923_v54 = vpop.eup %4922  ;;  %v1663_v63 = vpop.xlane.xlu1 %1662 }
 0x288   : > { %v1969_v32 = vadd.f32 1e-05, %v1905_v9  ;;  %v1904_v53 = vsub.f32 %v1840_v3, %v1872_v15  ;;  %v2029_v50 = vmul.f32 %v4923_v54, %v1933_v48  ;;  %v6660_v45 = vmul.f32 0.0078125, %v1663_v63  ;;  %v1234_v9 = vld [vmem:[#allocation3 + $0xa9] sm:$0xff] }
 0x289   : > { %v4925_v23 = vpop.eup %4924  ;;  %v1665_v26 = vpop.xlane.xlu0 %1664  ;;  %v1935_v63 = vsub.f32 %v6535_v16, %v6644_v0 }
 0x28a   : > { %4930 = vrsqrt.f32 %v1969_v32  ;;  %v1968_v14 = vadd.f32 1e-05, %v1904_v53  ;;  %v6662_v34 = vmul.f32 0.0078125, %v1665_v26  ;;  %v2028_v19 = vmul.f32 %v4925_v23, %v1932_v4  ;;  %v1205_v4 = vld [vmem:[#allocation3 + $0xc8] sm:$0xff] }
 0x28b   : > { %v1793_v25 = vpop.xlane.xlu1 %1792  ;;  %v2067_v5 = vmul.f32 %v6512_v41, %v2029_v50  ;;  %v1874_v3 = vmul.f32 %v6660_v45, %v6660_v45  ;;  %v1934_v26 = vsub.f32 %v6151_v38, %v6642_v20 }
 0x28c   : > { %4932 = vrsqrt.f32 %v1968_v14  ;;  %v1843_v6 = vmul.f32 0.0078125, %v1793_v25  ;;  %v1875_v49 = vmul.f32 %v6662_v34, %v6662_v34  ;;  %v2066_v15 = vmul.f32 %v6512_v41, %v2028_v19 }
 0x28d   : > { %v1791_v48 = vpop.xlane.xlu0 %1790  ;;  %v2105_v50 = vadd.f32 %v6529_v1, %v2067_v5  ;;  %v1266_v14 = vadd.f32 %v1234_v9, %v1202_v52  ;;  %v1298_v5 = vld [vmem:[#allocation3 + $0xaa] sm:$0xff] }
 0x28e   : > { %v1842_v54 = vmul.f32 0.0078125, %v1791_v48  ;;  %v1907_v32 = vsub.f32 %v1843_v6, %v1875_v49  ;;  %v2104_v53 = vadd.f32 %v6529_v1, %v2066_v15  ;;  %v1236_v48 = vld [vmem:[#allocation3 + $0xc1] sm:$0xff]  ;;  %v1269_v49 = vadd.f32 %v1237_v37, %v1205_v4  ;;  %v5261_v4 = vld [vmem:[%s5592_s24 + $0x70] sm:$0xff] }
 0x28f   : > { %v4927_v23 = vpop.eup %4926  ;;  %v1330_v20 = vadd.f32 %v1298_v5, %v1266_v14  ;;  %v1268_v52 = vadd.f32 %v1236_v48, %v1204_v57  ;;  %v1936_v57 = vsub.f32 %v6162_v10, %v6650_v2  ;;  %v1207_v48 = vld [vmem:[#allocation3 + $0xe0] sm:$0xff] }
 0x290   : > { %v1906_v19 = vsub.f32 %v1842_v54, %v1874_v3  ;;  %v1971_v60 = vadd.f32 1e-05, %v1907_v32  ;;  %v2133_v29 = vpack.c.bf16 %v2105_v50, %v2104_v53  ;;  %v2031_v22 = vmul.f32 %v4927_v23, %v1935_v63  ;;  %v1301_v54 = vld [vmem:[#allocation3 + $0xca] sm:$0xff]  ;;  %v1238_v32 = vld [vmem:[#allocation3 + $0xd9] sm:$0xff]  ;;  %v1300_v23 = vld [vmem:[#allocation3 + $0xc2] sm:$0xff] }
 0x291   : > { %v4929_v25 = vpop.eup %4928  ;;  %v1333_v53 = vadd.f32 %v1301_v54, %v1269_v49  ;;  %v1937_v50 = vsub.f32 %v6557_v31, %v6652_v33 }
 0x292   : > { %v1970_v0 = vadd.f32 1e-05, %v1906_v19  ;;  %v2030_v6 = vmul.f32 %v4929_v25, %v1934_v26  ;;  %4934 = vrsqrt.f32 %v1971_v60  ;;  %2423 = vmatmul.mubr.bf16.gmra.mxu0 %v2133_v29  ;;  %2616 = vmatmul.mubr.bf16.gmra.mxu1 %v2133_v29  ;;  %v2069_v15 = vmul.f32 %v6512_v41, %v2031_v22  ;;  %v1206_v60 = vld [vmem:[#allocation3 + $0xd8] sm:$0xff] }
 0x293   : > { %2432 = vmatprep.mubr.bf16.mxu0 %v8520_v13  ;;  %2625 = vmatprep.mubr.bf16.mxu1 %v8520_v13  ;;  %v1332_v19 = vadd.f32 %v1300_v23, %v1268_v52  ;;  %v1271_v52 = vadd.f32 %v1207_v48, %v6348_v18  ;;  %v1749_v18 = vmul.f32 %v6639_v35, %v6639_v35 }
 0x294   : > { %4936 = vrsqrt.f32 %v1970_v0  ;;  %v2068_v9 = vmul.f32 %v6512_v41, %v2030_v6  ;;  %v2107_v29 = vadd.f32 %v6529_v1, %v2069_v15  ;;  %v1270_v6 = vadd.f32 %v1238_v32, %v1206_v60  ;;  %v1208_v32 = vld [vmem:[#allocation3 + $0xf0] sm:$0xff] }
 0x295   : > { %v1453_v3 = vpop.permute.xlu0 %1452  ;;  %v1557_v15 = vmul.f32 %v6561_v51, %v1333_v53  ;;  %v1302_v51 = vld [vmem:[#allocation3 + $0xda] sm:$0xff]  ;;  %v1303_v53 = vld [vmem:[#allocation3 + $0xe2] sm:$0xff] }
 0x296   : > { %v1554_v63 = vmul.f32 %v1453_v3, %v1330_v20  ;;  %v2106_v37 = vadd.f32 %v6529_v1, %v2068_v9  ;;  %v5262_v9 = vld [vmem:[%s5592_s24 + $0x80] sm:$0xff]  ;;  %v1334_v60 = vadd.f32 %v1302_v51, %v1270_v6 }
 0x297   : > { %v4931_v22 = vpop.eup %4930 }
 0x298   : > { %v1586_v26 = vadd.f32 %v5261_v4, %v1554_v63  ;;  %v2134_v14 = vpack.c.bf16 %v2107_v29, %v2106_v37  ;;  %v2033_v5 = vmul.f32 %v4931_v22, %v1937_v50  ;;  %v5263_v37 = vld [vmem:[%s5592_s24 + $0x88] sm:$0xff]  ;;  %v1240_v22 = vld [vmem:[#allocation3 + $0xf1] sm:$0xff]  ;;  %v1939_v50 = vsub.f32 %v6580_v21, %v6662_v34 }
 0x299   : > { %v4933_v25 = vpop.eup %4932  ;;  %v1463_v0 = vpop.permute.xlu0 %1462  ;;  %v1589_v29 = vadd.f32 %v5263_v37, %v1557_v15  ;;  %v1210_v37 = vld [vmem:[#allocation3 + $0x108] sm:$0xff] }
 0x29a   : > { %v6689_v49 = vsub.f32 %v1586_v26, %v6043_v55  ;;  %v1556_v33 = vmul.f32 %v1463_v0, %v1332_v19  ;;  %v2032_v20 = vmul.f32 %v4933_v25, %v1936_v57  ;;  %2433 = vmatmul.mubr.bf16.gmra.mxu0 %v2134_v14  ;;  %2626 = vmatmul.mubr.bf16.gmra.mxu1 %v2134_v14 }
 0x29b   : > { %v2071_v2 = vmul.f32 %v6512_v41, %v2033_v5  ;;  %2442 = vmatprep.mubr.bf16.mxu0 %v8520_v13  ;;  %2635 = vmatprep.mubr.bf16.mxu1 %v8520_v13  ;;  %v1335_v26 = vadd.f32 %v1303_v53, %v1271_v52  ;;  %v1938_v19 = vsub.f32 %v6180_v40, %v6660_v45  ;;  %v5264_v45 = vld [vmem:[%s5592_s24 + $0x90] sm:$0xff]  ;;  %v5266_v53 = vld [vmem:[%s5592_s24 + $0xa0] sm:$0xff] }
 0x29c   : > { %8524 = vst [vmem:[#allocation33_spill] sm:$0xff] %v6689_v49  ;;  %v1588_v3 = vadd.f32 %v5262_v9, %v1556_v33  ;;  %1666 = vadd.xlane.f32.xlu1 %v6689_v49  ;;  %v1748_v54 = vmul.f32 %v6689_v49, %v6689_v49  ;;  %v2070_v55 = vmul.f32 %v6512_v41, %v2032_v20 }
 0x29d   : > { %v1473_v63 = vpop.permute.xlu0 %1472  ;;  %v2109_v57 = vadd.f32 %v6529_v1, %v2071_v2  ;;  %v1272_v0 = vadd.f32 %v1240_v22, %v1208_v32  ;;  %v6713_v34 = vsub.f32 %v1589_v29, %v6071_v30  ;;  %v1559_v15 = vmul.f32 %v6572_v24, %v1335_v26  ;;  %v1304_v2 = vld [vmem:[#allocation3 + $0xf2] sm:$0xff]  ;;  %v1242_v29 = vld [vmem:[#allocation3 + $0x109] sm:$0xff] }
 0x29e   : > { %1794 = vadd.xlane.f32.xlu0 %v1748_v54  ;;  %v2108_v23 = vadd.f32 %v6529_v1, %v2070_v55  ;;  %v6710_v14 = vsub.f32 %v1588_v3, %v6083_v56  ;;  %v1558_v25 = vmul.f32 %v1473_v63, %v1334_v60  ;;  %v5265_v3 = vld [vmem:[%s5592_s24 + $0x98] sm:$0xff]  ;;  %v1274_v22 = vadd.f32 %v1242_v29, %v1210_v37 }
 0x29f   : > { %v4935_v4 = vpop.eup %4934  ;;  %8526 = vst [vmem:[#allocation35_spill] sm:$0xff] %v6713_v34  ;;  %v1336_v24 = vadd.f32 %v1304_v2, %v1272_v0  ;;  %v1591_v54 = vadd.f32 %v5265_v3, %v1559_v15  ;;  %v1751_v51 = vmul.f32 %v6713_v34, %v6713_v34  ;;  %v5269_v2 = vld [vmem:[%s5592_s24 + $0xb8] sm:$0xff] }
 0x2a0   : > { %8525 = vst [vmem:[#allocation34_spill] sm:$0xff] %v6710_v14  ;;  %1796 = vadd.xlane.f32.xlu1 %v1749_v18  ;;  %v2135_v6 = vpack.c.bf16 %v2109_v57, %v2108_v23  ;;  %v2035_v5 = vmul.f32 %v4935_v4, %v1939_v50  ;;  %v1590_v20 = vadd.f32 %v5264_v45, %v1558_v25  ;;  %v1244_v25 = vld [vmem:[#allocation3 + $0x121] sm:$0xff]  ;;  %v1246_v3 = vld [vmem:[#allocation3 + $0x139] sm:$0xff] }
 0x2a1   : > { %v4937_v48 = vpop.eup %4936  ;;  %v1750_v52 = vmul.f32 %v6710_v14, %v6710_v14  ;;  %v1483_v9 = vpop.permute.xlu0 %1482  ;;  %v6734_v32 = vsub.f32 %v1591_v54, %v6104_v46  ;;  %v5267_v46 = vld [vmem:[%s5592_s24 + $0xa8] sm:$0xff] }
 0x2a2   : > { %1670 = vadd.xlane.f32.xlu0 %v6710_v14  ;;  %v2034_v33 = vmul.f32 %v4937_v48, %v1938_v19  ;;  %2443 = vmatmul.mubr.bf16.gmra.mxu0 %v2135_v6  ;;  %v2073_v56 = vmul.f32 %v6512_v41, %v2035_v5  ;;  %v6731_v60 = vsub.f32 %v1590_v20, %v6305_v42  ;;  %v1212_v19 = vld [vmem:[#allocation3 + $0x120] sm:$0xff] }
 0x2a3   : > { %2636 = vmatmul.mubr.bf16.gmra.mxu1 %v2135_v6  ;;  %2452 = vmatprep.mubr.bf16.mxu0 %v8520_v13  ;;  %8528 = vst [vmem:[#allocation37_spill] sm:$0xff] %v6734_v32  ;;  %v1593_v57 = vadd.f32 %v5267_v46, %v6585_v59  ;;  %v1753_v26 = vmul.f32 %v6734_v32, %v6734_v32  ;;  %v1213_v6 = vld [vmem:[#allocation3 + $0x128] sm:$0xff] }
 0x2a4   : > { %1672 = vadd.xlane.f32.xlu1 %v6713_v34  ;;  %v2072_v30 = vmul.f32 %v6512_v41, %v2034_v33  ;;  %2645 = vmatprep.mubr.bf16.mxu1 %v8520_v13  ;;  %v2111_v55 = vadd.f32 %v6529_v1, %v2073_v56  ;;  %8527 = vst [vmem:[#allocation36_spill] sm:$0xff] %v6731_v60  ;;  %v5268_v33 = vld [vmem:[%s5592_s24 + $0xb0] sm:$0xff] }
 0x2a5   : > { %v1560_v41 = vmul.f32 %v1483_v9, %v1336_v24  ;;  %v1752_v42 = vmul.f32 %v6731_v60, %v6731_v60  ;;  %v1493_v23 = vpop.permute.xlu0 %1492  ;;  %v6751_v5 = vsub.f32 %v1593_v57, %v6331_v61  ;;  %v1276_v15 = vadd.f32 %v1244_v25, %v1212_v19  ;;  %v1508_v24 = vpop.permute.xlu1 %1507  ;;  %v1214_v9 = vld [vmem:[#allocation3 + $0x138] sm:$0xff]  ;;  %v1311_v57 = vld [vmem:[#allocation3 + $0x142] sm:$0xff] }
 0x2a6   : > { %1798 = vadd.xlane.f32.xlu0 %v1750_v52  ;;  %v2110_v63 = vadd.f32 %v6529_v1, %v2072_v30  ;;  %v1306_v1 = vld [vmem:[#allocation3 + $0x10a] sm:$0xff]  ;;  %v1277_v59 = vadd.f32 %v1213_v6, %v6435_v36  ;;  %v1595_v52 = vadd.f32 %v5269_v2, %v6591_v8  ;;  %v1278_v29 = vadd.f32 %v1246_v3, %v1214_v9 }
 0x2a7   : > { %v1592_v50 = vadd.f32 %v5266_v53, %v1560_v41  ;;  %v1338_v4 = vadd.f32 %v1306_v1, %v1274_v22  ;;  %8530 = vst [vmem:[#allocation39_spill] sm:$0xff] %v6751_v5  ;;  %v1755_v61 = vmul.f32 %v6751_v5, %v6751_v5  ;;  %v1309_v36 = vld [vmem:[#allocation3 + $0x12a] sm:$0xff]  ;;  %v1310_v53 = vld [vmem:[#allocation3 + $0x13a] sm:$0xff] }
 0x2a8   : > { %1800 = vadd.xlane.f32.xlu1 %v1751_v51  ;;  %v2136_v18 = vpack.c.bf16 %v2111_v55, %v2110_v63  ;;  %v1341_v54 = vadd.f32 %v1309_v36, %v1277_v59  ;;  %v1215_v55 = vld [vmem:[#allocation3 + $0x140] sm:$0xff]  ;;  %v6767_v8 = vsub.f32 %v1595_v52, %v6372_v27  ;;  %v5273_v52 = vld [vmem:[%s5592_s24 + $0xd8] sm:$0xff]  ;;  %v1250_v36 = vld [vmem:[#allocation3 + $0x169] sm:$0xff] }
 0x2a9   : > { %v6748_v48 = vsub.f32 %v1592_v50, %v6351_v28  ;;  %v1562_v0 = vmul.f32 %v1493_v23, %v1338_v4  ;;  %v1308_v28 = vld [vmem:[#allocation3 + $0x122] sm:$0xff]  ;;  %v1503_v20 = vpop.permute.xlu0 %1502  ;;  %v1279_v41 = vadd.f32 %v1215_v55, %v6452_v11  ;;  %v1342_v23 = vadd.f32 %v1310_v53, %v1278_v29  ;;  %v1518_v46 = vpop.permute.xlu1 %1517  ;;  %v1216_v11 = vld [vmem:[#allocation3 + $0x150] sm:$0xff] }
 0x2aa   : > { %1674 = vadd.xlane.f32.xlu0 %v6731_v60  ;;  %2453 = vmatmul.mubr.bf16.gmra.mxu0 %v2136_v18  ;;  %v1340_v30 = vadd.f32 %v1308_v28, %v1276_v15  ;;  %8532 = vst [vmem:[#allocation41_spill] sm:$0xff] %v6767_v8  ;;  %v1565_v37 = vmul.f32 %v1508_v24, %v1341_v54  ;;  %v1248_v4 = vld [vmem:[#allocation3 + $0x151] sm:$0xff]  ;;  %v1313_v28 = vld [vmem:[#allocation3 + $0x15a] sm:$0xff] }
 0x2ab   : > { %2646 = vmatmul.mubr.bf16.gmra.mxu1 %v2136_v18  ;;  %2462 = vmatprep.mubr.bf16.mxu0 %v8520_v13  ;;  %8529 = vst [vmem:[#allocation38_spill] sm:$0xff] %v6748_v48  ;;  %v1594_v56 = vadd.f32 %v5268_v33, %v1562_v0  ;;  %v1754_v45 = vmul.f32 %v6748_v48, %v6748_v48  ;;  %v5270_v18 = vld [vmem:[%s5592_s24 + $0xc0] sm:$0xff]  ;;  %v1217_v0 = vld [vmem:[#allocation3 + $0x158] sm:$0xff] }
 0x2ac   : > { %1676 = vadd.xlane.f32.xlu1 %v6734_v32  ;;  %2655 = vmatprep.mubr.bf16.mxu1 %v8520_v13  ;;  %v1564_v63 = vmul.f32 %v1503_v20, %v1340_v30  ;;  %v1757_v27 = vmul.f32 %v6767_v8, %v6767_v8  ;;  %v1280_v59 = vadd.f32 %v1248_v4, %v1216_v11  ;;  %v1312_v20 = vld [vmem:[#allocation3 + $0x152] sm:$0xff] }
 0x2ad   : > { %v6764_v51 = vsub.f32 %v1594_v56, %v6385_v47  ;;  %v1513_v50 = vpop.permute.xlu0 %1512  ;;  %v1281_v33 = vadd.f32 %v1217_v0, %v6480_v39  ;;  %v5272_v56 = vld [vmem:[%s5592_s24 + $0xd0] sm:$0xff]  ;;  %v1528_v24 = vpop.permute.xlu1 %1527  ;;  %v1218_v39 = vld [vmem:[#allocation3 + $0x168] sm:$0xff] }
 0x2ae   : > { %1802 = vadd.xlane.f32.xlu0 %v1752_v42  ;;  %v1596_v22 = vadd.f32 %v5270_v18, %v1564_v63  ;;  %v5271_v42 = vld [vmem:[%s5592_s24 + $0xc8] sm:$0xff]  ;;  %v1566_v25 = vmul.f32 %v1513_v50, %v1342_v23  ;;  %v1219_v63 = vld [vmem:[#allocation3 + $0x170] sm:$0xff]  ;;  %v1282_v29 = vadd.f32 %v1250_v36, %v1218_v39 }
 0x2af   : > { %8531 = vst [vmem:[#allocation40_spill] sm:$0xff] %v6764_v51  ;;  %v1756_v47 = vmul.f32 %v6764_v51, %v6764_v51  ;;  %v1597_v1 = vadd.f32 %v5271_v42, %v1565_v37  ;;  %v1345_v9 = vadd.f32 %v1313_v28, %v1281_v33  ;;  %v1283_v18 = vadd.f32 %v1219_v63, %v6477_v62  ;;  %v1315_v53 = vld [vmem:[#allocation3 + $0x172] sm:$0xff]  ;;  %v5275_v42 = vld [vmem:[%s5592_s24 + $0xe8] sm:$0xff] }
 0x2b0   : > { %1804 = vadd.xlane.f32.xlu1 %v1753_v26  ;;  %v1343_v26 = vadd.f32 %v1311_v57, %v1279_v41  ;;  %v6779_v19 = vsub.f32 %v1596_v22, %v6414_v43  ;;  %v1314_v41 = vld [vmem:[#allocation3 + $0x16a] sm:$0xff]  ;;  %v5274_v22 = vld [vmem:[%s5592_s24 + $0xe0] sm:$0xff]  ;;  %v8539_v33 = vld [vmem:[#allocation27_spill] sm:$0xff] }
 0x2b1   : > { %v6782_v6 = vsub.f32 %v1597_v1, %v6401_v12  ;;  %v1523_v2 = vpop.permute.xlu0 %1522  ;;  %v1344_v12 = vadd.f32 %v1312_v20, %v1280_v59  ;;  %v1569_v37 = vmul.f32 %v1528_v24, %v1345_v9  ;;  %v1346_v1 = vadd.f32 %v1314_v41, %v1282_v29  ;;  %v4814_v20 = vld [vmem:[#allocation7 + $0x78] sm:$0xff]   ;;  %v4820_v24 = vld [vmem:[#allocation7 + $0x30] sm:$0xff]   ;;  %v4822_v36 = vld [vmem:[#allocation7 + $0x68] sm:$0xff]  }
 0x2b2   : > { %1678 = vadd.xlane.f32.xlu0 %v6748_v48  ;;  %8533 = vst [vmem:[#allocation42_spill] sm:$0xff] %v6779_v19  ;;  %v1567_v15 = vmul.f32 %v1518_v46, %v1343_v26  ;;  %v1758_v43 = vmul.f32 %v6779_v19, %v6779_v19  ;;  %v1347_v62 = vadd.f32 %v1315_v53, %v1283_v18  ;;  %v5276_v26 = vld [vmem:[%s5592_s24 + $0xf0] sm:$0xff]  ;;  %v4823_v9 = vld [vmem:[#allocation7 + $0xe8] sm:$0xff]   ;;  %v4827_v29 = vld [vmem:[#allocation7 + $0xe0] sm:$0xff]   ;;  %v2394_v53 = vpop.f32.mrf.mxu0 }
 0x2b3   : > { %8534 = vst [vmem:[#allocation43_spill] sm:$0xff] %v6782_v6  ;;  %v1568_v54 = vmul.f32 %v1523_v2, %v1344_v12  ;;  %v4815_v2 = vld [vmem:[#allocation7 + $0xf8] sm:$0xff]   ;;  %4475 = vmatprep.subr.bf16.mxu0 %v4814_v20  ;;  %v4818_v12 = vld [vmem:[#allocation7 + $0x70] sm:$0xff]   ;;  %v4825_v63 = vld [vmem:[#allocation7 + $0xa8] sm:$0xff]  }
 0x2b4   : > { %1680 = vadd.xlane.f32.xlu1 %v6751_v5  ;;  %v1599_v30 = vadd.f32 %v5273_v52, %v1567_v15  ;;  %v5277_v15 = vld [vmem:[%s5592_s24 + $0xf8] sm:$0xff]  ;;  %4587 = vmatprep.subr.bf16.mxu1 %v4815_v2  ;;  %v4821_v39 = vld [vmem:[#allocation7 + $0xb0] sm:$0xff]   ;;  %v4828_v41 = vld [vmem:[#allocation7 + $0x20] sm:$0xff]   ;;  %s4292_s24 = scalar_lea.sflag [#allocation6], %s5586_s20 }
 0x2b5   : > { %v1533_v50 = vpop.permute.xlu0 %1532  ;;  %v4816_v52 = vld [vmem:[#allocation7 + $0x38] sm:$0xff]   ;;  %v4829_v18 = vld [vmem:[#allocation7 + $0xa0] sm:$0xff]  }
 0x2b6   : > { %1806 = vadd.xlane.f32.xlu0 %v1754_v45  ;;  %v1598_v45 = vadd.f32 %v5272_v56, %v1566_v25  ;;  %v6797_v55 = vsub.f32 %v1599_v30, %v6427_v17  ;;  %v1601_v17 = vadd.f32 %v5275_v42, %v1569_v37  ;;  %v1570_v57 = vmul.f32 %v1533_v50, %v1346_v1  ;;  %v4817_v30 = vld [vmem:[#allocation7 + $0xb8] sm:$0xff]   ;;  %v4826_v37 = vld [vmem:[#allocation7 + $0x60] sm:$0xff]   ;;  %v2587_v50 = vpop.f32.mrf.mxu1  ;;  %v4834_v1 = vld [vmem:[#allocation7 + $0x50] sm:$0xff]  }
 0x2b7   : > { %4476 = vmatpush3.bf16.msra.mxu0 %v4816_v52  ;;  %4588 = vmatpush3.bf16.msra.mxu1 %v4817_v30  ;;  %v4832_v42 = vld [vmem:[#allocation7 + $0x18] sm:$0xff]   ;;  %v4840_v52 = vld [vmem:[#allocation7 + $0x8] sm:$0xff]  }
 0x2b8   : > { %1808 = vadd.xlane.f32.xlu1 %v1755_v61  ;;  %v1759_v61 = vmul.f32 %v6782_v6, %v6782_v6  ;;  %v6794_v3 = vsub.f32 %v1598_v45, %v6432_v44  ;;  %8536 = vst [vmem:[#allocation45_spill] sm:$0xff] %v6797_v55  ;;  %v1761_v23 = vmul.f32 %v6797_v55, %v6797_v55  ;;  %v4841_v30 = vld [vmem:[#allocation7 + $0x88] sm:$0xff]  }
 0x2b9   : > { %v6812_v11 = vsub.f32 %v1601_v17, %v6446_v7  ;;  %v1602_v25 = vadd.f32 %v5276_v26, %v1570_v57  ;;  %v8541_v7 = vld [vmem:[#allocation26_spill] sm:$0xff]  ;;  %4477 = vmatprep.subr.bf16.mxu0 %v4818_v12  ;;  %v4833_v17 = vld [vmem:[#allocation7 + $0x98] sm:$0xff]   ;;  %v6838_v26 = vpop.f32.mrf.mxu1 }
 0x2ba   : > { %1682 = vadd.xlane.f32.xlu0 %v6764_v51  ;;  %8535 = vst [vmem:[#allocation44_spill] sm:$0xff] %v6794_v3  ;;  %v1760_v44 = vmul.f32 %v6794_v3, %v6794_v3  ;;  %v4837_v57 = vld [vmem:[#allocation7 + $0x90] sm:$0xff]  }
 0x2bb   : > { %8538 = vst [vmem:[#allocation47_spill] sm:$0xff] %v6812_v11  ;;  %v6823_v56 = vsub.f32 %v1602_v25, %v8539_v33  ;;  %4478 = vmatpush3.bf16.msra.mxu0 %v4820_v24  ;;  %v4838_v33 = vld [vmem:[#allocation7 + $0x48] sm:$0xff]  }
 0x2bc   : > { %1684 = vadd.xlane.f32.xlu1 %v6767_v8  ;;  %4479 = vmatprep.subr.bf16.mxu0 %v4822_v36  ;;  %v4843_v36 = vld [vmem:[#allocation7 + $0xc0] sm:$0xff]  }
 0x2bd   : > { %8540 = vst [vmem:[#allocation27_spill] sm:$0xff] %v6823_v56 }
 0x2be   : > { %1810 = vadd.xlane.f32.xlu0 %v1756_v47  ;;  %v1600_v47 = vadd.f32 %v5274_v22, %v1568_v54  ;;  %v4824_v54 = vld [vmem:[#allocation7 + $0x28] sm:$0xff]   ;;  %v2180_v22 = vlaneseq }
 0x2bf   : > { %4480 = vmatpush3.bf16.msra.mxu0 %v4824_v54 }
 0x2c0   : > { %1812 = vadd.xlane.f32.xlu1 %v1757_v27  ;;  %v1538_v27 = vpop.permute.xlu1 %1537  ;;  %v6809_v46 = vsub.f32 %v1600_v47, %v6459_v58  ;;  %v1763_v58 = vmul.f32 %v6812_v11, %v6812_v11  ;;  %4481 = vmatprep.subr.bf16.mxu0 %v4826_v37  ;;  %v4830_v47 = vld [vmem:[#allocation7 + $0x58] sm:$0xff]   ;;  %v4845_v37 = vld [vmem:[#allocation7 + $0x80] sm:$0xff]  }
 0x2c1   : > { %v1571_v4 = vmul.f32 %v1538_v27, %v1347_v62  ;;  %v4835_v27 = vld [vmem:[#allocation7 + $0xd0] sm:$0xff]  }
 0x2c2   : > { %1686 = vadd.xlane.f32.xlu0 %v6779_v19  ;;  %8537 = vst [vmem:[#allocation46_spill] sm:$0xff] %v6809_v46  ;;  %v1762_v0 = vmul.f32 %v6809_v46, %v6809_v46  ;;  %v4836_v62 = vld [vmem:[#allocation7 + $0x10] sm:$0xff]  }
 0x2c3   : > { %v1603_v59 = vadd.f32 %v5277_v15, %v1571_v4  ;;  %4482 = vmatpush3.bf16.msra.mxu0 %v4828_v41  ;;  %v6836_v4 = vpop.f32.mrf.mxu0 }
 0x2c4   : > { %1688 = vadd.xlane.f32.xlu1 %v6782_v6  ;;  %4483 = vmatprep.subr.bf16.mxu0 %v4830_v47 }
 0x2c5   : > { %v6826_v45 = vsub.f32 %v1603_v59, %v8541_v7  ;;  %v2178_v59 = vld [vmem:[%s8412_s7] sm:$0xf]  ;;  %v4839_v7 = vld [vmem:[#allocation7 + $0xc8] sm:$0xff]  }
 0x2c6   : > { %1814 = vadd.xlane.f32.xlu0 %v1758_v43  ;;  %v1764_v43 = vmul.f32 %v6823_v56, %v6823_v56 }
 0x2c7   : > { %8542 = vst [vmem:[#allocation26_spill] sm:$0xff] %v6826_v45  ;;  %v1765_v28 = vmul.f32 %v6826_v45, %v6826_v45  ;;  %4484 = vmatpush3.bf16.msra.mxu0 %v4832_v42 }
 0x2c8   : > { %1816 = vadd.xlane.f32.xlu1 %v1759_v61  ;;  %v4819_v61 = vld [vmem:[#allocation7 + $0xf0] sm:$0xff]   ;;  %4485 = vmatprep.subr.bf16.mxu0 %v4834_v1 }
 0x2c9   : > { %4589 = vmatprep.subr.bf16.mxu1 %v4819_v61 }
 0x2ca   : > { %1690 = vadd.xlane.f32.xlu0 %v6794_v3  ;;  %4590 = vmatpush3.bf16.msra.mxu1 %v4821_v39  ;;  %v4842_v39 = vld [vmem:[#allocation7 + $0x40] sm:$0xff]  }
 0x2cb   : > { %4591 = vmatprep.subr.bf16.mxu1 %v4823_v9  ;;  %4486 = vmatpush3.bf16.msra.mxu0 %v4836_v62 }
 0x2cc   : > { %1692 = vadd.xlane.f32.xlu1 %v6797_v55  ;;  %4487 = vmatprep.subr.bf16.mxu0 %v4838_v33 }
 0x2ce   : > { %1818 = vadd.xlane.f32.xlu0 %v1760_v44  ;;  %4592 = vmatpush3.bf16.msra.mxu1 %v4825_v63  ;;  %v4831_v44 = vld [vmem:[#allocation7 + $0xd8] sm:$0xff]   ;;  %v4844_v63 = vld [vmem:[#allocation7] sm:$0xff]  }
 0x2cf   : > { %4593 = vmatprep.subr.bf16.mxu1 %v4827_v29  ;;  %4488 = vmatpush3.bf16.msra.mxu0 %v4840_v52 }
 0x2d0   : > { %1820 = vadd.xlane.f32.xlu1 %v1761_v23  ;;  %v6834_v23 = vshrl.u32 %v2180_v22, 7  ;;  %4489 = vmatprep.subr.bf16.mxu0 %v4842_v39 }
 0x2d2   : > { %1694 = vadd.xlane.f32.xlu0 %v6809_v46  ;;  %4594 = vmatpush3.bf16.msra.mxu1 %v4829_v18  ;;  %v2182_v25 = vsub.s32 0, %v6834_v23  ;;  %v2186_v29 = vsub.s32 1, %v6834_v23 }
 0x2d3   : > { %4595 = vmatprep.subr.bf16.mxu1 %v4831_v44  ;;  %4490 = vmatpush3.bf16.msra.mxu0 %v4844_v63 }
 0x2d4   : > { %1696 = vadd.xlane.f32.xlu1 %v6812_v11  ;;  %v6849_v12 = vrot.slane %v2178_v59, %v2182_v25 }
 0x2d6   : > { %1822 = vadd.xlane.f32.xlu0 %v1762_v0  ;;  %4596 = vmatpush3.bf16.msra.mxu1 %v4833_v17  ;;  %v2190_v0 = vsub.s32 2, %v6834_v23  ;;  %v2395_v17 = vadd.f32 %v2394_v53, %v6849_v12 }
 0x2d7   : > { %4597 = vmatprep.subr.bf16.mxu1 %v4835_v27  ;;  %v2194_v27 = vsub.s32 3, %v6834_v23 }
 0x2d8   : > { %1824 = vadd.xlane.f32.xlu1 %v1763_v58  ;;  %v6851_v61 = vrot.slane %v2178_v59, %v2190_v0 }
 0x2da   : > { %1698 = vadd.xlane.f32.xlu0 %v6823_v56  ;;  %4598 = vmatpush3.bf16.msra.mxu1 %v4837_v57  ;;  %v2588_v1 = vadd.f32 %v2587_v50, %v6851_v61 }
 0x2db   : > { %4599 = vmatprep.subr.bf16.mxu1 %v4839_v7 }
 0x2dc   : > { %1700 = vadd.xlane.f32.xlu1 %v6826_v45 }
 0x2de   : > { %1826 = vadd.xlane.f32.xlu0 %v1764_v43  ;;  %v2398_v43 = vpop.f32.mrf.mxu0  ;;  %4600 = vmatpush3.bf16.msra.mxu1 %v4841_v30 }
 0x2df   : > { %v2399_v41 = vadd.f32 %v2398_v43, %v6849_v12  ;;  %4601 = vmatprep.subr.bf16.mxu1 %v4843_v36 }
 0x2e0   : > { %1828 = vadd.xlane.f32.xlu1 %v1765_v28  ;;  %v2591_v28 = vpop.f32.mrf.mxu1  ;;  %v2400_v57 = vpop.f32.mrf.mxu0 }
 0x2e1   : > { %v2592_v18 = vadd.f32 %v2591_v28, %v6851_v61  ;;  %v6867_v33 = vpack.c.bf16 %v2399_v41, %v2395_v17  ;;  %v6871_v28 = vrot.slane %v2178_v59, %v2194_v27 }
 0x2e2   : > { %v1669_v15 = vpop.xlane.xlu0 %1668  ;;  %4602 = vmatpush3.bf16.msra.mxu1 %v4845_v37  ;;  %v2593_v53 = vpop.f32.mrf.mxu1 }
 0x2e3   : > { %v6845_v20 = vmul.f32 0.0078125, %v1669_v15  ;;  %v6869_v7 = vpack.c.bf16 %v2592_v18, %v2588_v1  ;;  %8543 = vst [vmem:[#allocation48_spill] sm:$0xff] %v6871_v28 }
 0x2e5   : > { %v1877_v47 = vmul.f32 %v6845_v20, %v6845_v20  ;;  %v2812_v63 = vmul.bf16 1027030327, %v6869_v7 }
 0x325   : > { %v1667_v58 = vpop.xlane.xlu1 %1666 }
 0x326   : > { %v6847_v2 = vmul.f32 0.0078125, %v1667_v58  ;;  %v6865_v58 = vrot.slane %v2178_v59, %v2186_v29  ;;  %v2594_v59 = vadd.f32 %v2593_v53, %v6871_v28  ;;  %v2597_v29 = vpop.f32.mrf.mxu1 }
 0x327   : > { %v1795_v24 = vpop.xlane.xlu0 %1794 }
 0x328   : > { %v1876_v9 = vmul.f32 %v6847_v2, %v6847_v2  ;;  %v1844_v54 = vmul.f32 0.0078125, %v1795_v24  ;;  %v2401_v23 = vadd.f32 %v2400_v57, %v6865_v58  ;;  %v2404_v24 = vpop.f32.mrf.mxu0  ;;  %v2876_v57 = vmul.bf16 %v2812_v63, %v6869_v7 }
 0x329   : > { %v1797_v22 = vpop.xlane.xlu1 %1796 }
 0x32a   : > { %v1908_v44 = vsub.f32 %v1844_v54, %v1876_v9  ;;  %v1845_v42 = vmul.f32 0.0078125, %v1797_v22  ;;  %v2397_v9 = vadd.f32 %v6836_v4, %v6865_v58  ;;  %v2810_v54 = vmul.bf16 1027030327, %v6867_v33  ;;  %v2406_v4 = vpop.f32.mrf.mxu0 }
 0x32b   : > { %v1671_v62 = vpop.xlane.xlu0 %1670 }
 0x32c   : > { %v1972_v25 = vadd.f32 1e-05, %v1908_v44  ;;  %v1909_v0 = vsub.f32 %v1845_v42, %v1877_v47  ;;  %v6863_v15 = vmul.f32 0.0078125, %v1671_v62  ;;  %v2590_v47 = vadd.f32 %v6838_v26, %v6871_v28 }
 0x32d   : > { %v1673_v43 = vpop.xlane.xlu1 %1672  ;;  %v6887_v44 = vpack.c.bf16 %v2401_v23, %v2397_v9  ;;  %v2874_v62 = vmul.bf16 %v2810_v54, %v6867_v33  ;;  %v2598_v23 = vadd.f32 %v2597_v29, %v6851_v61 }
 0x32e   : > { %4938 = vrsqrt.f32 %v1972_v25  ;;  %v1973_v50 = vadd.f32 1e-05, %v1909_v0  ;;  %v6874_v52 = vmul.f32 0.0078125, %v1673_v43  ;;  %v1878_v39 = vmul.f32 %v6863_v15, %v6863_v15  ;;  %v2599_v43 = vpop.f32.mrf.mxu1 }
 0x32f   : > { %v1799_v30 = vpop.xlane.xlu0 %1798  ;;  %v6893_v25 = vpack.c.bf16 %v2594_v59, %v2590_v47  ;;  %v2811_v26 = vmul.bf16 1027030327, %v6887_v44  ;;  %v2938_v59 = vmul.bf16 %v2874_v62, %v6867_v33  ;;  %v6913_v62 = vadd.f32 %v2599_v43, %v6871_v28 }
 0x330   : > { %4940 = vrsqrt.f32 %v1973_v50  ;;  %v1846_v36 = vmul.f32 0.0078125, %v1799_v30  ;;  %v1879_v41 = vmul.f32 %v6874_v52, %v6874_v52  ;;  %v2405_v50 = vadd.f32 %v2404_v24, %v6849_v12 }
 0x331   : > { %v1801_v37 = vpop.xlane.xlu1 %1800  ;;  %v2407_v24 = vadd.f32 %v2406_v4, %v6865_v58  ;;  %v1941_v43 = vsub.f32 %v6639_v35, %v6845_v20  ;;  %v3002_v40 = vadd.bf16 %v2938_v59, %v6867_v33  ;;  %v6932_v20 = vld [vmem:[%s8409_s4] ss:$0 sm:$0xff]  ;;  %v1943_v31 = vsub.f32 %v6713_v34, %v6874_v52 }
 0x332   : > { %v1910_v18 = vsub.f32 %v1846_v36, %v1878_v39  ;;  %v1847_v22 = vmul.f32 0.0078125, %v1801_v37  ;;  %v2408_v36 = vpop.f32.mrf.mxu0  ;;  %v2940_v37 = vmul.bf16 %v2876_v57, %v6869_v7 }
 0x333   : > { %v1675_v42 = vpop.xlane.xlu0 %1674  ;;  %v2409_v57 = vadd.f32 %v2408_v36, %v6849_v12 }
 0x334   : > { %v1974_v17 = vadd.f32 1e-05, %v1910_v18  ;;  %v1911_v1 = vsub.f32 %v1847_v22, %v1879_v41  ;;  %v6889_v27 = vmul.f32 0.0078125, %v1675_v42  ;;  %v2813_v41 = vmul.bf16 1027030327, %v6893_v25  ;;  %v2601_v18 = vpop.f32.mrf.mxu1 }
 0x335   : > { %v1677_v0 = vpop.xlane.xlu1 %1676  ;;  %v1940_v22 = vsub.f32 %v6689_v49, %v6847_v2  ;;  %v6935_v36 = vpack.c.bf16 %v2409_v57, %v2405_v50 }
 0x336   : > { %4942 = vrsqrt.f32 %v1974_v17  ;;  %v1975_v53 = vadd.f32 1e-05, %v1911_v1  ;;  %v6898_v30 = vmul.f32 0.0078125, %v1677_v0  ;;  %v1880_v9 = vmul.f32 %v6889_v27, %v6889_v27 }
 0x337   : > { %v1803_v39 = vpop.xlane.xlu0 %1802  ;;  %v2875_v0 = vmul.bf16 %v2811_v26, %v6887_v44 }
 0x338   : > { %4944 = vrsqrt.f32 %v1975_v53  ;;  %v1848_v54 = vmul.f32 0.0078125, %v1803_v39  ;;  %v1881_v47 = vmul.f32 %v6898_v30, %v6898_v30 }
 0x339   : > { %v1805_v29 = vpop.xlane.xlu1 %1804 }
 0x33a   : > { %v1912_v42 = vsub.f32 %v1848_v54, %v1880_v9  ;;  %v1849_v17 = vmul.f32 0.0078125, %v1805_v29  ;;  %v2877_v9 = vmul.bf16 %v2813_v41, %v6893_v25  ;;  %v2602_v54 = vadd.f32 %v2601_v18, %v6851_v61  ;;  %v2410_v29 = vpop.f32.mrf.mxu0 }
 0x33b   : > { %v4939_v1 = vpop.eup %4938  ;;  %v1679_v53 = vpop.xlane.xlu0 %1678 }
 0x33c   : > { %v1976_v39 = vadd.f32 1e-05, %v1912_v42  ;;  %v1913_v63 = vsub.f32 %v1849_v17, %v1881_v47  ;;  %v6917_v21 = vmul.f32 0.0078125, %v1679_v53  ;;  %v2036_v2 = vmul.f32 %v4939_v1, %v1940_v22  ;;  %v2603_v17 = vpop.f32.mrf.mxu1 }
 0x33d   : > { %v4941_v49 = vpop.eup %4940  ;;  %v1681_v26 = vpop.xlane.xlu1 %1680  ;;  %v3004_v42 = vadd.bf16 %v2940_v37, %v6869_v7  ;;  %v2939_v22 = vmul.bf16 %v2875_v0, %v6887_v44  ;;  %v2941_v37 = vmul.bf16 %v2877_v9, %v6893_v25  ;;  %v6940_v0 = vpack.c.bf16 %v2602_v54, %v2598_v23 }
 0x33e   : > { %4946 = vrsqrt.f32 %v1976_v39  ;;  %v1977_v47 = vadd.f32 1e-05, %v1913_v63  ;;  %v6927_v1 = vmul.f32 0.0078125, %v1681_v26  ;;  %v2037_v18 = vmul.f32 %v4941_v49, %v1941_v43  ;;  %v2414_v39 = vpop.f32.mrf.mxu0  ;;  %v6949_v23 = vpop.f32.mrf.mxu1 }
 0x33f   : > { %v1807_v41 = vpop.xlane.xlu0 %1806  ;;  %v2074_v53 = vmul.f32 %v6932_v20, %v2036_v2  ;;  %v1882_v63 = vmul.f32 %v6917_v21, %v6917_v21  ;;  %v2411_v49 = vadd.f32 %v2410_v29, %v6865_v58  ;;  %v1942_v2 = vsub.f32 %v6710_v14, %v6863_v15  ;;  %v6956_v29 = vld [vmem:[%s8410_s5] ss:$0 sm:$0xff] }
 0x340   : > { %4948 = vrsqrt.f32 %v1977_v47  ;;  %v1850_v59 = vmul.f32 0.0078125, %v1807_v41  ;;  %v2075_v26 = vmul.f32 %v6932_v20, %v2037_v18  ;;  %v1883_v50 = vmul.f32 %v6927_v1, %v6927_v1  ;;  %v6963_v35 = vpop.f32.mrf.mxu0 }
 0x341   : > { %v1809_v43 = vpop.xlane.xlu1 %1808  ;;  %v3066_v41 = vmul.bf16 1061961548, %v3002_v40  ;;  %v2604_v9 = vadd.f32 %v2603_v17, %v6871_v28  ;;  %v2112_v15 = vadd.f32 %v6956_v29, %v2074_v53  ;;  %v3068_v14 = vmul.bf16 1061961548, %v3004_v42 }
 0x342   : > { %v1914_v57 = vsub.f32 %v1850_v59, %v1882_v63  ;;  %v1851_v47 = vmul.f32 0.0078125, %v1809_v43  ;;  %v2113_v18 = vadd.f32 %v6956_v29, %v2075_v26  ;;  %v2814_v63 = vmul.bf16 1027030327, %v6935_v36 }
 0x343   : > { %v4943_v4 = vpop.eup %4942  ;;  %v6951_v54 = vpop.xlane.xlu0 %1682  ;;  %v6961_v17 = vpack.c.bf16 %v2411_v49, %v2407_v24  ;;  %v3003_v53 = vadd.bf16 %v2939_v22, %v6887_v44  ;;  %v3005_v42 = vadd.bf16 %v2941_v37, %v6893_v25  ;;  %v2816_v26 = vmul.bf16 1027030327, %v6940_v0 }
 0x344   : > { %v1915_v59 = vsub.f32 %v1851_v47, %v1883_v50  ;;  %v2038_v40 = vmul.f32 %v4943_v4, %v1942_v2  ;;  %v1978_v10 = vadd.f32 1e-05, %v1914_v57  ;;  %v2137_v38 = vpack.c.bf16 %v2113_v18, %v2112_v15  ;;  %v6975_v49 = vpop.f32.mrf.mxu1  ;;  %v2418_v37 = vpop.f32.mrf.mxu0 }
 0x345   : > { %v4945_v43 = vpop.eup %4944  ;;  %v6967_v16 = vpop.xlane.xlu1 %1684  ;;  %v3130_v4 = vunpack.c.l.bf16 %v3066_v41  ;;  %v6973_v24 = vpack.c.bf16 %v2604_v9, %v6913_v62  ;;  %v3134_v57 = vunpack.c.h.bf16 %v3066_v41  ;;  %v3132_v47 = vunpack.c.l.bf16 %v3068_v14 }
 0x346   : > { %v1979_v50 = vadd.f32 1e-05, %v1915_v59  ;;  %2463 = vmatmul.mubr.bf16.gmra.mxu0 %v2137_v38  ;;  %2656 = vmatmul.mubr.bf16.gmra.mxu1 %v2137_v38  ;;  %v2039_v52 = vmul.f32 %v4945_v43, %v1943_v31  ;;  %v2076_v2 = vmul.f32 %v6932_v20, %v2038_v40  ;;  %v3136_v15 = vunpack.c.h.bf16 %v3068_v14  ;;  %v2611_v43 = vpop.f32.mrf.mxu1 }
 0x347   : > { %8544 = vst [vmem:[#allocation49_spill] sm:$0xff] %v6973_v24  ;;  %2472 = vmatprep.mubr.bf16.mxu0 %v8520_v13  ;;  %2665 = vmatprep.mubr.bf16.mxu1 %v8520_v13  ;;  %v2878_v22 = vmul.bf16 %v2814_v63, %v6935_v36  ;;  %v2815_v62 = vmul.bf16 1027030327, %v6961_v17  ;;  %v6982_v9 = vpop.xlane.xlu0 %1810  ;;  %v3067_v31 = vmul.bf16 1061961548, %v3003_v53  ;;  %v2880_v41 = vmul.bf16 %v2816_v26, %v6940_v0 }
 0x348   : > { %4950 = vrsqrt.f32 %v1979_v50  ;;  %v2077_v38 = vmul.f32 %v6932_v20, %v2039_v52  ;;  %v3069_v18 = vmul.bf16 1061961548, %v3005_v42  ;;  %v1944_v14 = vsub.f32 %v6731_v60, %v6889_v27 }
 0x349   : > { %4952 = vrsqrt.f32 %v1978_v10  ;;  %v6988_v59 = vpop.xlane.xlu1 %1812  ;;  %v2817_v63 = vmul.bf16 1027030327, %v6973_v24  ;;  %v2114_v10 = vadd.f32 %v6956_v29, %v2076_v2  ;;  %v2415_v53 = vadd.f32 %v2414_v39, %v6849_v12 }
 0x34a   : > { %4954 = vtanh.f32 %v3130_v4  ;;  %v2115_v50 = vadd.f32 %v6956_v29, %v2077_v38  ;;  %v2419_v42 = vadd.f32 %v2418_v37, %v6849_v12  ;;  %v2942_v27 = vmul.bf16 %v2878_v22, %v6935_v36  ;;  %v2613_v37 = vpop.f32.mrf.mxu1 }
 0x34b   : > { %v4947_v40 = vpop.eup %4946  ;;  %4956 = vtanh.f32 %v3134_v57  ;;  %v2879_v60 = vmul.bf16 %v2815_v62, %v6961_v17  ;;  %v1945_v4 = vsub.f32 %v6734_v32, %v6898_v30  ;;  %v3131_v56 = vunpack.c.l.bf16 %v3067_v31  ;;  %v2420_v57 = vpop.f32.mrf.mxu0 }
 0x34c   : > { %v2040_v26 = vmul.f32 %v4947_v40, %v1944_v14  ;;  %v2138_v34 = vpack.c.bf16 %v2115_v50, %v2114_v10  ;;  %v3135_v45 = vunpack.c.h.bf16 %v3067_v31  ;;  %v3133_v2 = vunpack.c.l.bf16 %v3069_v18  ;;  %v7001_v14 = vpop.xlane.xlu0 %1686 }
 0x34d   : > { %v4949_v52 = vpop.eup %4948  ;;  %v2944_v38 = vmul.bf16 %v2880_v41, %v6940_v0  ;;  %4958 = vtanh.f32 %v3132_v47  ;;  %v2612_v39 = vadd.f32 %v2611_v43, %v6851_v61  ;;  %v3137_v30 = vunpack.c.h.bf16 %v3069_v18  ;;  %v7007_v10 = vpop.xlane.xlu1 %1688 }
 0x34e   : > { %2473 = vmatmul.mubr.bf16.gmra.mxu0 %v2138_v34  ;;  %2666 = vmatmul.mubr.bf16.gmra.mxu1 %v2138_v34  ;;  %v2041_v22 = vmul.f32 %v4949_v52, %v1945_v4  ;;  %v2078_v62 = vmul.f32 %v6932_v20, %v2040_v26  ;;  %4960 = vtanh.f32 %v3136_v15  ;;  %v2881_v40 = vmul.bf16 %v2817_v63, %v6973_v24 }
 0x34f   : > { %v7005_v31 = vpack.c.bf16 %v2419_v42, %v2415_v53  ;;  %2482 = vmatprep.mubr.bf16.mxu0 %v8520_v13  ;;  %2675 = vmatprep.mubr.bf16.mxu1 %v8520_v13  ;;  %v3006_v47 = vadd.bf16 %v2942_v27, %v6935_v36  ;;  %v2943_v41 = vmul.bf16 %v2879_v60, %v6961_v17  ;;  %4962 = vtanh.f32 %v3131_v56 }
 0x350   : > { %v2608_v34 = vadd.f32 %v6949_v23, %v6851_v61  ;;  %v2079_v15 = vmul.f32 %v6932_v20, %v2041_v22  ;;  %v3008_v18 = vadd.bf16 %v2944_v38, %v6940_v0  ;;  %v2421_v63 = vadd.f32 %v2420_v57, %v6865_v58  ;;  %v7032_v38 = vpop.xlane.xlu0 %1814 }
 0x351   : > { %8545 = vst [vmem:[#allocation50_spill] sm:$0xff] %v7005_v31  ;;  %v2614_v43 = vadd.f32 %v2613_v37, %v6871_v28  ;;  %v2417_v50 = vadd.f32 %v6963_v35, %v6865_v58  ;;  %v2116_v42 = vadd.f32 %v6956_v29, %v2078_v62  ;;  %4964 = vtanh.f32 %v3135_v45 }
 0x352   : > { %v7021_v53 = vpack.c.bf16 %v2612_v39, %v2608_v34  ;;  %v2117_v60 = vadd.f32 %v6956_v29, %v2079_v15  ;;  %v2945_v23 = vmul.bf16 %v2881_v40, %v6973_v24  ;;  %v2610_v56 = vadd.f32 %v6975_v49, %v6871_v28  ;;  %v7038_v49 = vpop.xlane.xlu1 %1816 }
 0x353   : > { %v2818_v26 = vmul.bf16 1027030327, %v7005_v31  ;;  %v3070_v27 = vmul.bf16 1061961548, %v3006_v47  ;;  %v3007_v4 = vadd.bf16 %v2943_v41, %v6961_v17  ;;  %v1947_v35 = vsub.f32 %v6751_v5, %v6927_v1  ;;  %v7081_v5 = vpop.f32.mrf.mxu1 }
 0x354   : > { %8546 = vst [vmem:[#allocation51_spill] sm:$0xff] %v7021_v53  ;;  %v2139_v57 = vpack.c.bf16 %v2117_v60, %v2116_v42  ;;  %4966 = vtanh.f32 %v3133_v2  ;;  %v3072_v45 = vmul.bf16 1061961548, %v3008_v18  ;;  %v7034_v37 = vpack.c.bf16 %v2421_v63, %v2417_v50 }
 0x355   : > { %v4951_v52 = vpop.eup %4950  ;;  %v7036_v22 = vpack.c.bf16 %v2614_v43, %v2610_v56  ;;  %v2820_v62 = vmul.bf16 1027030327, %v7021_v53  ;;  %v1946_v40 = vsub.f32 %v6748_v48, %v6917_v21  ;;  %v7044_v47 = vmul.f32 0.0078125, %v6951_v54  ;;  %v7066_v56 = vpop.f32.mrf.mxu0 }
 0x356   : > { %v4953_v39 = vpop.eup %4952  ;;  %8547 = vst [vmem:[#allocation52_spill] sm:$0xff] %v7034_v37  ;;  %2483 = vmatmul.mubr.bf16.gmra.mxu0 %v2139_v57  ;;  %2676 = vmatmul.mubr.bf16.gmra.mxu1 %v2139_v57  ;;  %v2043_v1 = vmul.f32 %v4951_v52, %v1947_v35  ;;  %4968 = vtanh.f32 %v3137_v30  ;;  %v7049_v2 = vadd.bf16 %v2945_v23, %v6973_v24  ;;  %v7053_v15 = vmul.f32 0.0078125, %v6967_v16 }
 0x357   : > { %8548 = vst [vmem:[#allocation53_spill] sm:$0xff] %v7036_v22  ;;  %v7046_v41 = vpop.eup %4954  ;;  %v2882_v34 = vmul.bf16 %v2818_v26, %v7005_v31  ;;  %2492 = vmatprep.mubr.bf16.mxu0 %v8520_v13  ;;  %2685 = vmatprep.mubr.bf16.mxu1 %v8520_v13  ;;  %v3138_v54 = vunpack.c.l.bf16 %v3070_v27  ;;  %v3071_v18 = vmul.bf16 1061961548, %v3007_v4  ;;  %v1852_v63 = vmul.f32 0.0078125, %v6982_v9  ;;  %v7068_v26 = vpop.xlane.xlu0 %1690 }
 0x358   : > { %v7057_v21 = vpop.eup %4956  ;;  %v2042_v43 = vmul.f32 %v4953_v39, %v1946_v40  ;;  %v2819_v30 = vmul.bf16 1027030327, %v7034_v37  ;;  %v2821_v50 = vmul.bf16 1027030327, %v7036_v22  ;;  %v1853_v42 = vmul.f32 0.0078125, %v6988_v59  ;;  %v7087_v3 = vpop.f32.mrf.mxu0 }
 0x359   : > { %v3142_v60 = vunpack.c.h.bf16 %v3070_v27  ;;  %v2884_v16 = vmul.bf16 %v2820_v62, %v7021_v53  ;;  %v1884_v23 = vmul.f32 %v7044_v47, %v7044_v47  ;;  %v2081_v52 = vmul.f32 %v6932_v20, %v2043_v1  ;;  %v7077_v27 = vpop.xlane.xlu1 %1692 }
 0x35a   : > { %v7071_v9 = vpop.eup %4958  ;;  %v3140_v4 = vunpack.c.l.bf16 %v3072_v45  ;;  %v3073_v35 = vmul.bf16 1061961548, %v7049_v2  ;;  %v2946_v57 = vmul.bf16 %v2882_v34, %v7005_v31  ;;  %v1885_v59 = vmul.f32 %v7053_v15, %v7053_v15 }
 0x35b   : > { %v7079_v39 = vpop.eup %4960  ;;  %4970 = vtanh.f32 %v3138_v54  ;;  %v3144_v62 = vunpack.c.h.bf16 %v3072_v45  ;;  %v1916_v40 = vsub.f32 %v1852_v63, %v1884_v23  ;;  %v2080_v1 = vmul.f32 %v6932_v20, %v2042_v43 }
 0x35c   : > { %v3139_v48 = vunpack.c.l.bf16 %v3071_v18  ;;  %v2883_v32 = vmul.bf16 %v2819_v30, %v7034_v37  ;;  %v2885_v2 = vmul.bf16 %v2821_v50, %v7036_v22  ;;  %v1917_v34 = vsub.f32 %v1853_v42, %v1885_v59  ;;  %v4963_v11 = vpop.eup %4962  ;;  %v7092_v50 = vpop.f32.mrf.mxu1 }
 0x35d   : > { %4972 = vtanh.f32 %v3142_v60  ;;  %v3143_v46 = vunpack.c.h.bf16 %v3071_v18  ;;  %v2948_v55 = vmul.bf16 %v2884_v16, %v7021_v53  ;;  %v2119_v45 = vadd.f32 %v6956_v29, %v2081_v52  ;;  %v7094_v42 = vpop.xlane.xlu0 %1818 }
 0x35e   : > { %4974 = vtanh.f32 %v3140_v4  ;;  %v3141_v54 = vunpack.c.l.bf16 %v3073_v35  ;;  %v3010_v63 = vadd.bf16 %v2946_v57, %v7005_v31  ;;  %v4965_v23 = vpop.eup %4964  ;;  %v1980_v30 = vadd.f32 1e-05, %v1916_v40  ;;  %v7100_v57 = vpop.xlane.xlu1 %1820 }
 0x35f   : > { %4976 = vtanh.f32 %v3144_v62  ;;  %v2118_v18 = vadd.f32 %v6956_v29, %v2080_v1  ;;  %v2947_v16 = vmul.bf16 %v2883_v32, %v7034_v37  ;;  %v2949_v52 = vmul.bf16 %v2885_v2, %v7036_v22  ;;  %v7103_v40 = vpop.f32.mrf.mxu0 }
 0x360   : > { %4978 = vtanh.f32 %v3139_v48  ;;  %v1981_v4 = vadd.f32 1e-05, %v1917_v34  ;;  %v3012_v62 = vadd.bf16 %v2948_v55, %v7021_v53  ;;  %v3450_v1 = vpack.c.bf16 %v7057_v21, %v7046_v41  ;;  %v7110_v34 = vpop.f32.mrf.mxu1 }
 0x361   : > { %v4967_v59 = vpop.eup %4966  ;;  %4980 = vtanh.f32 %v3143_v46  ;;  %v2140_v43 = vpack.c.bf16 %v2119_v45, %v2118_v18  ;;  %v3145_v31 = vunpack.c.h.bf16 %v3073_v35  ;;  %v3074_v48 = vmul.bf16 1061961548, %v3010_v63 }
 0x362   : > { %4982 = vtanh.f32 %v3141_v54  ;;  %v3451_v60 = vpack.c.bf16 %v4965_v23, %v4963_v11  ;;  %v7108_v2 = vmul.f32 0.0078125, %v7001_v14  ;;  %v3452_v55 = vpack.c.bf16 %v7079_v39, %v7071_v9  ;;  %v7123_v54 = vpop.f32.mrf.mxu0  ;;  %v7125_v9 = vpop.xlane.xlu0 %1694 }
 0x363   : > { %v4969_v32 = vpop.eup %4968  ;;  %4984 = vrsqrt.f32 %v1980_v30  ;;  %2493 = vmatmul.mubr.bf16.gmra.mxu0 %v2140_v43  ;;  %v3011_v45 = vadd.bf16 %v2947_v16, %v7034_v37  ;;  %v3013_v41 = vadd.bf16 %v2949_v52, %v7036_v22  ;;  %2686 = vmatmul.mubr.bf16.gmra.mxu1 %v2140_v43  ;;  %v3076_v14 = vmul.bf16 1061961548, %v3012_v62  ;;  %v7128_v23 = vpop.xlane.xlu1 %1696 }
 0x364   : > { %4986 = vrsqrt.f32 %v1981_v4  ;;  %2502 = vmatprep.mubr.bf16.mxu0 %v8520_v13  ;;  %v7120_v21 = vmul.f32 0.0078125, %v7007_v10  ;;  %v1854_v35 = vmul.f32 0.0078125, %v7032_v38  ;;  %2695 = vmatprep.mubr.bf16.mxu1 %v8520_v13  ;;  %v3514_v39 = vadd.bf16 1065369472, %v3450_v1  ;;  %v7134_v52 = vpop.f32.mrf.mxu1 }
 0x365   : > { %v3146_v63 = vunpack.c.l.bf16 %v3074_v48  ;;  %v3515_v43 = vadd.bf16 1065369472, %v3451_v60  ;;  %v3453_v30 = vpack.c.bf16 %v4969_v32, %v4967_v59  ;;  %v3150_v16 = vunpack.c.h.bf16 %v3074_v48  ;;  %v7141_v32 = vpop.f32.mrf.mxu0 }
 0x366   : > { %v1886_v10 = vmul.f32 %v7108_v2, %v7108_v2  ;;  %v1855_v38 = vmul.f32 0.0078125, %v7038_v49  ;;  %v3516_v4 = vadd.bf16 1065369472, %v3452_v55  ;;  %4988 = vtanh.f32 %v3145_v31 }
 0x367   : > { %v3075_v1 = vmul.bf16 1061961548, %v3011_v45  ;;  %v3077_v46 = vmul.bf16 1061961548, %v3013_v41  ;;  %v3148_v60 = vunpack.c.l.bf16 %v3076_v14  ;;  %v1887_v59 = vmul.f32 %v7120_v21, %v7120_v21 }
 0x368   : > { %v7136_v62 = vpop.eup %4970  ;;  %v1918_v48 = vsub.f32 %v1854_v35, %v1886_v10  ;;  %v8549_v18 = vmul.bf16 1056980736, %v6867_v33  ;;  %4990 = vtanh.f32 %v3146_v63  ;;  %v3152_v55 = vunpack.c.h.bf16 %v3076_v14  ;;  %v7155_v35 = vpop.f32.mrf.mxu1 }
 0x369   : > { %v8551_v31 = vmul.bf16 1056980736, %v6887_v44  ;;  %v3517_v41 = vadd.bf16 1065369472, %v3453_v30  ;;  %4992 = vtanh.f32 %v3150_v16  ;;  %v1919_v37 = vsub.f32 %v1855_v38, %v1887_v59  ;;  %v1823_v10 = vpop.xlane.xlu0 %1822  ;;  %v1825_v16 = vpop.xlane.xlu1 %1824 }
 0x36a   : > { %v7145_v49 = vmul.bf16 %v3514_v39, %v8549_v18  ;;  %v7147_v53 = vpop.eup %4972  ;;  %v8553_v33 = vmul.bf16 1056980736, %v6869_v7  ;;  %v7164_v14 = vunpack.c.l.bf16 %v3075_v1  ;;  %v7166_v44 = vunpack.c.h.bf16 %v3075_v1 }
 0x36b   : > { %v7151_v45 = vmul.bf16 %v3515_v43, %v8551_v31  ;;  %v7153_v11 = vpop.eup %4974  ;;  %v7168_v43 = vunpack.c.l.bf16 %v3077_v46  ;;  %v7171_v30 = vmul.f32 0.0078125, %v7068_v26  ;;  %4994 = vtanh.f32 %v3148_v60  ;;  %v7180_v31 = vpop.f32.mrf.mxu0 }
 0x36c   : > { %8550 = vst [vmem:[#allocation54_spill] sm:$0xff] %v7145_v49  ;;  %v7159_v39 = vmul.bf16 %v3516_v4, %v8553_v33  ;;  %v7162_v63 = vpop.eup %4976  ;;  %v7175_v7 = vunpack.c.h.bf16 %v3077_v46  ;;  %v1982_v4 = vadd.f32 1e-05, %v1918_v48  ;;  %v7178_v59 = vmul.f32 0.0078125, %v7077_v27 }
 0x36d   : > { %8552 = vst [vmem:[#allocation55_spill] sm:$0xff] %v7151_v45  ;;  %v7173_v38 = vpop.eup %4978  ;;  %v2429_v1 = vadd.f32 %v7103_v40, %v6849_v12  ;;  %v2622_v26 = vadd.f32 %v7110_v34, %v6851_v61  ;;  %v1856_v18 = vmul.f32 0.0078125, %v7094_v42  ;;  %v8555_v60 = vmul.bf16 1056980736, %v6893_v25  ;;  %v1699_v40 = vpop.xlane.xlu0 %1698 }
 0x36e   : > { %8554 = vst [vmem:[#allocation56_spill] sm:$0xff] %v7159_v39  ;;  %v7182_v33 = vpop.eup %4980  ;;  %4996 = vtanh.f32 %v3152_v55  ;;  %v1948_v27 = vsub.f32 %v6764_v51, %v7044_v47  ;;  %v1983_v22 = vadd.f32 1e-05, %v1919_v37  ;;  %v7197_v39 = vpop.f32.mrf.mxu1  ;;  %v2425_v42 = vadd.f32 %v7066_v56, %v6849_v12 }
 0x36f   : > { %v7191_v46 = vmul.bf16 %v3517_v41, %v8555_v60  ;;  %v7193_v48 = vpop.eup %4982  ;;  %8557 = vst [vmem:[#allocation58_spill] sm:$0xff] %v7197_v39  ;;  %v2618_v25 = vadd.f32 %v7081_v5, %v6851_v61  ;;  %v1888_v34 = vmul.f32 %v7171_v30, %v7171_v30  ;;  %v1857_v55 = vmul.f32 0.0078125, %v7100_v57  ;;  %v7215_v56 = vpop.f32.mrf.mxu0 }
 0x370   : > { %v4985_v49 = vpop.eup %4984  ;;  %v1949_v37 = vsub.f32 %v6767_v8, %v7053_v15  ;;  %4998 = vrsqrt.f32 %v1982_v4  ;;  %v1889_v47 = vmul.f32 %v7178_v59, %v7178_v59  ;;  %v7213_v60 = vmul.f32 0.0078125, %v7125_v9  ;;  %v1701_v45 = vpop.xlane.xlu1 %1700 }
 0x371   : > { %8556 = vst [vmem:[#allocation57_spill] sm:$0xff] %v7191_v46  ;;  %v4987_v41 = vpop.eup %4986  ;;  %v7217_v5 = vpack.c.bf16 %v2429_v1, %v2425_v42  ;;  %v7219_v51 = vpack.c.bf16 %v2622_v26, %v2618_v25  ;;  %v1920_v46 = vsub.f32 %v1856_v18, %v1888_v34  ;;  %v7222_v57 = vmul.f32 0.0078125, %v7128_v23  ;;  %v7226_v4 = vpop.f32.mrf.mxu1 }
 0x372   : > { %5000 = vrsqrt.f32 %v1983_v22  ;;  %v2431_v15 = vadd.f32 %v7123_v54, %v6865_v58  ;;  %v1858_v9 = vmul.f32 0.0078125, %v1823_v10  ;;  %v3456_v8 = vpack.c.bf16 %v7162_v63, %v7153_v11  ;;  %v7240_v18 = vpop.f32.mrf.mxu0 }
 0x373   : > { %8558 = vst [vmem:[#allocation59_spill] sm:$0xff] %v7217_v5  ;;  %8559 = vst [vmem:[#allocation60_spill] sm:$0xff] %v7219_v51  ;;  %v1921_v24 = vsub.f32 %v1857_v55, %v1889_v47  ;;  %v1859_v1 = vmul.f32 0.0078125, %v1825_v16  ;;  %v2044_v42 = vmul.f32 %v4985_v49, %v1948_v27  ;;  %v2045_v26 = vmul.f32 %v4987_v41, %v1949_v37  ;;  %v7230_v25 = vpop.eup %4988  ;;  %v1827_v41 = vpop.xlane.xlu0 %1826 }
 0x374   : > { %8560 = vst [vmem:[#allocation61_spill] sm:$0xff] %v7222_v57  ;;  %v2427_v23 = vadd.f32 %v7087_v3, %v6865_v58  ;;  %v2620_v22 = vadd.f32 %v7092_v50, %v6871_v28  ;;  %v2624_v54 = vadd.f32 %v7134_v52, %v6871_v28  ;;  %v1890_v10 = vmul.f32 %v7213_v60, %v7213_v60  ;;  %v7248_v50 = vpop.f32.mrf.mxu1 }
 0x375   : > { %v2822_v11 = vmul.bf16 1027030327, %v7217_v5  ;;  %v2824_v49 = vmul.bf16 1027030327, %v7219_v51  ;;  %v1984_v63 = vadd.f32 1e-05, %v1920_v46  ;;  %v1891_v16 = vmul.f32 %v7222_v57, %v7222_v57  ;;  %v7246_v3 = vpop.eup %4990  ;;  %v1829_v57 = vpop.xlane.xlu1 %1828 }
 0x376   : > { %8561 = vst [vmem:[#allocation62_spill] sm:$0xff] %v7246_v3  ;;  %v1922_v27 = vsub.f32 %v1858_v9, %v1890_v10  ;;  %v7250_v34 = vmul.f32 0.0078125, %v1701_v45  ;;  %v2082_v52 = vmul.f32 %v6932_v20, %v2044_v42  ;;  %v2083_v55 = vmul.f32 %v6932_v20, %v2045_v26  ;;  %v7254_v37 = vpop.eup %4992  ;;  %v7262_v9 = vpop.f32.mrf.mxu0 }
 0x377   : > { %v7256_v47 = vpack.c.bf16 %v2431_v15, %v2427_v23  ;;  %v1985_v46 = vadd.f32 1e-05, %v1921_v24  ;;  %v1923_v39 = vsub.f32 %v1859_v1, %v1891_v16  ;;  %v7258_v28 = vmul.f32 0.0078125, %v1699_v40  ;;  %v7272_v23 = vpop.f32.mrf.mxu1 }
 0x378   : > { %v7260_v3 = vpack.c.bf16 %v2624_v54, %v2620_v22  ;;  %v2120_v45 = vadd.f32 %v6956_v29, %v2082_v52  ;;  %v2121_v42 = vadd.f32 %v6956_v29, %v2083_v55  ;;  %v3455_v26 = vpack.c.bf16 %v7182_v33, %v7173_v38  ;;  %v7268_v10 = vpop.eup %4994 }
 0x379   : > { %v2886_v15 = vmul.bf16 %v2822_v11, %v7217_v5  ;;  %v2888_v24 = vmul.bf16 %v2824_v49, %v7219_v51  ;;  %5002 = vrsqrt.f32 %v1984_v63  ;;  %v1860_v40 = vmul.f32 0.0078125, %v1827_v41  ;;  %v7283_v63 = vpop.f32.mrf.mxu0 }
 0x37a   : > { %8562 = vst [vmem:[#allocation63_spill] sm:$0xff] %v7260_v3  ;;  %v1986_v1 = vadd.f32 1e-05, %v1922_v27  ;;  %v1893_v22 = vmul.f32 %v7250_v34, %v7250_v34  ;;  %v2141_v54 = vpack.c.bf16 %v2121_v42, %v2120_v45  ;;  %v1861_v16 = vmul.f32 0.0078125, %v1829_v57  ;;  %v7294_v42 = vpop.f32.mrf.mxu1 }
 0x37b   : > { %v7276_v52 = vpop.eup %4996  ;;  %v2823_v38 = vmul.bf16 1027030327, %v7256_v47  ;;  %5004 = vrsqrt.f32 %v1985_v46  ;;  %v1987_v33 = vadd.f32 1e-05, %v1923_v39  ;;  %v1892_v11 = vmul.f32 %v7258_v28, %v7258_v28 }
 0x37c   : > { %5006 = vtanh.f32 %v7164_v14  ;;  %v2825_v49 = vmul.bf16 1027030327, %v7260_v3  ;;  %2503 = vmatmul.mubr.bf16.gmra.mxu0 %v2141_v54  ;;  %2696 = vmatmul.mubr.bf16.gmra.mxu1 %v2141_v54  ;;  %v1925_v27 = vsub.f32 %v1861_v16, %v1893_v22  ;;  %v8563_v57 = vpack.c.bf16 %v7147_v53, %v7136_v62 }
 0x37d   : > { %v4999_v41 = vpop.eup %4998  ;;  %5008 = vtanh.f32 %v7166_v44  ;;  %v2950_v39 = vmul.bf16 %v2886_v15, %v7217_v5  ;;  %v1924_v46 = vsub.f32 %v1860_v40, %v1892_v11  ;;  %2512 = vmatprep.mubr.bf16.mxu0 %v8520_v13  ;;  %2705 = vmatprep.mubr.bf16.mxu1 %v8520_v13  ;;  %v3520_v14 = vadd.bf16 1065369472, %v3456_v8 }
 0x37e   : > { %v3518_v55 = vadd.bf16 1065369472, %v8563_v57  ;;  %v1950_v45 = vsub.f32 %v6779_v19, %v7108_v2  ;;  %5010 = vrsqrt.f32 %v1986_v1  ;;  %v3519_v22 = vadd.bf16 1065369472, %v3455_v26  ;;  %v7305_v1 = vpop.f32.mrf.mxu0 }
 0x37f   : > { %v3457_v53 = vpack.c.bf16 %v7230_v25, %v7193_v48  ;;  %v5001_v62 = vpop.eup %5000  ;;  %v2952_v44 = vmul.bf16 %v2888_v24, %v7219_v51  ;;  %v2887_v15 = vmul.bf16 %v2823_v38, %v7256_v47  ;;  %5012 = vrsqrt.f32 %v1987_v33  ;;  %v7316_v38 = vpop.f32.mrf.mxu1 }
 0x380   : > { %v1989_v40 = vadd.f32 1e-05, %v1925_v27  ;;  %v1951_v8 = vsub.f32 %v6782_v6, %v7120_v21  ;;  %v2889_v54 = vmul.bf16 %v2825_v49, %v7260_v3  ;;  %v2439_v2 = vadd.f32 %v7215_v56, %v6849_v12  ;;  %v2450_v57 = vpop.f32.mrf.mxu0  ;;  %v8574_v6 = vld [vmem:[#allocation26_spill] sm:$0xff] }
 0x381   : > { %v2046_v26 = vmul.f32 %v4999_v41, %v1950_v45  ;;  %5014 = vtanh.f32 %v7168_v43  ;;  %v3014_v48 = vadd.bf16 %v2950_v39, %v7217_v5  ;;  %v1988_v25 = vadd.f32 1e-05, %v1924_v46  ;;  %v8567_v45 = vld [vmem:[#allocation44_spill] sm:$0xff] }
 0x382   : > { %v8564_v24 = vmul.bf16 1056980736, %v6935_v36  ;;  %5016 = vtanh.f32 %v7175_v7  ;;  %v2435_v21 = vadd.f32 %v7141_v32, %v6849_v12  ;;  %v2047_v56 = vmul.f32 %v5001_v62, %v1951_v8 }
 0x383   : > { %v8565_v33 = vmul.bf16 1056980736, %v6940_v0  ;;  %v3016_v43 = vadd.bf16 %v2952_v44, %v7219_v51  ;;  %v2951_v49 = vmul.bf16 %v2887_v15, %v7256_v47  ;;  %5018 = vrsqrt.f32 %v1989_v40  ;;  %v8568_v44 = vld [vmem:[#allocation45_spill] sm:$0xff] }
 0x384   : > { %v7311_v16 = vmul.bf16 %v3518_v55, %v8564_v24  ;;  %v2084_v36 = vmul.f32 %v6932_v20, %v2046_v26  ;;  %v2953_v27 = vmul.bf16 %v2889_v54, %v7260_v3  ;;  %v7326_v7 = vpack.c.bf16 %v2439_v2, %v2435_v21 }
 0x385   : > { %v7320_v11 = vmul.bf16 %v3520_v14, %v8565_v33  ;;  %v8566_v32 = vmul.bf16 1056980736, %v6961_v17  ;;  %v7332_v41 = vadd.bf16 1065369472, %v3457_v53  ;;  %v3078_v0 = vmul.bf16 1061961548, %v3014_v48  ;;  %v2643_v53 = vpop.f32.mrf.mxu1 }
 0x386   : > { %v2632_v39 = vadd.f32 %v7226_v4, %v6851_v61  ;;  %5020 = vrsqrt.f32 %v1988_v25  ;;  %v2085_v46 = vmul.f32 %v6932_v20, %v2047_v56  ;;  %v5003_v14 = vpop.eup %5002  ;;  %v1952_v62 = vsub.f32 %v8567_v45, %v7171_v30  ;;  %v8569_v30 = vld [vmem:[#allocation46_spill] sm:$0xff]  ;;  %v8570_v48 = vld [vmem:[#allocation48_spill] sm:$0xff]  ;;  %v7357_v25 = vpop.f32.mrf.mxu0  ;;  %v8572_v45 = vld [vmem:[#allocation61_spill] sm:$0xff] }
 0x387   : > { %v7330_v55 = vmul.bf16 %v3519_v22, %v8566_v32  ;;  %v1953_v15 = vsub.f32 %v8568_v44, %v7178_v59  ;;  %v2628_v17 = vadd.f32 %v7155_v35, %v6851_v61  ;;  %v2441_v22 = vadd.f32 %v7240_v18, %v6865_v58 }
 0x388   : > { %v3080_v40 = vmul.bf16 1061961548, %v3016_v43  ;;  %v7346_v4 = vadd.bf16 %v2951_v49, %v7256_v47  ;;  %v2122_v8 = vadd.f32 %v6956_v29, %v2084_v36  ;;  %v2123_v54 = vadd.f32 %v6956_v29, %v2085_v46  ;;  %v5005_v2 = vpop.eup %5004 }
 0x389   : > { %v1954_v26 = vsub.f32 %v8569_v30, %v7213_v60  ;;  %v2437_v59 = vadd.f32 %v7180_v31, %v6865_v58  ;;  %v2826_v35 = vmul.bf16 1027030327, %v7326_v7  ;;  %v2634_v18 = vadd.f32 %v7248_v50, %v8570_v48  ;;  %v7359_v24 = vpop.eup %5006  ;;  %v8571_v31 = vld [vmem:[#allocation58_spill] sm:$0xff]  ;;  %v7372_v50 = vpop.f32.mrf.mxu1 }
 0x38a   : > { %v3154_v21 = vunpack.c.l.bf16 %v3078_v0  ;;  %v7362_v56 = vadd.bf16 %v2953_v27, %v7260_v3  ;;  %v7364_v33 = vpack.c.bf16 %v2632_v39, %v2628_v17  ;;  %v2142_v43 = vpack.c.bf16 %v2123_v54, %v2122_v8  ;;  %v7366_v60 = vpop.eup %5008  ;;  %v8573_v39 = vld [vmem:[#allocation47_spill] sm:$0xff] }
 0x38b   : > { %v3158_v49 = vunpack.c.h.bf16 %v3078_v0  ;;  %v2630_v36 = vadd.f32 %v8571_v31, %v8570_v48  ;;  %v7370_v32 = vpack.c.bf16 %v2441_v22, %v2437_v59  ;;  %v2048_v46 = vmul.f32 %v5003_v14, %v1952_v62  ;;  %v5011_v30 = vpop.eup %5010  ;;  %v7386_v14 = vpop.f32.mrf.mxu0 }
 0x38c   : > { %v7374_v44 = vunpack.c.l.bf16 %v3080_v40  ;;  %v3079_v27 = vmul.bf16 1061961548, %v7346_v4  ;;  %v1955_v17 = vsub.f32 %v8573_v39, %v8572_v45  ;;  %2513 = vmatmul.mubr.bf16.gmra.mxu0 %v2142_v43  ;;  %2706 = vmatmul.mubr.bf16.gmra.mxu1 %v2142_v43  ;;  %v2049_v8 = vmul.f32 %v5005_v2, %v1953_v15  ;;  %v5013_v0 = vpop.eup %5012 }
 0x38d   : > { %v7379_v54 = vunpack.c.h.bf16 %v3080_v40  ;;  %v7382_v22 = vmul.bf16 %v2826_v35, %v7326_v7  ;;  %v7384_v59 = vpack.c.bf16 %v2634_v18, %v2630_v36  ;;  %2522 = vmatprep.mubr.bf16.mxu0 %v8520_v13  ;;  %2715 = vmatprep.mubr.bf16.mxu1 %v8520_v13  ;;  %v2086_v62 = vmul.f32 %v6932_v20, %v2048_v46  ;;  %v7398_v18 = vpop.f32.mrf.mxu1 }
 0x38e   : > { %5022 = vtanh.f32 %v3154_v21  ;;  %v3081_v45 = vmul.bf16 1061961548, %v7362_v56  ;;  %v2828_v15 = vmul.bf16 1027030327, %v7364_v33  ;;  %v2087_v40 = vmul.f32 %v6932_v20, %v2049_v8  ;;  %v7394_v4 = vpop.eup %5014 }
 0x38f   : > { %5024 = vtanh.f32 %v3158_v49  ;;  %v2827_v2 = vmul.bf16 1027030327, %v7370_v32  ;;  %v2451_v35 = vadd.f32 %v2450_v57, %v6865_v58  ;;  %v2050_v43 = vmul.f32 %v5011_v30, %v1954_v26  ;;  %v7400_v31 = vpop.eup %5016  ;;  %v2458_v26 = vpop.f32.mrf.mxu0 }
 0x390   : > { %v3155_v36 = vunpack.c.l.bf16 %v3079_v27  ;;  %v2124_v21 = vadd.f32 %v6956_v29, %v2086_v62  ;;  %v2125_v56 = vadd.f32 %v6956_v29, %v2087_v40  ;;  %v2051_v46 = vmul.f32 %v5013_v0, %v1955_v17  ;;  %v5019_v39 = vpop.eup %5018 }
 0x391   : > { %v2954_v8 = vmul.bf16 %v7382_v22, %v7326_v7  ;;  %v2829_v49 = vmul.bf16 1027030327, %v7384_v59  ;;  %v2447_v57 = vadd.f32 %v7283_v63, %v6865_v58  ;;  %v1957_v30 = vsub.f32 %v8574_v6, %v7250_v34  ;;  %v8575_v22 = vld [vmem:[#allocation27_spill] sm:$0xff]  ;;  %v2651_v34 = vpop.f32.mrf.mxu1 }
 0x392   : > { %v2644_v19 = vadd.f32 %v2643_v53, %v8570_v48  ;;  %v2143_v51 = vpack.c.bf16 %v2125_v56, %v2124_v21  ;;  %v2088_v62 = vmul.f32 %v6932_v20, %v2050_v43  ;;  %v2089_v17 = vmul.f32 %v6932_v20, %v2051_v46 }
 0x393   : > { %v5021_v0 = vpop.eup %5020  ;;  %v2891_v40 = vmul.bf16 %v2827_v2, %v7370_v32  ;;  %v1956_v5 = vsub.f32 %v8575_v22, %v7258_v28  ;;  %v2449_v63 = vadd.f32 %v7305_v1, %v6849_v12  ;;  %v7419_v3 = vpack.c.bf16 %v2451_v35, %v2447_v57  ;;  %v2460_v35 = vpop.f32.mrf.mxu0 }
 0x394   : > { %v3159_v6 = vunpack.c.h.bf16 %v3079_v27  ;;  %v2640_v53 = vadd.f32 %v7294_v42, %v8570_v48  ;;  %2523 = vmatmul.mubr.bf16.gmra.mxu0 %v2143_v51  ;;  %2716 = vmatmul.mubr.bf16.gmra.mxu1 %v2143_v51  ;;  %v2127_v43 = vadd.f32 %v6956_v29, %v2089_v17  ;;  %v2053_v21 = vmul.f32 %v5019_v39, %v1957_v30  ;;  %v2653_v57 = vpop.f32.mrf.mxu1 }
 0x395   : > { %v3157_v56 = vunpack.c.l.bf16 %v3081_v45  ;;  %v2893_v2 = vmul.bf16 %v2829_v49, %v7384_v59  ;;  %v2445_v28 = vadd.f32 %v7262_v9, %v6849_v12  ;;  %v2642_v1 = vadd.f32 %v7316_v38, %v6851_v61  ;;  %2532 = vmatprep.mubr.bf16.mxu0 %v8520_v13  ;;  %2725 = vmatprep.mubr.bf16.mxu1 %v8520_v13 }
 0x396   : > { %v2892_v42 = vmul.bf16 %v2828_v15, %v7364_v33  ;;  %v7432_v51 = vpack.c.bf16 %v2644_v19, %v2640_v53  ;;  %v2126_v27 = vadd.f32 %v6956_v29, %v2088_v62  ;;  %v2052_v39 = vmul.f32 %v5021_v0, %v1956_v5 }
 0x397   : > { %v2955_v46 = vmul.bf16 %v2891_v40, %v7370_v32  ;;  %v2638_v9 = vadd.f32 %v7272_v23, %v6851_v61  ;;  %v7438_v49 = vpack.c.bf16 %v2449_v63, %v2445_v28  ;;  %v2831_v38 = vmul.bf16 1027030327, %v7419_v3 }
 0x398   : > { %5026 = vtanh.f32 %v7374_v44  ;;  %v2461_v30 = vadd.f32 %v2460_v35, %v6865_v58  ;;  %v2144_v15 = vpack.c.bf16 %v2127_v43, %v2126_v27  ;;  %v2091_v19 = vmul.f32 %v6932_v20, %v2053_v21 }
 0x399   : > { %v3161_v17 = vunpack.c.h.bf16 %v3081_v45  ;;  %v7445_v5 = vadd.bf16 %v2954_v8, %v7326_v7  ;;  %v2957_v62 = vmul.bf16 %v2893_v2, %v7384_v59  ;;  %v7448_v0 = vpack.c.bf16 %v2642_v1, %v2638_v9 }
 0x39a   : > { %v2833_v23 = vmul.bf16 1027030327, %v7432_v51  ;;  %v2457_v40 = vadd.f32 %v7386_v14, %v6865_v58  ;;  %v2654_v44 = vadd.f32 %v2653_v57, %v8570_v48  ;;  %v2090_v63 = vmul.f32 %v6932_v20, %v2052_v39 }
 0x39b   : > { %v7455_v53 = vpop.eup %5022  ;;  %v2956_v45 = vmul.bf16 %v2892_v42, %v7364_v33  ;;  %v3019_v8 = vadd.bf16 %v2955_v46, %v7370_v32  ;;  %v2830_v43 = vmul.bf16 1027030327, %v7438_v49  ;;  %v2895_v21 = vmul.bf16 %v2831_v38, %v7419_v3 }
 0x39c   : > { %v7461_v2 = vpop.eup %5024  ;;  %5028 = vtanh.f32 %v3155_v36  ;;  %v2650_v14 = vadd.f32 %v7398_v18, %v8570_v48  ;;  %v7465_v28 = vpack.c.bf16 %v2461_v30, %v2457_v40  ;;  %2533 = vmatmul.mubr.bf16.gmra.mxu0 %v2144_v15  ;;  %2726 = vmatmul.mubr.bf16.gmra.mxu1 %v2144_v15  ;;  %v2129_v20 = vadd.f32 %v6956_v29, %v2091_v19  ;;  %v8576_v40 = vld [vmem:[#allocation49_spill] sm:$0xff] }
 0x39d   : > { %5030 = vtanh.f32 %v3159_v6  ;;  %v3082_v1 = vmul.bf16 1061961548, %v7445_v5  ;;  %v3021_v35 = vadd.bf16 %v2957_v62, %v7384_v59  ;;  %v2459_v42 = vadd.f32 %v2458_v26, %v6849_v12  ;;  %2542 = vmatprep.mubr.bf16.mxu0 %v8520_v13  ;;  %2735 = vmatprep.mubr.bf16.mxu1 %v8520_v13 }
 0x39e   : > { %v2832_v36 = vmul.bf16 1027030327, %v7448_v0  ;;  %v2897_v18 = vmul.bf16 %v2833_v23, %v7432_v51  ;;  %v7475_v27 = vpack.c.bf16 %v2654_v44, %v2650_v14  ;;  %v2128_v39 = vadd.f32 %v6956_v29, %v2090_v63 }
 0x39f   : > { %5032 = vtanh.f32 %v3157_v56  ;;  %v3083_v6 = vmul.bf16 1061961548, %v3019_v8  ;;  %v2894_v46 = vmul.bf16 %v2830_v43, %v7438_v49  ;;  %v2455_v9 = vadd.f32 %v7357_v25, %v6849_v12 }
 0x3a0   : > { %v2959_v26 = vmul.bf16 %v2895_v21, %v7419_v3  ;;  %v2652_v38 = vadd.f32 %v2651_v34, %v6851_v61  ;;  %v2835_v13 = vmul.bf16 1027030327, %v7465_v28  ;;  %v2145_v57 = vpack.c.bf16 %v2129_v20, %v2128_v39  ;;  %v8578_v20 = vld [vmem:[#allocation55_spill] sm:$0xff] }
 0x3a1   : > { %v3162_v30 = vunpack.c.l.bf16 %v3082_v1  ;;  %v3020_v15 = vadd.bf16 %v2956_v45, %v7364_v33  ;;  %v3085_v19 = vmul.bf16 1061961548, %v3021_v35  ;;  %v7485_v5 = vpack.c.bf16 %v2459_v42, %v2455_v9 }
 0x3a2   : > { %v2896_v29 = vmul.bf16 %v2832_v36, %v7448_v0  ;;  %v2961_v56 = vmul.bf16 %v2897_v18, %v7432_v51  ;;  %v2648_v25 = vadd.f32 %v7372_v50, %v6851_v61  ;;  %v2837_v62 = vmul.bf16 1027030327, %v7475_v27 }
 0x3a3   : > { %5034 = vtanh.f32 %v3161_v17  ;;  %v3163_v34 = vunpack.c.l.bf16 %v3083_v6  ;;  %v2958_v23 = vmul.bf16 %v2894_v46, %v7438_v49  ;;  %v8577_v44 = vmul.bf16 1056980736, %v8576_v40  ;;  %v8580_v46 = vld [vmem:[#allocation62_spill] sm:$0xff] }
 0x3a4   : > { %5036 = vtanh.f32 %v7379_v54  ;;  %v3023_v45 = vadd.bf16 %v2959_v26, %v7419_v3  ;;  %v7498_v8 = vpack.c.bf16 %v2652_v38, %v2648_v25  ;;  %v2899_v43 = vmul.bf16 %v2835_v13, %v7465_v28  ;;  %2543 = vmatmul.mubr.bf16.gmra.mxu0 %v2145_v57  ;;  %2736 = vmatmul.mubr.bf16.gmra.mxu1 %v2145_v57 }
 0x3a5   : > { %v3585_v63 = vmul.bf16 %v7332_v41, %v8577_v44  ;;  %v7501_v50 = vpop.eup %5026  ;;  %5038 = vtanh.f32 %v3162_v30  ;;  %v3084_v17 = vmul.bf16 1061961548, %v3020_v15  ;;  %v3167_v21 = vunpack.c.h.bf16 %v3083_v6  ;;  %3937 = vmatprep.mubr.bf16.mxu0 %v8578_v20  ;;  %v8579_v41 = vld [vmem:[#allocation57_spill] sm:$0xff] }
 0x3a6   : > { %v2834_v14 = vmul.bf16 1027030327, %v7485_v5  ;;  %4098 = vmatprep.mubr.bf16.mxu1 %v8579_v41  ;;  %v3165_v54 = vunpack.c.l.bf16 %v3085_v19  ;;  %v2960_v35 = vmul.bf16 %v2896_v29, %v7448_v0  ;;  %v3025_v42 = vadd.bf16 %v2961_v56, %v7432_v51 }
 0x3a7   : > { %v2901_v36 = vmul.bf16 %v2837_v62, %v7475_v27  ;;  %5040 = vtanh.f32 %v3163_v34  ;;  %v3169_v18 = vunpack.c.h.bf16 %v3085_v19  ;;  %v3459_v39 = vpack.c.bf16 %v7366_v60, %v7359_v24 }
 0x3a8   : > { %v3458_v6 = vpack.c.bf16 %v7254_v37, %v8580_v46  ;;  %v3022_v9 = vadd.bf16 %v2958_v23, %v7438_v49  ;;  %v3087_v26 = vmul.bf16 1061961548, %v3023_v45  ;;  %v2836_v38 = vmul.bf16 1027030327, %v7498_v8  ;;  %v8581_v45 = vld [vmem:[#allocation54_spill] sm:$0xff] }
 0x3a9   : > { %v2963_v13 = vmul.bf16 %v2899_v43, %v7465_v28  ;;  %v7516_v57 = vpop.eup %5028  ;;  %v3166_v30 = vunpack.c.h.bf16 %v3082_v1  ;;  %v3164_v15 = vunpack.c.l.bf16 %v3084_v17  ;;  %5042 = vtanh.f32 %v3167_v21  ;;  %v8582_v43 = vld [vmem:[#allocation56_spill] sm:$0xff] }
 0x3aa   : > { %v2898_v19 = vmul.bf16 %v2834_v14, %v7485_v5  ;;  %v7519_v29 = vpop.eup %5030  ;;  %5044 = vtanh.f32 %v3165_v54  ;;  %v3024_v24 = vadd.bf16 %v2960_v35, %v7448_v0  ;;  %v3089_v37 = vmul.bf16 1061961548, %v3025_v42 }
 0x3ab   : > { %v2965_v60 = vmul.bf16 %v2901_v36, %v7475_v27  ;;  %v3168_v56 = vunpack.c.h.bf16 %v3084_v17  ;;  %5046 = vtanh.f32 %v3169_v18  ;;  %v3461_v25 = vpack.c.bf16 %v7400_v31, %v7394_v4 }
 0x3ac   : > { %v3522_v62 = vadd.bf16 1065369472, %v3458_v6  ;;  %v5033_v34 = vpop.eup %5032  ;;  %v3086_v1 = vmul.bf16 1061961548, %v3022_v9  ;;  %v3171_v23 = vunpack.c.l.bf16 %v3087_v26  ;;  %v2900_v40 = vmul.bf16 %v2836_v38, %v7498_v8  ;;  %3938 = vmatmul.mubr.bf16.vlgmr.msra.gmra.mxu0 %v8581_v45  ;;  %4099 = vmatmul.mubr.bf16.vlgmr.msra.gmra.mxu1 %v8582_v43  ;;  %v8583_v6 = vld [vmem:[#allocation52_spill] sm:$0xff]  ;;  %v8588_v45 = vld [vmem:[#allocation51_spill] sm:$0xff] }
 0x3ad   : > { %v3027_v44 = vadd.bf16 %v2963_v13, %v7465_v28  ;;  %5048 = vtanh.f32 %v3166_v30  ;;  %v3175_v21 = vunpack.c.h.bf16 %v3087_v26  ;;  %v2962_v17 = vmul.bf16 %v2898_v19, %v7485_v5  ;;  %3945 = vmatprep.mubr.bf16.mxu0 %v7330_v55  ;;  %4106 = vmatprep.mubr.bf16.mxu1 %v3585_v63 }
 0x3ae   : > { %v3523_v4 = vadd.bf16 1065369472, %v3459_v39  ;;  %5050 = vtanh.f32 %v3164_v15  ;;  %v3088_v31 = vmul.bf16 1061961548, %v3024_v24  ;;  %v3173_v14 = vunpack.c.l.bf16 %v3089_v37  ;;  %v8585_v15 = vld [vmem:[#allocation53_spill] sm:$0xff] }
 0x3af   : > { %v3029_v20 = vadd.bf16 %v2965_v60, %v7475_v27  ;;  %5052 = vtanh.f32 %v3168_v56  ;;  %v3177_v41 = vunpack.c.h.bf16 %v3089_v37  ;;  %v3525_v54 = vadd.bf16 1065369472, %v3461_v25 }
 0x3b0   : > { %v3460_v35 = vpack.c.bf16 %v7276_v52, %v7268_v10  ;;  %v5035_v42 = vpop.eup %5034  ;;  %v3170_v36 = vunpack.c.l.bf16 %v3086_v1  ;;  %5054 = vtanh.f32 %v3171_v23  ;;  %v2964_v18 = vmul.bf16 %v2900_v40, %v7498_v8 }
 0x3b1   : > { %v3091_v46 = vmul.bf16 1061961548, %v3027_v44  ;;  %v7535_v55 = vpop.eup %5036  ;;  %v3174_v63 = vunpack.c.h.bf16 %v3086_v1  ;;  %5056 = vtanh.f32 %v3175_v21  ;;  %v3026_v39 = vadd.bf16 %v2962_v17, %v7485_v5 }
 0x3b2   : > { %v8584_v9 = vmul.bf16 1056980736, %v8583_v6  ;;  %v7540_v38 = vpop.eup %5038  ;;  %v3172_v13 = vunpack.c.l.bf16 %v3088_v31  ;;  %5058 = vtanh.f32 %v3173_v14  ;;  %v3093_v10 = vmul.bf16 1061961548, %v3029_v20 }
 0x3b3   : > { %v3463_v52 = vpack.c.bf16 %v7519_v29, %v7516_v57  ;;  %v3176_v30 = vunpack.c.h.bf16 %v3088_v31  ;;  %5060 = vtanh.f32 %v3177_v41  ;;  %v8586_v19 = vmul.bf16 1056980736, %v8585_v15  ;;  %v8587_v57 = vld [vmem:[#allocation50_spill] sm:$0xff] }
 0x3b4   : > { %v3587_v26 = vmul.bf16 %v3523_v4, %v8584_v9  ;;  %v3465_v37 = vpack.c.bf16 %v5035_v42, %v5033_v34  ;;  %v5041_v60 = vpop.eup %5040  ;;  %5062 = vtanh.f32 %v3170_v36  ;;  %v3028_v56 = vadd.bf16 %v2964_v18, %v7498_v8  ;;  %3946 = vmatmul.mubr.bf16.gmra.mxu0 %v7311_v16  ;;  %4107 = vmatmul.mubr.bf16.gmra.mxu1 %v7320_v11  ;;  %v8589_v42 = vld [vmem:[#allocation63_spill] sm:$0xff] }
 0x3b5   : > { %v3589_v24 = vmul.bf16 %v3525_v54, %v8586_v19  ;;  %v3179_v25 = vunpack.c.l.bf16 %v3091_v46  ;;  %v3524_v1 = vadd.bf16 1065369472, %v3460_v35  ;;  %5064 = vtanh.f32 %v3174_v63 }
 0x3b6   : > { %v3090_v23 = vmul.bf16 1061961548, %v3026_v39  ;;  %v3183_v40 = vunpack.c.h.bf16 %v3091_v46  ;;  %3953 = vmatprep.mubr.bf16.mxu0 %v3587_v26  ;;  %v3394_v29 = vmul.bf16 1056980736, %v8587_v57  ;;  %v5043_v44 = vpop.eup %5042  ;;  %5066 = vtanh.f32 %v3172_v13 }
 0x3b7   : > { %4114 = vmatprep.mubr.bf16.mxu1 %v3589_v24  ;;  %v3181_v34 = vunpack.c.l.bf16 %v3093_v10  ;;  %v3396_v43 = vmul.bf16 1056980736, %v8588_v45  ;;  %v3527_v21 = vadd.bf16 1065369472, %v3463_v52  ;;  %v5045_v17 = vpop.eup %5044  ;;  %5068 = vtanh.f32 %v3176_v30  ;;  %v8590_v24 = vld [vmem:[#allocation59_spill] sm:$0xff] }
 0x3b8   : > { %v3185_v4 = vunpack.c.h.bf16 %v3093_v10  ;;  %v3586_v16 = vmul.bf16 %v3522_v62, %v3394_v29  ;;  %v3529_v31 = vadd.bf16 1065369472, %v3465_v37  ;;  %v5047_v11 = vpop.eup %5046  ;;  %v3092_v14 = vmul.bf16 1061961548, %v3028_v56 }
 0x3b9   : > { %5070 = vtanh.f32 %v3179_v25  ;;  %v3588_v20 = vmul.bf16 %v3524_v1, %v3396_v43  ;;  %v3399_v41 = vmul.bf16 1056980736, %v7256_v47  ;;  %v3178_v54 = vunpack.c.l.bf16 %v3090_v23 }
 0x3ba   : > { %v3182_v35 = vunpack.c.h.bf16 %v3090_v23  ;;  %5072 = vtanh.f32 %v3183_v40  ;;  %v3401_v36 = vmul.bf16 1056980736, %v8589_v42  ;;  %v5049_v18 = vpop.eup %5048  ;;  %v3462_v63 = vpack.c.bf16 %v7461_v2, %v7455_v53 }
 0x3bb   : > { %5074 = vtanh.f32 %v3181_v34  ;;  %v3591_v46 = vmul.bf16 %v3527_v21, %v3399_v41  ;;  %v3464_v62 = vpack.c.bf16 %v7535_v55, %v7501_v50  ;;  %v5051_v39 = vpop.eup %5050  ;;  %v3467_v9 = vpack.c.bf16 %v5043_v44, %v5041_v60  ;;  %v8591_v60 = vld [vmem:[#allocation60_spill] sm:$0xff] }
 0x3bc   : > { %5076 = vtanh.f32 %v3185_v4  ;;  %v3593_v6 = vmul.bf16 %v3529_v31, %v3401_v36  ;;  %v3469_v26 = vpack.c.bf16 %v5047_v11, %v5045_v17  ;;  %v5053_v47 = vpop.eup %5052  ;;  %v3180_v13 = vunpack.c.l.bf16 %v3092_v14  ;;  %3954 = vmatmul.mubr.bf16.gmra.mxu0 %v3586_v16  ;;  %4115 = vmatmul.mubr.bf16.gmra.mxu1 %v3588_v20 }
 0x3bd   : > { %v5055_v10 = vpop.eup %5054  ;;  %v3184_v52 = vunpack.c.h.bf16 %v3092_v14  ;;  %3961 = vmatprep.mubr.bf16.mxu0 %v3591_v46  ;;  %5078 = vtanh.f32 %v3178_v54  ;;  %v3526_v15 = vadd.bf16 1065369472, %v3462_v63  ;;  %v3528_v53 = vadd.bf16 1065369472, %v3464_v62 }
 0x3be   : > { %4122 = vmatprep.mubr.bf16.mxu1 %v3593_v6  ;;  %v5057_v30 = vpop.eup %5056  ;;  %5080 = vtanh.f32 %v3182_v35  ;;  %v3531_v50 = vadd.bf16 1065369472, %v3467_v9  ;;  %v3533_v55 = vadd.bf16 1065369472, %v3469_v26  ;;  %v3398_v37 = vmul.bf16 1056980736, %v8590_v24 }
 0x3bf   : > { %v5059_v2 = vpop.eup %5058  ;;  %5082 = vtanh.f32 %v3180_v13  ;;  %v3400_v56 = vmul.bf16 1056980736, %v8591_v60  ;;  %v3403_v1 = vmul.bf16 1056980736, %v7370_v32  ;;  %v3405_v23 = vmul.bf16 1056980736, %v7384_v59 }
 0x3c0   : > { %v5061_v19 = vpop.eup %5060  ;;  %5084 = vtanh.f32 %v3184_v52  ;;  %v3590_v57 = vmul.bf16 %v3526_v15, %v3398_v37  ;;  %v3466_v44 = vpack.c.bf16 %v5049_v18, %v7540_v38  ;;  %v3468_v34 = vpack.c.bf16 %v5053_v47, %v5051_v39 }
 0x3c1   : > { %v5063_v25 = vpop.eup %5062  ;;  %v3592_v29 = vmul.bf16 %v3528_v53, %v3400_v56  ;;  %v3595_v43 = vmul.bf16 %v3531_v50, %v3403_v1  ;;  %v3597_v21 = vmul.bf16 %v3533_v55, %v3405_v23  ;;  %v3471_v17 = vpack.c.bf16 %v5057_v30, %v5055_v10 }
 0x3c2   : > { %v5065_v40 = vpop.eup %5064  ;;  %v3473_v4 = vpack.c.bf16 %v5061_v19, %v5059_v2  ;;  %v3530_v11 = vadd.bf16 1065369472, %v3466_v44  ;;  %v3532_v59 = vadd.bf16 1065369472, %v3468_v34  ;;  %v3402_v38 = vmul.bf16 1056980736, %v7326_v7 }
 0x3c3   : > { %v5067_v45 = vpop.eup %5066  ;;  %v3535_v20 = vadd.bf16 1065369472, %v3471_v17  ;;  %v3404_v35 = vmul.bf16 1056980736, %v7364_v33  ;;  %v3407_v42 = vmul.bf16 1056980736, %v7419_v3  ;;  %v3470_v63 = vpack.c.bf16 %v5065_v40, %v5063_v25 }
 0x3c4   : > { %v5069_v16 = vpop.eup %5068  ;;  %3962 = vmatmul.mubr.bf16.gmra.mxu0 %v3590_v57  ;;  %4123 = vmatmul.mubr.bf16.gmra.mxu1 %v3592_v29  ;;  %v3537_v41 = vadd.bf16 1065369472, %v3473_v4  ;;  %v3409_v36 = vmul.bf16 1056980736, %v7432_v51  ;;  %v3594_v18 = vmul.bf16 %v3530_v11, %v3402_v38  ;;  %v3406_v30 = vmul.bf16 1056980736, %v7438_v49 }
 0x3c5   : > { %3969 = vmatprep.mubr.bf16.mxu0 %v3595_v43  ;;  %4130 = vmatprep.mubr.bf16.mxu1 %v3597_v21  ;;  %v3596_v46 = vmul.bf16 %v3532_v59, %v3404_v35  ;;  %v3472_v62 = vpack.c.bf16 %v5069_v16, %v5067_v45  ;;  %v3599_v6 = vmul.bf16 %v3535_v20, %v3407_v42  ;;  %v3534_v33 = vadd.bf16 1065369472, %v3470_v63 }
 0x3c6   : > { %v5071_v31 = vpop.eup %5070  ;;  %v3601_v9 = vmul.bf16 %v3537_v41, %v3409_v36  ;;  %v3408_v15 = vmul.bf16 1056980736, %v7448_v0  ;;  %v3411_v53 = vmul.bf16 1056980736, %v7465_v28  ;;  %v3413_v2 = vmul.bf16 1056980736, %v7475_v27 }
 0x3c7   : > { %v5073_v32 = vpop.eup %5072  ;;  %v3536_v3 = vadd.bf16 1065369472, %v3472_v62  ;;  %v3598_v50 = vmul.bf16 %v3534_v33, %v3406_v30  ;;  %v3410_v49 = vmul.bf16 1056980736, %v7485_v5  ;;  %v3412_v0 = vmul.bf16 1056980736, %v7498_v8 }
 0x3c8   : > { %v5075_v14 = vpop.eup %5074  ;;  %v3475_v26 = vpack.c.bf16 %v5073_v32, %v5071_v31 }
 0x3c9   : > { %v5077_v54 = vpop.eup %5076  ;;  %v3600_v55 = vmul.bf16 %v3536_v3, %v3408_v15 }
 0x3ca   : > { %v5079_v39 = vpop.eup %5078  ;;  %v3477_v47 = vpack.c.bf16 %v5077_v54, %v5075_v14  ;;  %v3539_v52 = vadd.bf16 1065369472, %v3475_v26 }
 0x3cb   : > { %v5081_v13 = vpop.eup %5080 }
 0x3cc   : > { %3970 = vmatmul.mubr.bf16.gmra.mxu0 %v3594_v18  ;;  %4131 = vmatmul.mubr.bf16.gmra.mxu1 %v3596_v46  ;;  %v5083_v10 = vpop.eup %5082  ;;  %v3541_v51 = vadd.bf16 1065369472, %v3477_v47  ;;  %v3474_v19 = vpack.c.bf16 %v5081_v13, %v5079_v39  ;;  %v3603_v37 = vmul.bf16 %v3539_v52, %v3411_v53 }
 0x3cd   : > { %3977 = vmatprep.mubr.bf16.mxu0 %v3599_v6  ;;  %4138 = vmatprep.mubr.bf16.mxu1 %v3601_v9  ;;  %v5085_v7 = vpop.eup %5084 }
 0x3ce   : > { %v3476_v24 = vpack.c.bf16 %v5085_v7, %v5083_v10  ;;  %v3605_v60 = vmul.bf16 %v3541_v51, %v3413_v2  ;;  %v3538_v56 = vadd.bf16 1065369472, %v3474_v19 }
 0x3d0   : > { %v3540_v25 = vadd.bf16 1065369472, %v3476_v24  ;;  %v3602_v1 = vmul.bf16 %v3538_v56, %v3410_v49 }
 0x3d2   : > { %v3604_v28 = vmul.bf16 %v3540_v25, %v3412_v0 }
 0x3d4   : > { %3978 = vmatmul.mubr.bf16.gmra.mxu0 %v3598_v50  ;;  %4139 = vmatmul.mubr.bf16.gmra.mxu1 %v3600_v55 }
 0x3d5   : > { %3985 = vmatprep.mubr.bf16.mxu0 %v3603_v37  ;;  %4146 = vmatprep.mubr.bf16.mxu1 %v3605_v60 }
 0x3dc   : > { %3986 = vmatmul.mubr.bf16.gmra.mxu0 %v3602_v1  ;;  %4147 = vmatmul.mubr.bf16.gmra.mxu1 %v3604_v28 }
 0x406   : > { %v2464_v27 = vpop.f32.mrf.mxu0  ;;  %v2657_v23 = vpop.f32.mrf.mxu1 }
 0x407   : > { %v2465_v34 = vadd.f32 %v2464_v27, %v6849_v12  ;;  %v2658_v45 = vadd.f32 %v2657_v23, %v6851_v61 }
 0x408   : > { %v2466_v40 = vpop.f32.mrf.mxu0  ;;  %v2659_v57 = vpop.f32.mrf.mxu1 }
 0x409   : > { %v2467_v8 = vadd.f32 %v2466_v40, %v6865_v58  ;;  %v2660_v21 = vadd.f32 %v2659_v57, %v8570_v48 }
 0x40a   : > { %v2468_v29 = vpop.f32.mrf.mxu0  ;;  %v2661_v44 = vpop.f32.mrf.mxu1 }
 0x40b   : > { %v2469_v43 = vadd.f32 %v2468_v29, %v6849_v12  ;;  %v2662_v5 = vadd.f32 %v2661_v44, %v6851_v61 }
 0x40c   : > { %v2470_v17 = vpop.f32.mrf.mxu0  ;;  %v2663_v4 = vpop.f32.mrf.mxu1 }
 0x40d   : > { %v7578_v16 = vpack.c.bf16 %v2469_v43, %v2465_v34  ;;  %v7580_v31 = vpack.c.bf16 %v2662_v5, %v2658_v45  ;;  %v2471_v32 = vadd.f32 %v2470_v17, %v6865_v58  ;;  %v2664_v11 = vadd.f32 %v2663_v4, %v8570_v48 }
 0x40e   : > { %v2474_v59 = vpop.f32.mrf.mxu0  ;;  %v2667_v14 = vpop.f32.mrf.mxu1 }
 0x40f   : > { %v2838_v20 = vmul.bf16 1027030327, %v7578_v16  ;;  %v2840_v41 = vmul.bf16 1027030327, %v7580_v31  ;;  %v7586_v54 = vpack.c.bf16 %v2471_v32, %v2467_v8  ;;  %v7588_v38 = vpack.c.bf16 %v2664_v11, %v2660_v21 }
 0x410   : > { %v2475_v35 = vadd.f32 %v2474_v59, %v6849_v12  ;;  %v2668_v42 = vadd.f32 %v2667_v14, %v6851_v61  ;;  %v2476_v36 = vpop.f32.mrf.mxu0  ;;  %v2669_v18 = vpop.f32.mrf.mxu1  ;;  %v3414_v13 = vmul.bf16 1056980736, %v7578_v16  ;;  %v3416_v10 = vmul.bf16 1056980736, %v7580_v31 }
 0x411   : > { %v2902_v46 = vmul.bf16 %v2838_v20, %v7578_v16  ;;  %v2904_v63 = vmul.bf16 %v2840_v41, %v7580_v31  ;;  %v2839_v62 = vmul.bf16 1027030327, %v7586_v54  ;;  %v2841_v39 = vmul.bf16 1027030327, %v7588_v38 }
 0x412   : > { %v2477_v6 = vadd.f32 %v2476_v36, %v6865_v58  ;;  %v2670_v9 = vadd.f32 %v2669_v18, %v8570_v48  ;;  %v2478_v26 = vpop.f32.mrf.mxu0  ;;  %v2671_v47 = vpop.f32.mrf.mxu1  ;;  %v3415_v2 = vmul.bf16 1056980736, %v7586_v54  ;;  %v3417_v50 = vmul.bf16 1056980736, %v7588_v38 }
 0x413   : > { %v2966_v7 = vmul.bf16 %v2902_v46, %v7578_v16  ;;  %v2968_v33 = vmul.bf16 %v2904_v63, %v7580_v31  ;;  %v2903_v3 = vmul.bf16 %v2839_v62, %v7586_v54  ;;  %v2905_v52 = vmul.bf16 %v2841_v39, %v7588_v38 }
 0x414   : > { %v2479_v51 = vadd.f32 %v2478_v26, %v6849_v12  ;;  %v2672_v30 = vadd.f32 %v2671_v47, %v6851_v61  ;;  %v2480_v15 = vpop.f32.mrf.mxu0  ;;  %v2673_v53 = vpop.f32.mrf.mxu1 }
 0x415   : > { %v3030_v55 = vadd.bf16 %v2966_v7, %v7578_v16  ;;  %v3032_v19 = vadd.bf16 %v2968_v33, %v7580_v31  ;;  %v2967_v24 = vmul.bf16 %v2903_v3, %v7586_v54  ;;  %v2969_v37 = vmul.bf16 %v2905_v52, %v7588_v38 }
 0x416   : > { %v7612_v60 = vpack.c.bf16 %v2479_v51, %v2475_v35  ;;  %v7614_v56 = vpack.c.bf16 %v2672_v30, %v2668_v42  ;;  %v2481_v25 = vadd.f32 %v2480_v15, %v6865_v58  ;;  %v2674_v49 = vadd.f32 %v2673_v53, %v8570_v48  ;;  %v2484_v0 = vpop.f32.mrf.mxu0  ;;  %v2677_v1 = vpop.f32.mrf.mxu1 }
 0x417   : > { %v3094_v28 = vmul.bf16 1061961548, %v3030_v55  ;;  %v3096_v27 = vmul.bf16 1061961548, %v3032_v19  ;;  %v3031_v23 = vadd.bf16 %v2967_v24, %v7586_v54  ;;  %v3033_v40 = vadd.bf16 %v2969_v37, %v7588_v38 }
 0x418   : > { %v2842_v57 = vmul.bf16 1027030327, %v7612_v60  ;;  %v2844_v29 = vmul.bf16 1027030327, %v7614_v56  ;;  %v7622_v44 = vpack.c.bf16 %v2481_v25, %v2477_v6  ;;  %v7624_v34 = vpack.c.bf16 %v2674_v49, %v2670_v9  ;;  %v2486_v45 = vpop.f32.mrf.mxu0  ;;  %v2679_v17 = vpop.f32.mrf.mxu1 }
 0x419   : > { %v3186_v43 = vunpack.c.l.bf16 %v3094_v28  ;;  %v3190_v5 = vunpack.c.h.bf16 %v3094_v28  ;;  %v3188_v8 = vunpack.c.l.bf16 %v3096_v27  ;;  %v3192_v21 = vunpack.c.h.bf16 %v3096_v27 }
 0x41a   : > { %v3095_v4 = vmul.bf16 1061961548, %v3031_v23  ;;  %v3097_v32 = vmul.bf16 1061961548, %v3033_v40  ;;  %v2906_v11 = vmul.bf16 %v2842_v57, %v7612_v60  ;;  %v2908_v59 = vmul.bf16 %v2844_v29, %v7614_v56  ;;  %v2488_v18 = vpop.f32.mrf.mxu0  ;;  %v2681_v39 = vpop.f32.mrf.mxu1 }
 0x41b   : > { %5086 = vtanh.f32 %v3186_v43  ;;  %v2843_v14 = vmul.bf16 1027030327, %v7622_v44  ;;  %v2845_v20 = vmul.bf16 1027030327, %v7624_v34  ;;  %v2485_v41 = vadd.f32 %v2484_v0, %v6849_v12 }
 0x41c   : > { %5088 = vtanh.f32 %v3190_v5  ;;  %v3187_v35 = vunpack.c.l.bf16 %v3095_v4  ;;  %v3191_v42 = vunpack.c.h.bf16 %v3095_v4  ;;  %v3189_v36 = vunpack.c.l.bf16 %v3097_v32  ;;  %v2490_v30 = vpop.f32.mrf.mxu0  ;;  %v2683_v19 = vpop.f32.mrf.mxu1 }
 0x41d   : > { %5090 = vtanh.f32 %v3188_v8  ;;  %v3193_v46 = vunpack.c.h.bf16 %v3097_v32  ;;  %v2970_v63 = vmul.bf16 %v2906_v11, %v7612_v60  ;;  %v2972_v62 = vmul.bf16 %v2908_v59, %v7614_v56 }
 0x41e   : > { %5092 = vtanh.f32 %v3192_v21  ;;  %v2907_v6 = vmul.bf16 %v2843_v14, %v7622_v44  ;;  %v2909_v9 = vmul.bf16 %v2845_v20, %v7624_v34  ;;  %v2678_v26 = vadd.f32 %v2677_v1, %v6851_v61 }
 0x41f   : > { %5094 = vtanh.f32 %v3187_v35  ;;  %v3034_v47 = vadd.bf16 %v2970_v63, %v7612_v60  ;;  %v3036_v7 = vadd.bf16 %v2972_v62, %v7614_v56  ;;  %v2487_v33 = vadd.f32 %v2486_v45, %v6865_v58 }
 0x420   : > { %5096 = vtanh.f32 %v3191_v42  ;;  %v2971_v3 = vmul.bf16 %v2907_v6, %v7622_v44  ;;  %v2973_v52 = vmul.bf16 %v2909_v9, %v7624_v34  ;;  %v2680_v51 = vadd.f32 %v2679_v17, %v8570_v48 }
 0x421   : > { %5098 = vtanh.f32 %v3189_v36  ;;  %v3098_v15 = vmul.bf16 1061961548, %v3034_v47  ;;  %v3100_v53 = vmul.bf16 1061961548, %v3036_v7  ;;  %v2489_v55 = vadd.f32 %v2488_v18, %v6849_v12 }
 0x422   : > { %5100 = vtanh.f32 %v3193_v46  ;;  %v3035_v24 = vadd.bf16 %v2971_v3, %v7622_v44  ;;  %v3037_v37 = vadd.bf16 %v2973_v52, %v7624_v34  ;;  %v2682_v25 = vadd.f32 %v2681_v39, %v6851_v61 }
 0x423   : > { %v3194_v49 = vunpack.c.l.bf16 %v3098_v15  ;;  %v3198_v0 = vunpack.c.h.bf16 %v3098_v15  ;;  %v3196_v1 = vunpack.c.l.bf16 %v3100_v53  ;;  %v3200_v28 = vunpack.c.h.bf16 %v3100_v53  ;;  %v2494_v29 = vpop.f32.mrf.mxu0  ;;  %v2687_v8 = vpop.f32.mrf.mxu1 }
 0x424   : > { %v3099_v27 = vmul.bf16 1061961548, %v3035_v24  ;;  %v3101_v23 = vmul.bf16 1061961548, %v3037_v37  ;;  %v7646_v40 = vpack.c.bf16 %v2489_v55, %v2485_v41  ;;  %v7648_v57 = vpack.c.bf16 %v2682_v25, %v2678_v26 }
 0x425   : > { %5102 = vtanh.f32 %v3194_v49  ;;  %v2491_v45 = vadd.f32 %v2490_v30, %v6865_v58  ;;  %v2684_v43 = vadd.f32 %v2683_v19, %v8570_v48  ;;  %v2495_v5 = vadd.f32 %v2494_v29, %v6849_v12  ;;  %v2496_v32 = vpop.f32.mrf.mxu0  ;;  %v2689_v20 = vpop.f32.mrf.mxu1 }
 0x426   : > { %5104 = vtanh.f32 %v3198_v0  ;;  %v3195_v21 = vunpack.c.l.bf16 %v3099_v27  ;;  %v3199_v17 = vunpack.c.h.bf16 %v3099_v27  ;;  %v3197_v4 = vunpack.c.l.bf16 %v3101_v23 }
 0x427   : > { %5106 = vtanh.f32 %v3196_v1  ;;  %v3201_v11 = vunpack.c.h.bf16 %v3101_v23  ;;  %v2846_v59 = vmul.bf16 1027030327, %v7646_v40  ;;  %v2848_v14 = vmul.bf16 1027030327, %v7648_v57  ;;  %v2498_v18 = vpop.f32.mrf.mxu0  ;;  %v2691_v6 = vpop.f32.mrf.mxu1 }
 0x428   : > { %v7655_v41 = vpop.eup %5086  ;;  %5108 = vtanh.f32 %v3200_v28  ;;  %v7657_v35 = vpack.c.bf16 %v2491_v45, %v2487_v33  ;;  %v7659_v42 = vpack.c.bf16 %v2684_v43, %v2680_v51  ;;  %v2688_v36 = vadd.f32 %v2687_v8, %v6851_v61 }
 0x429   : > { %v7662_v46 = vpop.eup %5088  ;;  %5110 = vtanh.f32 %v3195_v21  ;;  %v2910_v63 = vmul.bf16 %v2846_v59, %v7646_v40  ;;  %v2912_v62 = vmul.bf16 %v2848_v14, %v7648_v57  ;;  %v2497_v39 = vadd.f32 %v2496_v32, %v6865_v58  ;;  %v2500_v33 = vpop.f32.mrf.mxu0 }
 0x42a   : > { %v7667_v9 = vpop.eup %5090  ;;  %5112 = vtanh.f32 %v3199_v17  ;;  %v2847_v26 = vmul.bf16 1027030327, %v7657_v35  ;;  %v2849_v47 = vmul.bf16 1027030327, %v7659_v42  ;;  %v2690_v7 = vadd.f32 %v2689_v20, %v8570_v48  ;;  %v2693_v15 = vpop.f32.mrf.mxu1 }
 0x42b   : > { %v7672_v3 = vpop.eup %5092  ;;  %5114 = vtanh.f32 %v3197_v4  ;;  %v2974_v52 = vmul.bf16 %v2910_v63, %v7646_v40  ;;  %v2976_v51 = vmul.bf16 %v2912_v62, %v7648_v57  ;;  %v2499_v30 = vadd.f32 %v2498_v18, %v6849_v12 }
 0x42c   : > { %v5095_v53 = vpop.eup %5094  ;;  %5116 = vtanh.f32 %v3201_v11  ;;  %v2911_v55 = vmul.bf16 %v2847_v26, %v7657_v35  ;;  %v2913_v19 = vmul.bf16 %v2849_v47, %v7659_v42  ;;  %v2692_v24 = vadd.f32 %v2691_v6, %v6851_v61 }
 0x42d   : > { %v5097_v37 = vpop.eup %5096  ;;  %v3038_v25 = vadd.bf16 %v2974_v52, %v7646_v40  ;;  %v3040_v49 = vadd.bf16 %v2976_v51, %v7648_v57  ;;  %v7682_v0 = vpack.c.bf16 %v2499_v30, %v2495_v5  ;;  %v2501_v1 = vadd.f32 %v2500_v33, %v6865_v58 }
 0x42e   : > { %v5099_v28 = vpop.eup %5098  ;;  %v2975_v27 = vmul.bf16 %v2911_v55, %v7657_v35  ;;  %v2977_v23 = vmul.bf16 %v2913_v19, %v7659_v42  ;;  %v7687_v29 = vpack.c.bf16 %v2692_v24, %v2688_v36  ;;  %v2694_v45 = vadd.f32 %v2693_v15, %v8570_v48 }
 0x42f   : > { %v5101_v43 = vpop.eup %5100  ;;  %v3102_v8 = vmul.bf16 1061961548, %v3038_v25  ;;  %v3104_v21 = vmul.bf16 1061961548, %v3040_v49  ;;  %v2850_v17 = vmul.bf16 1027030327, %v7682_v0  ;;  %v7691_v4 = vpack.c.bf16 %v2501_v1, %v2497_v39 }
 0x430   : > { %v3039_v5 = vadd.bf16 %v2975_v27, %v7657_v35  ;;  %v3041_v32 = vadd.bf16 %v2977_v23, %v7659_v42  ;;  %v2852_v11 = vmul.bf16 1027030327, %v7687_v29  ;;  %v7696_v59 = vpack.c.bf16 %v2694_v45, %v2690_v7 }
 0x431   : > { %v3202_v14 = vunpack.c.l.bf16 %v3102_v8  ;;  %v3206_v20 = vunpack.c.h.bf16 %v3102_v8  ;;  %v3204_v36 = vunpack.c.l.bf16 %v3104_v21  ;;  %v3208_v18 = vunpack.c.h.bf16 %v3104_v21 }
 0x432   : > { %v7698_v63 = vpop.eup %5102  ;;  %v3103_v62 = vmul.bf16 1061961548, %v3039_v5  ;;  %v3105_v6 = vmul.bf16 1061961548, %v3041_v32  ;;  %v2914_v26 = vmul.bf16 %v2850_v17, %v7682_v0  ;;  %v2916_v39 = vmul.bf16 %v2852_v11, %v7687_v29 }
 0x433   : > { %v7702_v47 = vpop.eup %5104  ;;  %5118 = vtanh.f32 %v3202_v14  ;;  %v2851_v33 = vmul.bf16 1027030327, %v7691_v4  ;;  %v2853_v7 = vmul.bf16 1027030327, %v7696_v59  ;;  %v3479_v52 = vpack.c.bf16 %v5097_v37, %v5095_v53 }
 0x434   : > { %v7706_v51 = vpop.eup %5106  ;;  %5120 = vtanh.f32 %v3206_v20  ;;  %v3203_v30 = vunpack.c.l.bf16 %v3103_v62  ;;  %v3207_v15 = vunpack.c.h.bf16 %v3103_v62  ;;  %v3205_v55 = vunpack.c.l.bf16 %v3105_v6 }
 0x435   : > { %v7708_v19 = vpop.eup %5108  ;;  %5122 = vtanh.f32 %v3204_v36  ;;  %v3209_v24 = vunpack.c.h.bf16 %v3105_v6  ;;  %v2978_v25 = vmul.bf16 %v2914_v26, %v7682_v0  ;;  %v2980_v49 = vmul.bf16 %v2916_v39, %v7687_v29 }
 0x436   : > { %v5111_v1 = vpop.eup %5110  ;;  %5124 = vtanh.f32 %v3208_v18  ;;  %v2915_v27 = vmul.bf16 %v2851_v33, %v7691_v4  ;;  %v2917_v53 = vmul.bf16 %v2853_v7, %v7696_v59  ;;  %v3543_v37 = vadd.bf16 1065369472, %v3479_v52 }
 0x437   : > { %v5113_v23 = vpop.eup %5112  ;;  %5126 = vtanh.f32 %v3203_v30  ;;  %v3042_v45 = vadd.bf16 %v2978_v25, %v7682_v0  ;;  %v3044_v8 = vadd.bf16 %v2980_v49, %v7687_v29  ;;  %v3481_v21 = vpack.c.bf16 %v5101_v43, %v5099_v28 }
 0x438   : > { %v7716_v17 = vpop.eup %5114  ;;  %5128 = vtanh.f32 %v3207_v15  ;;  %v2979_v5 = vmul.bf16 %v2915_v27, %v7691_v4  ;;  %v2981_v32 = vmul.bf16 %v2917_v53, %v7696_v59  ;;  %v3607_v11 = vmul.bf16 %v3543_v37, %v3415_v2 }
 0x439   : > { %v7722_v14 = vpop.eup %5116  ;;  %5130 = vtanh.f32 %v3205_v55  ;;  %v3106_v20 = vmul.bf16 1061961548, %v3042_v45  ;;  %v3108_v36 = vmul.bf16 1061961548, %v3044_v8  ;;  %v3545_v18 = vadd.bf16 1065369472, %v3481_v21 }
 0x43a   : > { %5132 = vtanh.f32 %v3209_v24  ;;  %v3043_v62 = vadd.bf16 %v2979_v5, %v7691_v4  ;;  %v3045_v28 = vadd.bf16 %v2981_v32, %v7696_v59  ;;  %3993 = vmatprep.mubr.bf16.mxu0 %v3607_v11  ;;  %v3478_v43 = vpack.c.bf16 %v7662_v46, %v7655_v41 }
 0x43b   : > { %v3210_v6 = vunpack.c.l.bf16 %v3106_v20  ;;  %v3214_v26 = vunpack.c.h.bf16 %v3106_v20  ;;  %v3212_v39 = vunpack.c.l.bf16 %v3108_v36  ;;  %v3216_v54 = vunpack.c.h.bf16 %v3108_v36 }
 0x43c   : > { %v3107_v2 = vmul.bf16 1061961548, %v3043_v62  ;;  %v3109_v33 = vmul.bf16 1061961548, %v3045_v28  ;;  %v3609_v7 = vmul.bf16 %v3545_v18, %v3417_v50  ;;  %v3542_v52 = vadd.bf16 1065369472, %v3478_v43  ;;  %v2504_v25 = vpop.f32.mrf.mxu0  ;;  %v2697_v49 = vpop.f32.mrf.mxu1 }
 0x43d   : > { %5134 = vtanh.f32 %v3210_v6  ;;  %v3480_v30 = vpack.c.bf16 %v7672_v3, %v7667_v9  ;;  %v3419_v15 = vmul.bf16 1056980736, %v7622_v44  ;;  %v3483_v55 = vpack.c.bf16 %v5113_v23, %v5111_v1 }
 0x43e   : > { %5136 = vtanh.f32 %v3214_v26  ;;  %v3211_v24 = vunpack.c.l.bf16 %v3107_v2  ;;  %v3215_v41 = vunpack.c.h.bf16 %v3107_v2  ;;  %v3213_v46 = vunpack.c.l.bf16 %v3109_v33  ;;  %4154 = vmatprep.mubr.bf16.mxu1 %v3609_v7  ;;  %v2506_v9 = vpop.f32.mrf.mxu0  ;;  %v2699_v3 = vpop.f32.mrf.mxu1 }
 0x43f   : > { %5138 = vtanh.f32 %v3212_v39  ;;  %v3217_v27 = vunpack.c.h.bf16 %v3109_v33  ;;  %v2505_v38 = vadd.f32 %v2504_v25, %v6849_v12  ;;  %v2698_v50 = vadd.f32 %v2697_v49, %v6851_v61 }
 0x440   : > { %v7735_v53 = vpop.eup %5118  ;;  %5140 = vtanh.f32 %v3216_v54  ;;  %v3606_v44 = vmul.bf16 %v3542_v52, %v3414_v13  ;;  %v3544_v1 = vadd.bf16 1065369472, %v3480_v30  ;;  %v3547_v37 = vadd.bf16 1065369472, %v3483_v55  ;;  %v2508_v32 = vpop.f32.mrf.mxu0 }
 0x441   : > { %v7739_v23 = vpop.eup %5120  ;;  %5142 = vtanh.f32 %v3211_v24  ;;  %v2507_v45 = vadd.f32 %v2506_v9, %v6865_v58  ;;  %v2700_v8 = vadd.f32 %v2699_v3, %v8570_v48  ;;  %v3421_v21 = vmul.bf16 1056980736, %v7624_v34  ;;  %v2701_v11 = vpop.f32.mrf.mxu1 }
 0x442   : > { %v7744_v5 = vpop.eup %5122  ;;  %5144 = vtanh.f32 %v3215_v41  ;;  %3994 = vmatmul.mubr.bf16.gmra.mxu0 %v3606_v44  ;;  %v3608_v16 = vmul.bf16 %v3544_v1, %v3416_v10  ;;  %v3611_v13 = vmul.bf16 %v3547_v37, %v3419_v15  ;;  %v3485_v20 = vpack.c.bf16 %v7722_v14, %v7716_v17  ;;  %v2510_v43 = vpop.f32.mrf.mxu0 }
 0x443   : > { %v7750_v36 = vpop.eup %5124  ;;  %5146 = vtanh.f32 %v3213_v46  ;;  %v2509_v18 = vadd.f32 %v2508_v32, %v6849_v12  ;;  %v2702_v34 = vadd.f32 %v2701_v11, %v6851_v61  ;;  %v3418_v62 = vmul.bf16 1056980736, %v7612_v60  ;;  %v2703_v6 = vpop.f32.mrf.mxu1 }
 0x444   : > { %v5127_v28 = vpop.eup %5126  ;;  %5148 = vtanh.f32 %v3217_v27  ;;  %4155 = vmatmul.mubr.bf16.gmra.mxu1 %v3608_v16  ;;  %4001 = vmatprep.mubr.bf16.mxu0 %v3611_v13  ;;  %v3549_v31 = vadd.bf16 1065369472, %v3485_v20  ;;  %v3482_v10 = vpack.c.bf16 %v7702_v47, %v7698_v63  ;;  %v3420_v17 = vmul.bf16 1056980736, %v7614_v56 }
 0x445   : > { %v5129_v14 = vpop.eup %5128  ;;  %v7758_v26 = vpack.c.bf16 %v2509_v18, %v2505_v38  ;;  %v7760_v39 = vpack.c.bf16 %v2702_v34, %v2698_v50  ;;  %v2511_v54 = vadd.f32 %v2510_v43, %v6865_v58  ;;  %v2704_v60 = vadd.f32 %v2703_v6, %v8570_v48 }
 0x446   : > { %v5131_v2 = vpop.eup %5130  ;;  %v3613_v33 = vmul.bf16 %v3549_v31, %v3421_v21  ;;  %v3546_v7 = vadd.bf16 1065369472, %v3482_v10  ;;  %v3484_v52 = vpack.c.bf16 %v7708_v19, %v7706_v51  ;;  %v3423_v30 = vmul.bf16 1056980736, %v7657_v35 }
 0x447   : > { %v5133_v63 = vpop.eup %5132  ;;  %v2854_v56 = vmul.bf16 1027030327, %v7758_v26  ;;  %v2856_v47 = vmul.bf16 1027030327, %v7760_v39  ;;  %v7769_v15 = vpack.c.bf16 %v2511_v54, %v2507_v45  ;;  %v7771_v55 = vpack.c.bf16 %v2704_v60, %v2700_v8 }
 0x448   : > { %4162 = vmatprep.mubr.bf16.mxu1 %v3613_v33  ;;  %v3610_v24 = vmul.bf16 %v3546_v7, %v3418_v62  ;;  %v3548_v41 = vadd.bf16 1065369472, %v3484_v52  ;;  %v3487_v46 = vpack.c.bf16 %v5129_v14, %v5127_v28  ;;  %v3425_v25 = vmul.bf16 1056980736, %v7659_v42 }
 0x449   : > { %v2918_v49 = vmul.bf16 %v2854_v56, %v7758_v26  ;;  %v2920_v51 = vmul.bf16 %v2856_v47, %v7760_v39  ;;  %v2855_v35 = vmul.bf16 1027030327, %v7769_v15  ;;  %v2857_v19 = vmul.bf16 1027030327, %v7771_v55 }
 0x44a   : > { %v7778_v27 = vpop.eup %5134  ;;  %4002 = vmatmul.mubr.bf16.gmra.mxu0 %v3610_v24  ;;  %v3612_v38 = vmul.bf16 %v3548_v41, %v3420_v17  ;;  %v3551_v50 = vadd.bf16 1065369472, %v3487_v46  ;;  %v3489_v9 = vpack.c.bf16 %v5133_v63, %v5131_v2  ;;  %v3422_v3 = vmul.bf16 1056980736, %v7646_v40 }
 0x44b   : > { %v7781_v44 = vpop.eup %5136  ;;  %v2982_v42 = vmul.bf16 %v2918_v49, %v7758_v26  ;;  %v2984_v1 = vmul.bf16 %v2920_v51, %v7760_v39  ;;  %v2919_v37 = vmul.bf16 %v2855_v35, %v7769_v15  ;;  %v2921_v45 = vmul.bf16 %v2857_v19, %v7771_v55 }
 0x44c   : > { %v7787_v8 = vpop.eup %5138  ;;  %4163 = vmatmul.mubr.bf16.gmra.mxu1 %v3612_v38  ;;  %v3615_v21 = vmul.bf16 %v3551_v50, %v3423_v30  ;;  %v3553_v32 = vadd.bf16 1065369472, %v3489_v9  ;;  %v3486_v11 = vpack.c.bf16 %v7739_v23, %v7735_v53  ;;  %v3424_v40 = vmul.bf16 1056980736, %v7648_v57  ;;  %v2514_v62 = vpop.f32.mrf.mxu0 }
 0x44d   : > { %v7792_v16 = vpop.eup %5140  ;;  %v3046_v13 = vadd.bf16 %v2982_v42, %v7758_v26  ;;  %v3048_v20 = vadd.bf16 %v2984_v1, %v7760_v39  ;;  %v2983_v18 = vmul.bf16 %v2919_v37, %v7769_v15  ;;  %v2985_v34 = vmul.bf16 %v2921_v45, %v7771_v55  ;;  %v2707_v28 = vpop.f32.mrf.mxu1 }
 0x44e   : > { %v7798_v43 = vpop.eup %5142  ;;  %v2515_v6 = vadd.f32 %v2514_v62, %v6849_v12  ;;  %v2708_v53 = vadd.f32 %v2707_v28, %v6851_v61  ;;  %4009 = vmatprep.mubr.bf16.mxu0 %v3615_v21  ;;  %v3617_v23 = vmul.bf16 %v3553_v32, %v3425_v25  ;;  %v3550_v31 = vadd.bf16 1065369472, %v3486_v11  ;;  %v2516_v2 = vpop.f32.mrf.mxu0 }
 0x44f   : > { %v7802_v10 = vpop.eup %5144  ;;  %v3110_v17 = vmul.bf16 1061961548, %v3046_v13  ;;  %v3112_v14 = vmul.bf16 1061961548, %v3048_v20  ;;  %v3047_v54 = vadd.bf16 %v2983_v18, %v7769_v15  ;;  %v3049_v60 = vadd.bf16 %v2985_v34, %v7771_v55  ;;  %v2709_v33 = vpop.f32.mrf.mxu1 }
 0x450   : > { %v7806_v7 = vpop.eup %5146  ;;  %v2517_v52 = vadd.f32 %v2516_v2, %v6865_v58  ;;  %v2710_v30 = vadd.f32 %v2709_v33, %v8570_v48  ;;  %4170 = vmatprep.mubr.bf16.mxu1 %v3617_v23  ;;  %v3614_v63 = vmul.bf16 %v3550_v31, %v3422_v3  ;;  %v3488_v56 = vpack.c.bf16 %v7750_v36, %v7744_v5  ;;  %v2518_v49 = vpop.f32.mrf.mxu0 }
 0x451   : > { %v7812_v47 = vpop.eup %5148  ;;  %v3218_v24 = vunpack.c.l.bf16 %v3110_v17  ;;  %v3222_v41 = vunpack.c.h.bf16 %v3110_v17  ;;  %v3220_v46 = vunpack.c.l.bf16 %v3112_v14  ;;  %v3224_v25 = vunpack.c.h.bf16 %v3112_v14  ;;  %v2711_v51 = vpop.f32.mrf.mxu1 }
 0x452   : > { %v3111_v35 = vmul.bf16 1061961548, %v3047_v54  ;;  %v3113_v19 = vmul.bf16 1061961548, %v3049_v60  ;;  %v2519_v38 = vadd.f32 %v2518_v49, %v6849_v12  ;;  %v2712_v50 = vadd.f32 %v2711_v51, %v6851_v61  ;;  %4010 = vmatmul.mubr.bf16.gmra.mxu0 %v3614_v63  ;;  %v2520_v9 = vpop.f32.mrf.mxu0 }
 0x453   : > { %5150 = vtanh.f32 %v3218_v24  ;;  %v2713_v3 = vpop.f32.mrf.mxu1  ;;  %v3552_v42 = vadd.bf16 1065369472, %v3488_v56  ;;  %v2521_v18 = vadd.f32 %v2520_v9, %v6865_v58 }
 0x454   : > { %5152 = vtanh.f32 %v3222_v41  ;;  %v3219_v1 = vunpack.c.l.bf16 %v3111_v35  ;;  %v3223_v37 = vunpack.c.h.bf16 %v3111_v35  ;;  %v3221_v45 = vunpack.c.l.bf16 %v3113_v19  ;;  %v2524_v13 = vpop.f32.mrf.mxu0 }
 0x455   : > { %5154 = vtanh.f32 %v3220_v46  ;;  %v3225_v21 = vunpack.c.h.bf16 %v3113_v19  ;;  %v7819_v32 = vpack.c.bf16 %v2519_v38, %v2515_v6  ;;  %v7821_v11 = vpack.c.bf16 %v2712_v50, %v2708_v53  ;;  %v2717_v20 = vpop.f32.mrf.mxu1 }
 0x456   : > { %5156 = vtanh.f32 %v3224_v25  ;;  %v2714_v34 = vadd.f32 %v2713_v3, %v8570_v48  ;;  %v2525_v62 = vadd.f32 %v2524_v13, %v6849_v12  ;;  %v2718_v31 = vadd.f32 %v2717_v20, %v6851_v61  ;;  %v2526_v6 = vpop.f32.mrf.mxu0 }
 0x457   : > { %8592 = vst [vmem:[#allocation48_spill] sm:$0xff] %v7819_v32  ;;  %8593 = vst [vmem:[#allocation58_spill] sm:$0xff] %v7821_v11  ;;  %5158 = vtanh.f32 %v3219_v1  ;;  %v2858_v28 = vmul.bf16 1027030327, %v7819_v32  ;;  %v2860_v23 = vmul.bf16 1027030327, %v7821_v11  ;;  %v2719_v17 = vpop.f32.mrf.mxu1  ;;  %v7829_v53 = vpack.c.bf16 %v2521_v18, %v2517_v52 }
 0x458   : > { %5160 = vtanh.f32 %v3223_v37  ;;  %v7831_v14 = vpack.c.bf16 %v2714_v34, %v2710_v30  ;;  %v2527_v54 = vadd.f32 %v2526_v6, %v6865_v58  ;;  %v2720_v33 = vadd.f32 %v2719_v17, %v8570_v48  ;;  %v2528_v63 = vpop.f32.mrf.mxu0 }
 0x459   : > { %5162 = vtanh.f32 %v3221_v45  ;;  %v2922_v60 = vmul.bf16 %v2858_v28, %v7819_v32  ;;  %v2924_v2 = vmul.bf16 %v2860_v23, %v7821_v11  ;;  %v2721_v56 = vpop.f32.mrf.mxu1  ;;  %v2859_v24 = vmul.bf16 1027030327, %v7829_v53 }
 0x45a   : > { %8594 = vst [vmem:[#allocation61_spill] sm:$0xff] %v7831_v14  ;;  %5164 = vtanh.f32 %v3225_v21  ;;  %v2861_v41 = vmul.bf16 1027030327, %v7831_v14  ;;  %v2529_v52 = vadd.f32 %v2528_v63, %v6849_v12  ;;  %v2722_v25 = vadd.f32 %v2721_v56, %v6851_v61  ;;  %v2530_v49 = vpop.f32.mrf.mxu0 }
 0x45b   : > { %v2986_v30 = vmul.bf16 %v2922_v60, %v7819_v32  ;;  %v2988_v46 = vmul.bf16 %v2924_v2, %v7821_v11  ;;  %v2723_v51 = vpop.f32.mrf.mxu1  ;;  %v3616_v35 = vmul.bf16 %v3552_v42, %v3424_v40  ;;  %v2923_v19 = vmul.bf16 %v2859_v24, %v7829_v53 }
 0x45c   : > { %v2925_v38 = vmul.bf16 %v2861_v41, %v7831_v14  ;;  %v7847_v50 = vpack.c.bf16 %v2529_v52, %v2525_v62  ;;  %v2531_v9 = vadd.f32 %v2530_v49, %v6865_v58  ;;  %v7852_v37 = vpack.c.bf16 %v2722_v25, %v2718_v31  ;;  %v2534_v21 = vpop.f32.mrf.mxu0 }
 0x45d   : > { %v3050_v3 = vadd.bf16 %v2986_v30, %v7819_v32  ;;  %v3052_v1 = vadd.bf16 %v2988_v46, %v7821_v11  ;;  %v2724_v45 = vadd.f32 %v2723_v51, %v8570_v48  ;;  %v2727_v13 = vpop.f32.mrf.mxu1  ;;  %4171 = vmatmul.mubr.bf16.gmra.mxu1 %v3616_v35  ;;  %v2987_v57 = vmul.bf16 %v2923_v19, %v7829_v53 }
 0x45e   : > { %8595 = vst [vmem:[#allocation49_spill] sm:$0xff] %v7847_v50  ;;  %8596 = vst [vmem:[#allocation55_spill] sm:$0xff] %v7852_v37  ;;  %v2989_v40 = vmul.bf16 %v2925_v38, %v7831_v14  ;;  %v2862_v42 = vmul.bf16 1027030327, %v7847_v50  ;;  %v7858_v20 = vpack.c.bf16 %v2531_v9, %v2527_v54  ;;  %v2864_v62 = vmul.bf16 1027030327, %v7852_v37  ;;  %v2536_v23 = vpop.f32.mrf.mxu0 }
 0x45f   : > { %v3114_v18 = vmul.bf16 1061961548, %v3050_v3  ;;  %v3116_v34 = vmul.bf16 1061961548, %v3052_v1  ;;  %v7861_v28 = vpack.c.bf16 %v2724_v45, %v2720_v33  ;;  %v2729_v31 = vpop.f32.mrf.mxu1  ;;  %v3051_v17 = vadd.bf16 %v2987_v57, %v7829_v53 }
 0x460   : > { %8597 = vst [vmem:[#allocation57_spill] sm:$0xff] %v7858_v20  ;;  %v7863_v6 = vpop.eup %5150  ;;  %v3053_v60 = vadd.bf16 %v2989_v40, %v7831_v14  ;;  %v2926_v2 = vmul.bf16 %v2862_v42, %v7847_v50  ;;  %v2863_v63 = vmul.bf16 1027030327, %v7858_v20  ;;  %v2538_v33 = vpop.f32.mrf.mxu0  ;;  %v2928_v35 = vmul.bf16 %v2864_v62, %v7852_v37 }
 0x461   : > { %8598 = vst [vmem:[#allocation62_spill] sm:$0xff] %v7861_v28  ;;  %v7869_v54 = vpop.eup %5152  ;;  %v3226_v56 = vunpack.c.l.bf16 %v3114_v18  ;;  %v3230_v24 = vunpack.c.h.bf16 %v3114_v18  ;;  %v3228_v41 = vunpack.c.l.bf16 %v3116_v34  ;;  %v3232_v52 = vunpack.c.h.bf16 %v3116_v34  ;;  %v2731_v30 = vpop.f32.mrf.mxu1 }
 0x462   : > { %v7871_v46 = vpop.eup %5154  ;;  %v3115_v25 = vmul.bf16 1061961548, %v3051_v17  ;;  %v3117_v49 = vmul.bf16 1061961548, %v3053_v60  ;;  %v2990_v51 = vmul.bf16 %v2926_v2, %v7847_v50  ;;  %v2927_v38 = vmul.bf16 %v2863_v63, %v7858_v20  ;;  %v2540_v1 = vpop.f32.mrf.mxu0 }
 0x463   : > { %v7875_v19 = vpop.eup %5156  ;;  %5166 = vtanh.f32 %v3226_v56  ;;  %v2865_v9 = vmul.bf16 1027030327, %v7861_v28  ;;  %v2535_v3 = vadd.f32 %v2534_v21, %v6849_v12  ;;  %v2733_v45 = vpop.f32.mrf.mxu1  ;;  %v2992_v60 = vmul.bf16 %v2928_v35, %v7852_v37 }
 0x464   : > { %v7880_v57 = vpop.eup %5158  ;;  %5168 = vtanh.f32 %v3230_v24  ;;  %v3227_v40 = vunpack.c.l.bf16 %v3115_v25  ;;  %v3231_v42 = vunpack.c.h.bf16 %v3115_v25  ;;  %v3229_v18 = vunpack.c.l.bf16 %v3117_v49  ;;  %v2544_v2 = vpop.f32.mrf.mxu0 }
 0x465   : > { %v7882_v34 = vpop.eup %5160  ;;  %5170 = vtanh.f32 %v3228_v41  ;;  %v3233_v62 = vunpack.c.h.bf16 %v3117_v49  ;;  %v3054_v17 = vadd.bf16 %v2990_v51, %v7847_v50  ;;  %v2737_v63 = vpop.f32.mrf.mxu1  ;;  %v2991_v21 = vmul.bf16 %v2927_v38, %v7858_v20 }
 0x466   : > { %v7886_v56 = vpop.eup %5162  ;;  %5172 = vtanh.f32 %v3232_v52  ;;  %v2929_v24 = vmul.bf16 %v2865_v9, %v7861_v28  ;;  %v2728_v25 = vadd.f32 %v2727_v13, %v6851_v61  ;;  %v3056_v49 = vadd.bf16 %v2992_v60, %v7852_v37  ;;  %v2546_v35 = vpop.f32.mrf.mxu0 }
 0x467   : > { %v7891_v5 = vpop.eup %5164  ;;  %5174 = vtanh.f32 %v3227_v40  ;;  %v3118_v41 = vmul.bf16 1061961548, %v3054_v17  ;;  %v2537_v51 = vadd.f32 %v2536_v23, %v6865_v58  ;;  %v2739_v36 = vpop.f32.mrf.mxu1  ;;  %v3055_v22 = vadd.bf16 %v2991_v21, %v7858_v20 }
 0x468   : > { %5176 = vtanh.f32 %v3231_v42  ;;  %v2993_v52 = vmul.bf16 %v2929_v24, %v7861_v28  ;;  %v2730_v38 = vadd.f32 %v2729_v31, %v8570_v48  ;;  %v3120_v50 = vmul.bf16 1061961548, %v3056_v49  ;;  %v2548_v11 = vpop.f32.mrf.mxu0 }
 0x469   : > { %5178 = vtanh.f32 %v3229_v18  ;;  %v3234_v9 = vunpack.c.l.bf16 %v3118_v41  ;;  %v3238_v13 = vunpack.c.h.bf16 %v3118_v41  ;;  %v7898_v40 = vpop.f32.mrf.mxu1  ;;  %v3119_v17 = vmul.bf16 1061961548, %v3055_v22 }
 0x46a   : > { %5180 = vtanh.f32 %v3233_v62  ;;  %v3057_v23 = vadd.bf16 %v2993_v52, %v7861_v28  ;;  %v2539_v60 = vadd.f32 %v2538_v33, %v6849_v12  ;;  %v3236_v42 = vunpack.c.l.bf16 %v3120_v50  ;;  %v7903_v37 = vpop.f32.mrf.mxu0 }
 0x46b   : > { %5182 = vtanh.f32 %v3234_v9  ;;  %v3240_v21 = vunpack.c.h.bf16 %v3120_v50  ;;  %v2732_v24 = vadd.f32 %v2731_v30, %v6851_v61  ;;  %v7905_v31 = vpop.f32.mrf.mxu1  ;;  %v3235_v18 = vunpack.c.l.bf16 %v3119_v17 }
 0x46c   : > { %5184 = vtanh.f32 %v3238_v13  ;;  %v3239_v41 = vunpack.c.h.bf16 %v3119_v17  ;;  %v3121_v49 = vmul.bf16 1061961548, %v3057_v23  ;;  %v7907_v62 = vpack.c.bf16 %v2539_v60, %v2535_v3  ;;  %v7912_v52 = vpop.f32.mrf.mxu0 }
 0x46d   : > { %5186 = vtanh.f32 %v3236_v42  ;;  %v7909_v22 = vpack.c.bf16 %v2732_v24, %v2728_v25  ;;  %v2541_v33 = vadd.f32 %v2540_v1, %v6865_v58  ;;  %v7914_v50 = vpop.f32.mrf.mxu1  ;;  %v2734_v28 = vadd.f32 %v2733_v45, %v8570_v48 }
 0x46e   : > { %8599 = vst [vmem:[#allocation54_spill] sm:$0xff] %v7907_v62  ;;  %5188 = vtanh.f32 %v3240_v21  ;;  %v3237_v30 = vunpack.c.l.bf16 %v3121_v49  ;;  %v3241_v9 = vunpack.c.h.bf16 %v3121_v49  ;;  %v2866_v13 = vmul.bf16 1027030327, %v7907_v62  ;;  %v7921_v25 = vpop.f32.mrf.mxu0 }
 0x46f   : > { %8600 = vst [vmem:[#allocation56_spill] sm:$0xff] %v7909_v22  ;;  %5190 = vtanh.f32 %v3235_v18  ;;  %v2868_v17 = vmul.bf16 1027030327, %v7909_v22  ;;  %v7919_v3 = vpack.c.bf16 %v2541_v33, %v2537_v51  ;;  %v7923_v23 = vpop.f32.mrf.mxu1  ;;  %v7927_v60 = vpack.c.bf16 %v2734_v28, %v2730_v38 }
 0x470   : > { %v7925_v1 = vpop.eup %5166  ;;  %5192 = vtanh.f32 %v3239_v41  ;;  %v2545_v42 = vadd.f32 %v2544_v2, %v6849_v12  ;;  %v2738_v45 = vadd.f32 %v2737_v63, %v6851_v61  ;;  %v2930_v24 = vmul.bf16 %v2866_v13, %v7907_v62  ;;  %v7936_v49 = vpop.f32.mrf.mxu0 }
 0x471   : > { %8601 = vst [vmem:[#allocation52_spill] sm:$0xff] %v7919_v3  ;;  %8602 = vst [vmem:[#allocation53_spill] sm:$0xff] %v7925_v1  ;;  %v7931_v21 = vpop.eup %5168  ;;  %5194 = vtanh.f32 %v3237_v30  ;;  %v2932_v51 = vmul.bf16 %v2868_v17, %v7909_v22  ;;  %v2867_v18 = vmul.bf16 1027030327, %v7919_v3  ;;  %v7938_v33 = vpop.f32.mrf.mxu1  ;;  %v2869_v28 = vmul.bf16 1027030327, %v7927_v60 }
 0x472   : > { %8603 = vst [vmem:[#allocation50_spill] sm:$0xff] %v7927_v60  ;;  %8604 = vst [vmem:[#allocation51_spill] sm:$0xff] %v7931_v21  ;;  %v7940_v41 = vpop.eup %5170  ;;  %5196 = vtanh.f32 %v3241_v9  ;;  %v7944_v2 = vadd.f32 %v2546_v35, %v6865_v58  ;;  %v7947_v63 = vadd.f32 %v2739_v36, %v8570_v48  ;;  %v2994_v30 = vmul.bf16 %v2930_v24, %v7907_v62 }
 0x473   : > { %8605 = vst [vmem:[#allocation63_spill] sm:$0xff] %v7940_v41  ;;  %v7949_v38 = vpop.eup %5172  ;;  %v2996_v13 = vmul.bf16 %v2932_v51, %v7909_v22  ;;  %v2931_v17 = vmul.bf16 %v2867_v18, %v7919_v3  ;;  %v8607_v20 = vpack.c.bf16 %v7802_v10, %v7798_v43  ;;  %v7957_v41 = vpop.f32.mrf.mxu0  ;;  %v2933_v36 = vmul.bf16 %v2869_v28, %v7927_v60 }
 0x474   : > { %8606 = vst [vmem:[#allocation59_spill] sm:$0xff] %v7949_v38  ;;  %v7959_v21 = vpop.f32.mrf.mxu1  ;;  %v7961_v35 = vpop.eup %5174  ;;  %v3429_v38 = vmul.bf16 1056980736, %v7696_v59  ;;  %v3493_v24 = vpack.c.bf16 %v7812_v47, %v7806_v7  ;;  %v2549_v51 = vadd.f32 %v2548_v11, %v6849_v12  ;;  %v3058_v43 = vadd.bf16 %v2994_v30, %v7907_v62 }
 0x475   : > { %v3555_v9 = vadd.bf16 1065369472, %v8607_v20  ;;  %v7968_v18 = vpop.eup %5176  ;;  %v3060_v10 = vadd.bf16 %v2996_v13, %v7909_v22  ;;  %v2995_v20 = vmul.bf16 %v2931_v17, %v7919_v3  ;;  %v8608_v1 = vmul.bf16 1056980736, %v7691_v4  ;;  %v7975_v14 = vpop.f32.mrf.mxu0 }
 0x476   : > { %v7977_v28 = vpop.f32.mrf.mxu1  ;;  %v7979_v59 = vpop.eup %5178  ;;  %v2997_v7 = vmul.bf16 %v2933_v36, %v7927_v60  ;;  %v3557_v12 = vadd.bf16 1065369472, %v3493_v24  ;;  %v7982_v47 = vpack.c.bf16 %v2549_v51, %v2545_v42  ;;  %v2742_v11 = vadd.f32 %v7898_v40, %v6851_v61 }
 0x477   : > { %v3619_v32 = vmul.bf16 %v3555_v9, %v8608_v1  ;;  %v7986_v30 = vpop.eup %5180  ;;  %v3122_v13 = vmul.bf16 1061961548, %v3058_v43  ;;  %v3124_v17 = vmul.bf16 1061961548, %v3060_v10  ;;  %v3059_v4 = vadd.bf16 %v2995_v20, %v7919_v3  ;;  %v7990_v9 = vpop.f32.mrf.mxu0 }
 0x478   : > { %8609 = vst [vmem:[#allocation60_spill] sm:$0xff] %v7982_v47  ;;  %8610 = vst [vmem:[#allocation64_spill] sm:$0xff] %v7986_v30  ;;  %v3426_v1 = vmul.bf16 1056980736, %v7682_v0  ;;  %v7992_v22 = vpop.f32.mrf.mxu1  ;;  %v7994_v36 = vpop.eup %5182  ;;  %v3061_v42 = vadd.bf16 %v2997_v7, %v7927_v60  ;;  %v3621_v24 = vmul.bf16 %v3557_v12, %v3429_v38  ;;  %v2870_v61 = vmul.bf16 1027030327, %v7982_v47 }
 0x479   : > { %4017 = vmatprep.mubr.bf16.mxu0 %v3619_v32  ;;  %8611 = vst [vmem:[#allocation65_spill] sm:$0xff] %v7994_v36  ;;  %v7998_v40 = vpack.c.bf16 %v2742_v11, %v2738_v45  ;;  %v8000_v51 = vpop.eup %5184  ;;  %v3242_v43 = vunpack.c.l.bf16 %v3122_v13  ;;  %v3246_v10 = vunpack.c.h.bf16 %v3122_v13  ;;  %v3244_v32 = vunpack.c.l.bf16 %v3124_v17  ;;  %v8002_v0 = vpop.f32.mrf.mxu0 }
 0x47a   : > { %8613 = vst [vmem:[#allocation67_spill] sm:$0xff] %v8000_v51  ;;  %v3248_v20 = vunpack.c.h.bf16 %v3124_v17  ;;  %v8004_v62 = vpop.f32.mrf.mxu1  ;;  %v8006_v3 = vpop.eup %5186  ;;  %v3123_v36 = vmul.bf16 1061961548, %v3059_v4  ;;  %v3125_v30 = vmul.bf16 1061961548, %v3061_v42  ;;  %4178 = vmatprep.mubr.bf16.mxu1 %v3621_v24  ;;  %v2934_v38 = vmul.bf16 %v2870_v61, %v7982_v47 }
 0x47b   : > { %8612 = vst [vmem:[#allocation66_spill] sm:$0xff] %v7998_v40  ;;  %8614 = vst [vmem:[#allocation68_spill] sm:$0xff] %v8006_v3  ;;  %v2872_v45 = vmul.bf16 1027030327, %v7998_v40  ;;  %v8010_v7 = vpop.eup %5188  ;;  %5198 = vtanh.f32 %v3242_v43  ;;  %v3490_v12 = vpack.c.bf16 %v7781_v44, %v7778_v27  ;;  %v3428_v11 = vmul.bf16 1056980736, %v7687_v29  ;;  %v8017_v17 = vpop.f32.mrf.mxu0 }
 0x47c   : > { %8615 = vst [vmem:[#allocation69_spill] sm:$0xff] %v8010_v7  ;;  %v3492_v13 = vpack.c.bf16 %v7792_v16, %v7787_v8  ;;  %v8019_v4 = vpop.f32.mrf.mxu1  ;;  %v8021_v42 = vpop.eup %5190  ;;  %5200 = vtanh.f32 %v3246_v10  ;;  %v3243_v24 = vunpack.c.l.bf16 %v3123_v36  ;;  %v3247_v61 = vunpack.c.h.bf16 %v3123_v36 }
 0x47d   : > { %v3245_v60 = vunpack.c.l.bf16 %v3125_v30  ;;  %v8023_v7 = vpop.eup %5192  ;;  %5202 = vtanh.f32 %v3244_v32  ;;  %v3249_v43 = vunpack.c.h.bf16 %v3125_v30  ;;  %v2998_v27 = vmul.bf16 %v2934_v38, %v7982_v47  ;;  %v8027_v44 = vpop.f32.mrf.mxu0 }
 0x47e   : > { %8616 = vst [vmem:[#allocation70_spill] sm:$0xff] %v8023_v7  ;;  %v2936_v29 = vmul.bf16 %v2872_v45, %v7998_v40  ;;  %v8029_v8 = vpop.f32.mrf.mxu1  ;;  %v8031_v16 = vpop.eup %5194  ;;  %5204 = vtanh.f32 %v3248_v20  ;;  %v3554_v3 = vadd.bf16 1065369472, %v3490_v12  ;;  %v3556_v10 = vadd.bf16 1065369472, %v3492_v13 }
 0x47f   : > { %v2551_v36 = vadd.f32 %v7903_v37, %v6865_v58  ;;  %v8035_v51 = vpop.eup %5196  ;;  %5206 = vtanh.f32 %v3243_v24  ;;  %v3062_v30 = vadd.bf16 %v2998_v27, %v7982_v47  ;;  %v2744_v38 = vadd.f32 %v7905_v31, %v8570_v48  ;;  %v8041_v45 = vpop.f32.mrf.mxu0  ;;  %v8055_v48 = vld [vmem:[%s8414_s9] ss:$0 sm:$0xff] }
 0x480   : > { %v3000_v32 = vmul.bf16 %v2936_v29, %v7998_v40  ;;  %v8043_v7 = vpop.f32.mrf.mxu1  ;;  %5208 = vtanh.f32 %v3247_v61  ;;  %v3618_v20 = vmul.bf16 %v3554_v3, %v3426_v1  ;;  %v3620_v12 = vmul.bf16 %v3556_v10, %v3428_v11 }
 0x481   : > { %v8046_v13 = vpack.c.bf16 %v2551_v36, %v7944_v2  ;;  %5210 = vtanh.f32 %v3245_v60  ;;  %v3126_v58 = vmul.bf16 1061961548, %v3062_v30  ;;  %v8050_v24 = vpack.c.bf16 %v2744_v38, %v7947_v63  ;;  %v8057_v31 = vpop.f32.mrf.mxu0 }
 0x482   : > { %v3064_v37 = vadd.bf16 %v3000_v32, %v7998_v40  ;;  %v8059_v61 = vpop.f32.mrf.mxu1  ;;  %5212 = vtanh.f32 %v3249_v43  ;;  %4018 = vmatmul.mubr.bf16.gmra.mxu0 %v3618_v20  ;;  %4179 = vmatmul.mubr.bf16.gmra.mxu1 %v3620_v12  ;;  %v4493_v60 = vadd.f32 %v7921_v25, %v7912_v52  ;;  %v4605_v2 = vadd.f32 %v7923_v23, %v7914_v50 }
 0x483   : > { %v2871_v3 = vmul.bf16 1027030327, %v8046_v13  ;;  %v3250_v63 = vunpack.c.l.bf16 %v3126_v58  ;;  %v3254_v1 = vunpack.c.h.bf16 %v3126_v58  ;;  %v2873_v27 = vmul.bf16 1027030327, %v8050_v24  ;;  %v8067_v29 = vpop.f32.mrf.mxu0 }
 0x484   : > { %v3128_v11 = vmul.bf16 1061961548, %v3064_v37  ;;  %v8069_v10 = vpop.f32.mrf.mxu1  ;;  %v3940_v36 = vadd.f32 %v4493_v60, %v8055_v48  ;;  %v3431_v30 = vmul.bf16 1056980736, %v7769_v15  ;;  %v3495_v52 = vpack.c.bf16 %v7882_v34, %v7880_v57 }
 0x485   : > { %v2935_v43 = vmul.bf16 %v2871_v3, %v8046_v13  ;;  %5214 = vtanh.f32 %v3250_v63  ;;  %v2937_v23 = vmul.bf16 %v2873_v27, %v8050_v24  ;;  %v8077_v32 = vpop.f32.mrf.mxu0  ;;  %v3433_v37 = vmul.bf16 1056980736, %v7771_v55 }
 0x486   : > { %v3252_v50 = vunpack.c.l.bf16 %v3128_v11  ;;  %v3256_v25 = vunpack.c.h.bf16 %v3128_v11  ;;  %v8079_v38 = vpop.f32.mrf.mxu1  ;;  %5216 = vtanh.f32 %v3254_v1  ;;  %v4101_v12 = vadd.f32 %v4605_v2, %v3940_v36  ;;  %v8617_v2 = vld [vmem:[#allocation18_spill] sm:$0xff] }
 0x487   : > { %v2999_v20 = vmul.bf16 %v2935_v43, %v8046_v13  ;;  %v3559_v58 = vadd.bf16 1065369472, %v3495_v52  ;;  %v3001_v15 = vmul.bf16 %v2937_v23, %v8050_v24  ;;  %v3497_v57 = vpack.c.bf16 %v7891_v5, %v7886_v56  ;;  %v8086_v34 = vpop.f32.mrf.mxu0 }
 0x488   : > { %5218 = vtanh.f32 %v3252_v50  ;;  %v8088_v3 = vpop.f32.mrf.mxu1  ;;  %v8090_v60 = vpop.eup %5198  ;;  %v4227_v1 = vadd.f32 %v4101_v12, %v8617_v2  ;;  %v3430_v5 = vmul.bf16 1056980736, %v7758_v26  ;;  %v3494_v56 = vpack.c.bf16 %v7869_v54, %v7863_v6 }
 0x489   : > { %5220 = vtanh.f32 %v3256_v25  ;;  %v3063_v63 = vadd.bf16 %v2999_v20, %v8046_v13  ;;  %v3623_v11 = vmul.bf16 %v3559_v58, %v3431_v30  ;;  %v8094_v27 = vpop.eup %5200  ;;  %v3065_v55 = vadd.bf16 %v3001_v15, %v8050_v24  ;;  %v8100_v36 = vpop.f32.mrf.mxu0 }
 0x48a   : > { %v3561_v43 = vadd.bf16 1065369472, %v3497_v57  ;;  %v8102_v52 = vpop.f32.mrf.mxu1  ;;  %v8104_v50 = vpop.eup %5202  ;;  %4259 = vst [vmem:[%s8108_s26] sm:$0xff] %v4227_v1  ;;  %v3432_v30 = vmul.bf16 1056980736, %v7760_v39  ;;  %v3496_v26 = vpack.c.bf16 %v7875_v19, %v7871_v46  ;;  %v4496_v6 = vadd.f32 %v7957_v41, %v7936_v49 }
 0x48b   : > { %v3127_v25 = vmul.bf16 1061961548, %v3063_v63  ;;  %4025 = vmatprep.mubr.bf16.mxu0 %v3623_v11  ;;  %v8116_v54 = vpop.eup %5204  ;;  %v3129_v23 = vmul.bf16 1061961548, %v3065_v55  ;;  %v3558_v12 = vadd.bf16 1065369472, %v3494_v56  ;;  %v4608_v58 = vadd.f32 %v7959_v21, %v7938_v33  ;;  %v8120_v15 = vpop.f32.mrf.mxu0 }
 0x48c   : > { %v3625_v20 = vmul.bf16 %v3561_v43, %v3433_v37  ;;  %v8122_v57 = vpop.f32.mrf.mxu1  ;;  %v8124_v63 = vpop.eup %5206  ;;  %v3560_v46 = vadd.bf16 1065369472, %v3496_v26  ;;  %v3943_v19 = vadd.f32 %v4496_v6, %v8055_v48  ;;  %v4499_v21 = vadd.f32 %v7990_v9, %v7975_v14 }
 0x48d   : > { %v3251_v39 = vunpack.c.l.bf16 %v3127_v25  ;;  %v3255_v2 = vunpack.c.h.bf16 %v3127_v25  ;;  %v8127_v49 = vpop.eup %5208  ;;  %v3253_v41 = vunpack.c.l.bf16 %v3129_v23  ;;  %v3257_v1 = vunpack.c.h.bf16 %v3129_v23  ;;  %v8131_v33 = vpop.f32.mrf.mxu0 }
 0x48e   : > { %4186 = vmatprep.mubr.bf16.mxu1 %v3625_v20  ;;  %v3622_v37 = vmul.bf16 %v3558_v12, %v3430_v5  ;;  %v8133_v11 = vpop.f32.mrf.mxu1  ;;  %v8135_v55 = vpop.eup %5210  ;;  %v3624_v43 = vmul.bf16 %v3560_v46, %v3432_v30  ;;  %v4104_v56 = vadd.f32 %v4608_v58, %v3943_v19  ;;  %v3948_v26 = vadd.f32 %v4499_v21, %v8055_v48  ;;  %v8618_v30 = vld [vmem:[#allocation16_spill] sm:$0xff]  ;;  %v8622_v21 = vld [vmem:[#allocation53_spill] sm:$0xff] }
 0x48f   : > { %5222 = vtanh.f32 %v3251_v39  ;;  %v8137_v25 = vpop.eup %5212  ;;  %v4611_v5 = vadd.f32 %v7992_v22, %v7977_v28  ;;  %v3499_v14 = vpack.c.bf16 %v7968_v18, %v7961_v35  ;;  %v8144_v9 = vpop.f32.mrf.mxu0  ;;  %v3435_v20 = vmul.bf16 1056980736, %v7829_v53  ;;  %v8619_v12 = vld [vmem:[#allocation64_spill] sm:$0xff]  ;;  %v8620_v28 = vld [vmem:[#allocation61_spill] sm:$0xff]  ;;  %v8623_v53 = vld [vmem:[#allocation51_spill] sm:$0xff] }
 0x490   : > { %5224 = vtanh.f32 %v3255_v2  ;;  %4026 = vmatmul.mubr.bf16.gmra.mxu0 %v3622_v37  ;;  %v8146_v6 = vpop.f32.mrf.mxu1  ;;  %4187 = vmatmul.mubr.bf16.gmra.mxu1 %v3624_v43  ;;  %v4228_v23 = vadd.f32 %v4104_v56, %v8618_v30  ;;  %v3501_v58 = vpack.c.bf16 %v8619_v12, %v7979_v59  ;;  %v3437_v2 = vmul.bf16 1056980736, %v8620_v28  ;;  %v8624_v59 = vld [vmem:[#allocation63_spill] sm:$0xff]  ;;  %v8627_v12 = vld [vmem:[#allocation58_spill] sm:$0xff] }
 0x491   : > { %5226 = vtanh.f32 %v3253_v41  ;;  %v4109_v39 = vadd.f32 %v4611_v5, %v3948_v26  ;;  %v3563_v22 = vadd.bf16 1065369472, %v3499_v14  ;;  %v8153_v46 = vpop.f32.mrf.mxu0  ;;  %v8621_v41 = vld [vmem:[#allocation48_spill] sm:$0xff]  ;;  %v3498_v43 = vpack.c.bf16 %v8623_v53, %v8622_v21  ;;  %v8626_v5 = vld [vmem:[#allocation17_spill] sm:$0xff] }
 0x492   : > { %5228 = vtanh.f32 %v3257_v1  ;;  %v8155_v35 = vpop.f32.mrf.mxu1  ;;  %v8157_v18 = vpop.eup %5214  ;;  %4260 = vst [vmem:[%s8108_s26 + $0x8] sm:$0xff] %v4228_v23  ;;  %v3565_v19 = vadd.bf16 1065369472, %v3501_v58  ;;  %v3434_v37 = vmul.bf16 1056980736, %v8621_v41  ;;  %v8625_v1 = vld [vmem:[#allocation59_spill] sm:$0xff]  ;;  %v4502_v23 = vadd.f32 %v8017_v17, %v8002_v0 }
 0x493   : > { %v3500_v56 = vpack.c.bf16 %v8625_v1, %v8624_v59  ;;  %v8165_v26 = vpop.eup %5216  ;;  %v4229_v14 = vadd.f32 %v4109_v39, %v8626_v5  ;;  %v3627_v30 = vmul.bf16 %v3563_v22, %v3435_v20  ;;  %v3436_v28 = vmul.bf16 1056980736, %v8627_v12  ;;  %v8171_v58 = vpop.f32.mrf.mxu0  ;;  %v8628_v39 = vld [vmem:[#allocation70_spill] sm:$0xff] }
 0x494   : > { %v8173_v41 = vpop.f32.mrf.mxu1  ;;  %v3629_v21 = vmul.bf16 %v3565_v19, %v3437_v2  ;;  %v3562_v53 = vadd.bf16 1065369472, %v3498_v43  ;;  %v4505_v59 = vadd.f32 %v8041_v45, %v8027_v44  ;;  %v3951_v20 = vadd.f32 %v4502_v23, %v8055_v48  ;;  %v8633_v23 = vld [vmem:[#allocation67_spill] sm:$0xff] }
 0x495   : > { %v8175_v40 = vpop.eup %5218  ;;  %v3564_v47 = vadd.bf16 1065369472, %v3500_v56  ;;  %4261 = vst [vmem:[%s8108_s26 + $0x10] sm:$0xff] %v4229_v14  ;;  %4033 = vmatprep.mubr.bf16.mxu0 %v3627_v30  ;;  %v4614_v0 = vadd.f32 %v8019_v4, %v8004_v62  ;;  %v4617_v17 = vadd.f32 %v8043_v7, %v8029_v8  ;;  %v3503_v22 = vpack.c.bf16 %v8628_v39, %v8021_v42  ;;  %v8189_v2 = vpop.f32.mrf.mxu0  ;;  %v8629_v56 = vld [vmem:[#allocation57_spill] sm:$0xff]  ;;  %v8630_v62 = vld [vmem:[#allocation62_spill] sm:$0xff] }
 0x496   : > { %v8179_v1 = vpop.eup %5220  ;;  %v8191_v19 = vpop.f32.mrf.mxu1  ;;  %4194 = vmatprep.mubr.bf16.mxu1 %v3629_v21  ;;  %v3626_v44 = vmul.bf16 %v3562_v53, %v3434_v37  ;;  %v3956_v43 = vadd.f32 %v4505_v59, %v8055_v48  ;;  %v3439_v5 = vmul.bf16 1056980736, %v8629_v56  ;;  %v3441_v4 = vmul.bf16 1056980736, %v8630_v62  ;;  %v8634_v53 = vld [vmem:[#allocation68_spill] sm:$0xff]  ;;  %v8635_v59 = vld [vmem:[#allocation69_spill] sm:$0xff] }
 0x497   : > { %v3628_v45 = vmul.bf16 %v3564_v47, %v3436_v28  ;;  %v4112_v14 = vadd.f32 %v4614_v0, %v3951_v20  ;;  %v3567_v30 = vadd.bf16 1065369472, %v3503_v22  ;;  %v3505_v7 = vpack.c.bf16 %v8035_v51, %v8031_v16  ;;  %v8198_v8 = vpop.f32.mrf.mxu0  ;;  %v8631_v47 = vld [vmem:[#allocation49_spill] sm:$0xff]  ;;  %v8636_v0 = vld [vmem:[#allocation19_spill] sm:$0xff] }
 0x498   : > { %v8200_v42 = vpop.f32.mrf.mxu1  ;;  %4034 = vmatmul.mubr.bf16.gmra.mxu0 %v3626_v44  ;;  %v4117_v37 = vadd.f32 %v4617_v17, %v3956_v43  ;;  %v3438_v12 = vmul.bf16 1056980736, %v8631_v47  ;;  %v8632_v28 = vld [vmem:[#allocation65_spill] sm:$0xff]  ;;  %v3504_v20 = vpack.c.bf16 %v8635_v59, %v8634_v53  ;;  %v4508_v16 = vadd.f32 %v8067_v29, %v8057_v31  ;;  %v8637_v17 = vld [vmem:[#allocation20_spill] sm:$0xff]  ;;  %v8638_v62 = vld [vmem:[#allocation55_spill] sm:$0xff] }
 0x499   : > { %4195 = vmatmul.mubr.bf16.gmra.mxu1 %v3628_v45  ;;  %v3502_v21 = vpack.c.bf16 %v8633_v23, %v8632_v28  ;;  %v4230_v39 = vadd.f32 %v4112_v14, %v8636_v0  ;;  %v3631_v22 = vmul.bf16 %v3567_v30, %v3439_v5  ;;  %v3569_v51 = vadd.bf16 1065369472, %v3505_v7  ;;  %v8210_v56 = vpop.f32.mrf.mxu0 }
 0x49a   : > { %v8212_v44 = vpop.f32.mrf.mxu1  ;;  %v4231_v45 = vadd.f32 %v4117_v37, %v8637_v17  ;;  %v3440_v47 = vmul.bf16 1056980736, %v8638_v62  ;;  %v3568_v28 = vadd.bf16 1065369472, %v3504_v20  ;;  %v3959_v5 = vadd.f32 %v4508_v16, %v8055_v48 }
 0x49b   : > { %v3566_v43 = vadd.bf16 1065369472, %v3502_v21  ;;  %4262 = vst [vmem:[%s8108_s26 + $0x18] sm:$0xff] %v4230_v39  ;;  %4041 = vmatprep.mubr.bf16.mxu0 %v3631_v22  ;;  %v3633_v14 = vmul.bf16 %v3569_v51, %v3441_v4  ;;  %v4620_v31 = vadd.f32 %v8069_v10, %v8059_v61  ;;  %v4511_v29 = vadd.f32 %v8086_v34, %v8077_v32  ;;  %v8222_v30 = vpop.f32.mrf.mxu0  ;;  %v8639_v39 = vld [vmem:[#allocation52_spill] sm:$0xff]  ;;  %v8641_v51 = vld [vmem:[#allocation21_spill] sm:$0xff] }
 0x49c   : > { %v5223_v23 = vpop.eup %5222  ;;  %v8224_v7 = vpop.f32.mrf.mxu1  ;;  %4263 = vst [vmem:[%s8108_s26 + $0x20] sm:$0xff] %v4231_v45  ;;  %v4623_v53 = vadd.f32 %v8088_v3, %v8079_v38  ;;  %v3507_v4 = vpack.c.bf16 %v8127_v49, %v8124_v63  ;;  %v3632_v20 = vmul.bf16 %v3568_v28, %v3440_v47  ;;  %v3509_v32 = vpack.c.bf16 %v8137_v25, %v8135_v55  ;;  %v8640_v38 = vld [vmem:[#allocation50_spill] sm:$0xff] }
 0x49d   : > { %v5225_v37 = vpop.eup %5224  ;;  %v3630_v21 = vmul.bf16 %v3566_v43, %v3438_v12  ;;  %4202 = vmatprep.mubr.bf16.mxu1 %v3633_v14  ;;  %v4120_v61 = vadd.f32 %v4620_v31, %v3959_v5  ;;  %v3964_v10 = vadd.f32 %v4511_v29, %v8055_v48  ;;  %v8234_v34 = vpop.f32.mrf.mxu0  ;;  %v3443_v12 = vmul.bf16 1056980736, %v8639_v39  ;;  %v8642_v43 = vld [vmem:[#allocation54_spill] sm:$0xff] }
 0x49e   : > { %v5227_v59 = vpop.eup %5226  ;;  %v3571_v22 = vadd.bf16 1065369472, %v3507_v4  ;;  %v3445_v3 = vmul.bf16 1056980736, %v8640_v38  ;;  %v3506_v63 = vpack.c.bf16 %v8094_v27, %v8090_v60  ;;  %v8240_v49 = vpop.f32.mrf.mxu1  ;;  %v3573_v45 = vadd.bf16 1065369472, %v3509_v32 }
 0x49f   : > { %v5229_v0 = vpop.eup %5228  ;;  %v4232_v16 = vadd.f32 %v4120_v61, %v8641_v51  ;;  %v4125_v17 = vadd.f32 %v4623_v53, %v3964_v10  ;;  %v3508_v55 = vpack.c.bf16 %v8116_v54, %v8104_v50  ;;  %v3442_v62 = vmul.bf16 1056980736, %v8642_v43  ;;  %v4528_v60 = vpop.f32.mrf.mxu0  ;;  %v8643_v27 = vld [vmem:[#allocation22_spill] sm:$0xff]  ;;  %v8644_v50 = vld [vmem:[#allocation56_spill] sm:$0xff] }
 0x4a0   : > { %4042 = vmatmul.mubr.bf16.gmra.mxu0 %v3630_v21  ;;  %v3635_v25 = vmul.bf16 %v3571_v22, %v3443_v12  ;;  %v3570_v47 = vadd.bf16 1065369472, %v3506_v63  ;;  %v4514_v28 = vadd.f32 %v8120_v15, %v8100_v36  ;;  %v3637_v5 = vmul.bf16 %v3573_v45, %v3445_v3  ;;  %v4640_v4 = vpop.f32.mrf.mxu1  ;;  %v8645_v38 = vld [vmem:[#allocation28_spill] sm:$0xff]  ;;  %v8648_v43 = vld [vmem:[#allocation66_spill] sm:$0xff] }
 0x4a1   : > { %4203 = vmatmul.mubr.bf16.gmra.mxu1 %v3632_v20  ;;  %4264 = vst [vmem:[%s8108_s26 + $0x28] sm:$0xff] %v4232_v16  ;;  %v4233_v14 = vadd.f32 %v4125_v17, %v8643_v27  ;;  %v3572_v31 = vadd.bf16 1065369472, %v3508_v55  ;;  %v4517_v29 = vadd.f32 %v8144_v9, %v8131_v33  ;;  %v3444_v54 = vmul.bf16 1056980736, %v8644_v50  ;;  %v4530_v39 = vpop.f32.mrf.mxu0 }
 0x4a2   : > { %4049 = vmatprep.mubr.bf16.mxu0 %v3635_v25  ;;  %v3967_v21 = vadd.f32 %v4514_v28, %v8055_v48  ;;  %v4626_v53 = vadd.f32 %v8122_v57, %v8102_v52  ;;  %4210 = vmatprep.mubr.bf16.mxu1 %v3637_v5  ;;  %v3634_v36 = vmul.bf16 %v3570_v47, %v3442_v62  ;;  %v3447_v9 = vmul.bf16 1056980736, %v8046_v13 }
 0x4a3   : > { %4265 = vst [vmem:[%s8108_s26 + $0x30] sm:$0xff] %v4233_v14  ;;  %v3972_v15 = vadd.f32 %v4517_v29, %v8055_v48  ;;  %v4629_v20 = vadd.f32 %v8146_v6, %v8133_v11  ;;  %v3511_v61 = vpack.c.bf16 %v5225_v37, %v5223_v23  ;;  %v3636_v10 = vmul.bf16 %v3572_v31, %v3444_v54  ;;  %v4642_v6 = vpop.f32.mrf.mxu1  ;;  %v8646_v23 = vld [vmem:[#allocation23_spill] sm:$0xff]  ;;  %v8650_v14 = vld [vmem:[#allocation24_spill] sm:$0xff]  ;;  %v8651_v31 = vld [vmem:[#allocation30_spill] sm:$0xff] }
 0x4a4   : > { %v4128_v33 = vadd.f32 %v4626_v53, %v3967_v21  ;;  %v3513_v32 = vpack.c.bf16 %v5229_v0, %v5227_v59  ;;  %v3449_v52 = vmul.bf16 1056980736, %v8050_v24  ;;  %v3510_v57 = vpack.c.bf16 %v8165_v26, %v8157_v18  ;;  %v4531_v26 = vpop.f32.mrf.mxu0  ;;  %v8653_v21 = vld [vmem:[#allocation31_spill] sm:$0xff] }
 0x4a5   : > { %v4133_v12 = vadd.f32 %v4629_v20, %v3972_v15  ;;  %v3575_v22 = vadd.bf16 1065369472, %v3511_v61  ;;  %v3512_v11 = vpack.c.bf16 %v8179_v1, %v8175_v40  ;;  %v4520_v13 = vadd.f32 %v8171_v58, %v8153_v46  ;;  %v8647_v40 = vld [vmem:[#allocation60_spill] sm:$0xff] }
 0x4a6   : > { %v4234_v3 = vadd.f32 %v4128_v33, %v8645_v38  ;;  %v3577_v63 = vadd.bf16 1065369472, %v3513_v32  ;;  %v4632_v18 = vadd.f32 %v8173_v41, %v8155_v35  ;;  %v3446_v1 = vmul.bf16 1056980736, %v8647_v40  ;;  %v4643_v41 = vpop.f32.mrf.mxu1  ;;  %v8654_v38 = vld [vmem:[#allocation33_spill] sm:$0xff] }
 0x4a7   : > { %v4235_v37 = vadd.f32 %v4133_v12, %v8646_v23  ;;  %v3639_v59 = vmul.bf16 %v3575_v22, %v3447_v9  ;;  %v3975_v0 = vadd.f32 %v4520_v13, %v8055_v48  ;;  %v3574_v51 = vadd.bf16 1065369472, %v3510_v57 }
 0x4a8   : > { %4050 = vmatmul.mubr.bf16.gmra.mxu0 %v3634_v36  ;;  %4266 = vst [vmem:[%s8108_s26 + $0x38] sm:$0xff] %v4234_v3  ;;  %v3641_v24 = vmul.bf16 %v3577_v63, %v3449_v52  ;;  %v4523_v46 = vadd.f32 %v8198_v8, %v8189_v2  ;;  %v4526_v58 = vadd.f32 %v8222_v30, %v8210_v56  ;;  %v3576_v16 = vadd.bf16 1065369472, %v3512_v11  ;;  %v8649_v30 = vld [vmem:[#allocation29_spill] sm:$0xff] }
 0x4a9   : > { %4211 = vmatmul.mubr.bf16.gmra.mxu1 %v3636_v10  ;;  %4267 = vst [vmem:[%s8108_s26 + $0x40] sm:$0xff] %v4235_v37  ;;  %4057 = vmatprep.mubr.bf16.mxu0 %v3639_v59  ;;  %v4136_v17 = vadd.f32 %v4632_v18, %v3975_v0  ;;  %v4635_v45 = vadd.f32 %v8200_v42, %v8191_v19  ;;  %v3448_v56 = vmul.bf16 1056980736, %v8648_v43  ;;  %v8655_v0 = vld [vmem:[#allocation32_spill] sm:$0xff] }
 0x4aa   : > { %4218 = vmatprep.mubr.bf16.mxu1 %v3641_v24  ;;  %v4529_v35 = vadd.f32 %v4528_v60, %v8234_v34  ;;  %v3980_v55 = vadd.f32 %v4523_v46, %v8055_v48  ;;  %v3983_v25 = vadd.f32 %v4526_v58, %v8055_v48  ;;  %v4638_v2 = vadd.f32 %v8224_v7, %v8212_v44 }
 0x4ab   : > { %v4532_v8 = vadd.f32 %v4531_v26, %v4530_v39  ;;  %v4236_v62 = vadd.f32 %v4136_v17, %v8649_v30  ;;  %v4641_v19 = vadd.f32 %v4640_v4, %v8240_v49  ;;  %v4644_v60 = vadd.f32 %v4643_v41, %v4642_v6  ;;  %v8652_v49 = vld [vmem:[#allocation25_spill] sm:$0xff] }
 0x4ac   : > { %v3988_v47 = vadd.f32 %v4529_v35, %v8055_v48  ;;  %v4141_v42 = vadd.f32 %v4635_v45, %v3980_v55  ;;  %v4144_v34 = vadd.f32 %v4638_v2, %v3983_v25  ;;  %v3638_v27 = vmul.bf16 %v3574_v51, %v3446_v1  ;;  %v8656_v45 = vld [vmem:[#allocation34_spill] sm:$0xff] }
 0x4ad   : > { %v3991_v28 = vadd.f32 %v4532_v8, %v8055_v48  ;;  %v3640_v44 = vmul.bf16 %v3576_v16, %v3448_v56  ;;  %4268 = vst [vmem:[%s8108_s26 + $0x48] sm:$0xff] %v4236_v62  ;;  %v8657_v8 = vld [vmem:[#allocation35_spill] sm:$0xff] }
 0x4ae   : > { %v4149_v7 = vadd.f32 %v4641_v19, %v3988_v47  ;;  %v4237_v5 = vadd.f32 %v4141_v42, %v8650_v14  ;;  %v4238_v29 = vadd.f32 %v4144_v34, %v8651_v31  ;;  %v8658_v14 = vld [vmem:[#allocation36_spill] sm:$0xff] }
 0x4af   : > { %v4152_v50 = vadd.f32 %v4644_v60, %v3991_v28 }
 0x4b0   : > { %4058 = vmatmul.mubr.bf16.gmra.mxu0 %v3638_v27  ;;  %v4239_v54 = vadd.f32 %v4149_v7, %v8652_v49  ;;  %4269 = vst [vmem:[%s8108_s26 + $0x50] sm:$0xff] %v4237_v5  ;;  %4270 = vst [vmem:[%s8108_s26 + $0x58] sm:$0xff] %v4238_v29 }
 0x4b1   : > { %4219 = vmatmul.mubr.bf16.gmra.mxu1 %v3640_v44  ;;  %v4240_v53 = vadd.f32 %v4152_v50, %v8653_v21  ;;  %v8659_v50 = vld [vmem:[#allocation37_spill] sm:$0xff] }
 0x4b2   : > { %4271 = vst [vmem:[%s8108_s26 + $0x60] sm:$0xff] %v4239_v54 }
 0x4b3   : > { %4272 = vst [vmem:[%s8108_s26 + $0x68] sm:$0xff] %v4240_v53 }
 0x502   : > { %v4533_v4 = vpop.f32.mrf.mxu0 }
 0x504   : > { %v4645_v36 = vpop.f32.mrf.mxu1  ;;  %v4534_v15 = vpop.f32.mrf.mxu0 }
 0x505   : > { %v4535_v20 = vadd.f32 %v4534_v15, %v4533_v4 }
 0x506   : > { %v4646_v61 = vpop.f32.mrf.mxu1  ;;  %v4536_v10 = vpop.f32.mrf.mxu0 }
 0x507   : > { %v3996_v33 = vadd.f32 %v4535_v20, %v8055_v48  ;;  %v4647_v9 = vadd.f32 %v4646_v61, %v4645_v36 }
 0x508   : > { %v4648_v32 = vpop.f32.mrf.mxu1  ;;  %v4537_v39 = vpop.f32.mrf.mxu0 }
 0x509   : > { %v4157_v12 = vadd.f32 %v4647_v9, %v3996_v33  ;;  %v4538_v22 = vadd.f32 %v4537_v39, %v4536_v10 }
 0x50a   : > { %v4649_v52 = vpop.f32.mrf.mxu1  ;;  %v4539_v57 = vpop.f32.mrf.mxu0 }
 0x50b   : > { %v4241_v3 = vadd.f32 %v4157_v12, %v8654_v38  ;;  %v3999_v63 = vadd.f32 %v4538_v22, %v8055_v48  ;;  %v4650_v11 = vadd.f32 %v4649_v52, %v4648_v32  ;;  %v8660_v12 = vld [vmem:[#allocation38_spill] sm:$0xff] }
 0x50c   : > { %v4651_v13 = vpop.f32.mrf.mxu1  ;;  %v4540_v6 = vpop.f32.mrf.mxu0 }
 0x50d   : > { %4273 = vst [vmem:[%s8108_s26 + $0x70] sm:$0xff] %v4241_v3  ;;  %v4160_v23 = vadd.f32 %v4650_v11, %v3999_v63  ;;  %v4541_v37 = vadd.f32 %v4540_v6, %v4539_v57  ;;  %v8661_v3 = vld [vmem:[#allocation39_spill] sm:$0xff] }
 0x50e   : > { %v4652_v59 = vpop.f32.mrf.mxu1  ;;  %v4542_v24 = vpop.f32.mrf.mxu0 }
 0x50f   : > { %v4242_v18 = vadd.f32 %v4160_v23, %v8655_v0  ;;  %v4004_v26 = vadd.f32 %v4541_v37, %v8055_v48  ;;  %v4653_v40 = vadd.f32 %v4652_v59, %v4651_v13 }
 0x510   : > { %v4654_v1 = vpop.f32.mrf.mxu1  ;;  %v4543_v51 = vpop.f32.mrf.mxu0 }
 0x511   : > { %4274 = vst [vmem:[%s8108_s26 + $0x78] sm:$0xff] %v4242_v18  ;;  %v4165_v46 = vadd.f32 %v4653_v40, %v4004_v26  ;;  %v4544_v58 = vadd.f32 %v4543_v51, %v4542_v24 }
 0x512   : > { %v4655_v16 = vpop.f32.mrf.mxu1  ;;  %v4545_v17 = vpop.f32.mrf.mxu0 }
 0x513   : > { %v4243_v35 = vadd.f32 %v4165_v46, %v8656_v45  ;;  %v4007_v41 = vadd.f32 %v4544_v58, %v8055_v48  ;;  %v4656_v55 = vadd.f32 %v4655_v16, %v4654_v1  ;;  %v8662_v46 = vld [vmem:[#allocation40_spill] sm:$0xff] }
 0x514   : > { %v4546_v25 = vpop.f32.mrf.mxu0 }
 0x515   : > { %4275 = vst [vmem:[%s8108_s26 + $0x80] sm:$0xff] %v4243_v35  ;;  %v4168_v2 = vadd.f32 %v4656_v55, %v4007_v41  ;;  %v4547_v30 = vadd.f32 %v4546_v25, %v4545_v17 }
 0x516   : > { %v4548_v56 = vpop.f32.mrf.mxu0 }
 0x517   : > { %v4244_v43 = vadd.f32 %v4168_v2, %v8657_v8  ;;  %v4012_v19 = vadd.f32 %v4547_v30, %v8055_v48  ;;  %v8663_v8 = vld [vmem:[#allocation41_spill] sm:$0xff] }
 0x518   : > { %v4549_v62 = vpop.f32.mrf.mxu0 }
 0x519   : > { %4276 = vst [vmem:[%s8108_s26 + $0x88] sm:$0xff] %v4244_v43  ;;  %v4550_v42 = vadd.f32 %v4549_v62, %v4548_v56 }
 0x51b   : > { %v4015_v44 = vadd.f32 %v4550_v42, %v8055_v48 }
 0x51d   : > { %v4657_v47 = vpop.f32.mrf.mxu1 }
 0x51f   : > { %v4658_v34 = vpop.f32.mrf.mxu1 }
 0x520   : > { %v4659_v28 = vadd.f32 %v4658_v34, %v4657_v47 }
 0x521   : > { %v4660_v60 = vpop.f32.mrf.mxu1 }
 0x522   : > { %v4173_v27 = vadd.f32 %v4659_v28, %v4012_v19 }
 0x523   : > { %v4661_v7 = vpop.f32.mrf.mxu1 }
 0x524   : > { %v4245_v5 = vadd.f32 %v4173_v27, %v8658_v14  ;;  %v4662_v31 = vadd.f32 %v4661_v7, %v4660_v60 }
 0x526   : > { %4277 = vst [vmem:[%s8108_s26 + $0x90] sm:$0xff] %v4245_v5  ;;  %v4176_v29 = vadd.f32 %v4662_v31, %v4015_v44  ;;  %v8664_v44 = vld [vmem:[#allocation42_spill] sm:$0xff] }
 0x528   : > { %v4246_v49 = vadd.f32 %v4176_v29, %v8659_v50 }
 0x52a   : > { %4278 = vst [vmem:[%s8108_s26 + $0x98] sm:$0xff] %v4246_v49 }
 0x542   : > { %v4551_v54 = vpop.f32.mrf.mxu0  ;;  %v4663_v21 = vpop.f32.mrf.mxu1 }
 0x544   : > { %v4552_v53 = vpop.f32.mrf.mxu0  ;;  %v4664_v4 = vpop.f32.mrf.mxu1 }
 0x545   : > { %v4553_v36 = vadd.f32 %v4552_v53, %v4551_v54  ;;  %v4665_v10 = vadd.f32 %v4664_v4, %v4663_v21  ;;  %v8665_v53 = vld [vmem:[#allocation43_spill] sm:$0xff] }
 0x546   : > { %v4554_v15 = vpop.f32.mrf.mxu0  ;;  %v4666_v20 = vpop.f32.mrf.mxu1 }
 0x547   : > { %v4020_v61 = vadd.f32 %v4553_v36, %v8055_v48 }
 0x548   : > { %v4555_v33 = vpop.f32.mrf.mxu0  ;;  %v4667_v9 = vpop.f32.mrf.mxu1 }
 0x549   : > { %v4181_v32 = vadd.f32 %v4665_v10, %v4020_v61  ;;  %v4556_v39 = vadd.f32 %v4555_v33, %v4554_v15  ;;  %v4668_v57 = vadd.f32 %v4667_v9, %v4666_v20 }
 0x54b   : > { %v4247_v22 = vadd.f32 %v4181_v32, %v8660_v12  ;;  %v4023_v52 = vadd.f32 %v4556_v39, %v8055_v48  ;;  %v8666_v39 = vld [vmem:[#allocation44_spill] sm:$0xff] }
 0x54d   : > { %4279 = vst [vmem:[%s8108_s26 + $0xa0] sm:$0xff] %v4247_v22  ;;  %v4184_v38 = vadd.f32 %v4668_v57, %v4023_v52 }
 0x54f   : > { %v4248_v63 = vadd.f32 %v4184_v38, %v8661_v3 }
 0x550   : > { %v4557_v11 = vpop.f32.mrf.mxu0  ;;  %v4669_v13 = vpop.f32.mrf.mxu1 }
 0x551   : > { %4280 = vst [vmem:[%s8108_s26 + $0xa8] sm:$0xff] %v4248_v63 }
 0x552   : > { %v4558_v6 = vpop.f32.mrf.mxu0  ;;  %v4670_v37 = vpop.f32.mrf.mxu1 }
 0x553   : > { %v4559_v23 = vadd.f32 %v4558_v6, %v4557_v11  ;;  %v4671_v0 = vadd.f32 %v4670_v37, %v4669_v13  ;;  %v8667_v6 = vld [vmem:[#allocation45_spill] sm:$0xff] }
 0x554   : > { %v4560_v59 = vpop.f32.mrf.mxu0  ;;  %v4672_v18 = vpop.f32.mrf.mxu1 }
 0x555   : > { %v4028_v24 = vadd.f32 %v4559_v23, %v8055_v48 }
 0x556   : > { %v4561_v26 = vpop.f32.mrf.mxu0  ;;  %v4673_v51 = vpop.f32.mrf.mxu1 }
 0x557   : > { %v4189_v40 = vadd.f32 %v4671_v0, %v4028_v24  ;;  %v4562_v1 = vadd.f32 %v4561_v26, %v4560_v59  ;;  %v4674_v17 = vadd.f32 %v4673_v51, %v4672_v18  ;;  %v8668_v51 = vld [vmem:[#allocation46_spill] sm:$0xff] }
 0x558   : > { %v4563_v45 = vpop.f32.mrf.mxu0 }
 0x559   : > { %v4249_v58 = vadd.f32 %v4189_v40, %v8662_v46  ;;  %v4031_v16 = vadd.f32 %v4562_v1, %v8055_v48  ;;  %v4675_v35 = vpop.f32.mrf.mxu1 }
 0x55a   : > { %v4564_v55 = vpop.f32.mrf.mxu0 }
 0x55b   : > { %4281 = vst [vmem:[%s8108_s26 + $0xb0] sm:$0xff] %v4249_v58  ;;  %v4192_v41 = vadd.f32 %v4674_v17, %v4031_v16  ;;  %v4676_v25 = vpop.f32.mrf.mxu1  ;;  %v4565_v2 = vadd.f32 %v4564_v55, %v4563_v45 }
 0x55c   : > { %v4566_v56 = vpop.f32.mrf.mxu0  ;;  %v4677_v47 = vadd.f32 %v4676_v25, %v4675_v35 }
 0x55d   : > { %v4250_v43 = vadd.f32 %v4192_v41, %v8663_v8  ;;  %v4678_v30 = vpop.f32.mrf.mxu1  ;;  %v4036_v62 = vadd.f32 %v4565_v2, %v8055_v48  ;;  %v8669_v2 = vld [vmem:[#allocation47_spill] sm:$0xff] }
 0x55e   : > { %v4567_v19 = vpop.f32.mrf.mxu0 }
 0x55f   : > { %4282 = vst [vmem:[%s8108_s26 + $0xb8] sm:$0xff] %v4250_v43  ;;  %v4679_v42 = vpop.f32.mrf.mxu1  ;;  %v4197_v34 = vadd.f32 %v4677_v47, %v4036_v62  ;;  %v4568_v28 = vadd.f32 %v4567_v19, %v4566_v56 }
 0x560   : > { %v4569_v60 = vpop.f32.mrf.mxu0  ;;  %v4680_v5 = vadd.f32 %v4679_v42, %v4678_v30  ;;  %v8670_v42 = vld [vmem:[#allocation27_spill] sm:$0xff] }
 0x561   : > { %v4681_v27 = vpop.f32.mrf.mxu1  ;;  %v4251_v7 = vadd.f32 %v4197_v34, %v8664_v44  ;;  %v4039_v14 = vadd.f32 %v4568_v28, %v8055_v48  ;;  %v8671_v44 = vld [vmem:[#allocation26_spill] sm:$0xff] }
 0x562   : > { %v4570_v31 = vpop.f32.mrf.mxu0 }
 0x563   : > { %v4682_v29 = vpop.f32.mrf.mxu1  ;;  %4283 = vst [vmem:[%s8108_s26 + $0xc0] sm:$0xff] %v4251_v7  ;;  %v4200_v50 = vadd.f32 %v4680_v5, %v4039_v14  ;;  %v4571_v49 = vadd.f32 %v4570_v31, %v4569_v60 }
 0x564   : > { %v4572_v54 = vpop.f32.mrf.mxu0  ;;  %v4683_v15 = vadd.f32 %v4682_v29, %v4681_v27 }
 0x565   : > { %v4684_v21 = vpop.f32.mrf.mxu1  ;;  %v4252_v4 = vadd.f32 %v4200_v50, %v8665_v53  ;;  %v4044_v36 = vadd.f32 %v4571_v49, %v8055_v48 }
 0x566   : > { %v4573_v20 = vpop.f32.mrf.mxu0 }
 0x567   : > { %v4685_v61 = vpop.f32.mrf.mxu1  ;;  %4284 = vst [vmem:[%s8108_s26 + $0xc8] sm:$0xff] %v4252_v4  ;;  %v4205_v10 = vadd.f32 %v4683_v15, %v4044_v36  ;;  %v4574_v33 = vadd.f32 %v4573_v20, %v4572_v54 }
 0x568   : > { %v4575_v9 = vpop.f32.mrf.mxu0  ;;  %v4686_v52 = vadd.f32 %v4685_v61, %v4684_v21 }
 0x569   : > { %v4687_v32 = vpop.f32.mrf.mxu1  ;;  %v4253_v12 = vadd.f32 %v4205_v10, %v8666_v39  ;;  %v4047_v22 = vadd.f32 %v4574_v33, %v8055_v48 }
 0x56a   : > { %v4576_v57 = vpop.f32.mrf.mxu0 }
 0x56b   : > { %v4688_v38 = vpop.f32.mrf.mxu1  ;;  %4285 = vst [vmem:[%s8108_s26 + $0xd0] sm:$0xff] %v4253_v12  ;;  %v4208_v3 = vadd.f32 %v4686_v52, %v4047_v22  ;;  %v4577_v63 = vadd.f32 %v4576_v57, %v4575_v9 }
 0x56c   : > { %v4578_v11 = vpop.f32.mrf.mxu0  ;;  %v4689_v59 = vadd.f32 %v4688_v38, %v4687_v32 }
 0x56d   : > { %v4690_v13 = vpop.f32.mrf.mxu1  ;;  %v4254_v23 = vadd.f32 %v4208_v3, %v8667_v6  ;;  %v4052_v37 = vadd.f32 %v4577_v63, %v8055_v48 }
 0x56e   : > { %v4579_v24 = vpop.f32.mrf.mxu0 }
 0x56f   : > { %v4691_v0 = vpop.f32.mrf.mxu1  ;;  %4286 = vst [vmem:[%s8108_s26 + $0xd8] sm:$0xff] %v4254_v23  ;;  %v4213_v18 = vadd.f32 %v4689_v59, %v4052_v37  ;;  %v4580_v26 = vadd.f32 %v4579_v24, %v4578_v11 }
 0x570   : > { %v4581_v40 = vpop.f32.mrf.mxu0  ;;  %v4692_v16 = vadd.f32 %v4691_v0, %v4690_v13 }
 0x571   : > { %v4693_v1 = vpop.f32.mrf.mxu1  ;;  %v4255_v46 = vadd.f32 %v4213_v18, %v8668_v51  ;;  %v4055_v58 = vadd.f32 %v4580_v26, %v8055_v48 }
 0x572   : > { %v4582_v17 = vpop.f32.mrf.mxu0 }
 0x573   : > { %v4694_v45 = vpop.f32.mrf.mxu1  ;;  %4287 = vst [vmem:[%s8108_s26 + $0xe0] sm:$0xff] %v4255_v46  ;;  %v4216_v35 = vadd.f32 %v4692_v16, %v4055_v58  ;;  %v4583_v41 = vadd.f32 %v4582_v17, %v4581_v40 }
 0x574   : > { %v4584_v55 = vpop.f32.mrf.mxu0  ;;  %v4695_v56 = vadd.f32 %v4694_v45, %v4693_v1 }
 0x575   : > { %v4696_v25 = vpop.f32.mrf.mxu1  ;;  %v4256_v8 = vadd.f32 %v4216_v35, %v8669_v2  ;;  %v4060_v43 = vadd.f32 %v4583_v41, %v8055_v48 }
 0x576   : > { %v4585_v30 = vpop.f32.mrf.mxu0 }
 0x577   : > { %v4697_v62 = vpop.f32.mrf.mxu1  ;;  %4288 = vst [vmem:[%s8108_s26 + $0xe8] sm:$0xff] %v4256_v8  ;;  %v4221_v47 = vadd.f32 %v4695_v56, %v4060_v43  ;;  %v4586_v19 = vadd.f32 %v4585_v30, %v4584_v55 }
 0x578   : > { %v4698_v60 = vadd.f32 %v4697_v62, %v4696_v25 }
 0x579   : > { %v4257_v34 = vadd.f32 %v4221_v47, %v8670_v42  ;;  %v4063_v28 = vadd.f32 %v4586_v19, %v8055_v48 }
 0x57b   : > { %4289 = vst [vmem:[%s8108_s26 + $0xf0] sm:$0xff] %v4257_v34  ;;  %v4224_v27 = vadd.f32 %v4698_v60, %v4063_v28 }
 0x57d   : > { %v4258_v7 = vadd.f32 %v4224_v27, %v8671_v44 }
 0x57f   : > { %4290 = vst [vmem:[%s8108_s26 + $0xf8] sm:$0xff] %v4258_v7 }
 0x580   : > { %5347 = shalt.err (!%p5344_p0)
}
 0x581   : > { %s5348_s12 = scalar_lea.hbm %s8358_s23, 4096  ;;  %s5352_s11 = scalar_lea.hbm %s8415_s10, 8192 }
 0x582   : > { %p5349_p5 = scmp.ne.s32.totalorder %s8358_s23, %s5348_s12  ;;  %p5353_p4 = scmp.lt.s32.totalorder %s8358_s23, %s8415_s10 }
 0x583   : > { %p5354_p6 = scmp.lt.s32.totalorder %s5352_s11, %s5348_s12 }
 0x584   : > { %p5350_p9 = pnand %p5349_p5, %p8672_p11 }
 0x585   : > { %p5355_p8 = por %p5354_p6, %p5353_p4 }
 0x586   : > { %p5351_p1 = pneg %p5350_p9 }
 0x588   : > { %p5356_p3 = pnand %p5355_p8, %p5351_p1 }
 0x58a   : > { %5359 = shalt.err (!%p5356_p3)
}
 0x58b   : > { %s5413_s29 = smov 128   ;;  %s5414_s28 = smov 8  }
 0x58c   : > { %4705 = dma.vmem_to_hbm [thread:$0]  (%p8672_p11), %s8360_s27, 4096, %s8358_s23, %s4292_s24, %s5413_s29, %s5413_s29, %s5414_s28  }
 0x58d PF: > { %s8673_s13 = sld [smem:[#allocation13_spill]]  ;;  %p8676_p12 = scmp.ge.s32.totalorder %s5402_s16, 2 }
 0x58e   : > { %s8674_s17 = sld [smem:[#allocation14_spill]] }
 0x593   : > { %s4320_s30 = sand.u32 1, %s8673_s13  }
 0x594   : > { %p8675_p7 = scmp.ne.s32.totalorder %s8674_s17, 0  ;;  %s4321_s25 = scalar_lea.sflag [#allocation6], %s4320_s30 }
 0x596   : > { %p4716_p10 = pnand %p8676_p12, %p8675_p7 }
 0x598   : > { %p4717_p2 = pneg %p4716_p10 }
 0x59a   : > { %5385 = dma.done.wait (%p4717_p2), %s4321_s25, 4096  }
 0x59b   : > { %5387 = vsyncadd (%p4717_p2), %s4321_s25, 4294963200  ;;  %s8677_s16 = sld [smem:[#allocation15_spill]]  ;;  %s8678_s13 = smov %s5394_s14 }
 0x59c   : > { %s8679_s14 = smov %s5398_s15  ;;  %s8680_s15 = smov %s5541_s18 }
 0x5a1   : > { %p24_p13 = scmp.ge.s32.totalorder %s8677_s16, 4  }
 0x5a3   :  { %26 = sbr.rel (!%p24_p13) target bundleno = 8 (0x8), region = 112 }
 0x5a8   :  { %4326 = vsyncpa [#allocation5], 1 }
 0x5a9   :  { %4328 = vsyncpa [#allocation5 + $0x1], 1 }
 0x5aa   :  { %4329 = vsyncpa [#allocation8], 1 }
 0x5ab   :  { %4330 = vsyncpa [#allocation6], 1 }
 0x5ac   :  { %4332 = vsyncpa [#allocation6 + $0x1], 1 }

</bundles_post_ra>
